<compile_context>
chip_gen: v7x
topology: tpu7x:2x2x1
jax: 0.10.0
libtpu: 0.0.40
codegen_flags: <defaults>
</compile_context>

<pallas_src>
import jax
import jax.numpy as jnp
import numpy as np
from jax.experimental import pallas as pl
from jax.experimental.pallas import tpu as pltpu


# ----------------------------------------------------------------------------
# Fused FPN kernel
# ----------------------------------------------------------------------------
def _acc_dx_taps(taps_ref, kd, hv, acc, C, WC):
    """Accumulate the 3 dx taps of depthwise row-variant `hv` (rows, W*C)."""
    for kx in range(3):
        if kx == 0:       # reads x-1 : roll right by C lanes
            hs = pltpu.roll(hv, shift=C, axis=1)
        elif kx == 2:     # reads x+1 : roll left by C lanes
            hs = pltpu.roll(hv, shift=WC - C, axis=1)
        else:             # reads x
            hs = hv
        # Tap weight vector (1, W*C); wrap-around border lanes pre-zeroed.
        t = taps_ref[3 * kd + kx:3 * kd + kx + 1, :]
        term = hs * t
        acc = term if acc is None else acc + term
    return acc


def _make_fpn_kernel(level_hw, C):
    """Build the fused kernel for a pyramid with spatial sizes `level_hw`."""
    L = len(level_hw)

    def kernel(*refs):
        x_refs = refs[:L]                                  # (R, W*C) per level
        p_refs = refs[L:L + 6 * L]                         # 6 params per level
        u_refs = refs[L + 6 * L:L + 6 * L + 2 * (L - 1)]   # (sh, dw) per level
        o_refs = refs[L + 6 * L + 2 * (L - 1):]            # (R, W*C) per level

        prev = None                                        # coarser-level output
        for lvl in reversed(range(L)):                     # high (small) -> low
            H, W = level_hw[lvl]
            WC = W * C
            wblk = p_refs[6 * lvl + 0][...]                # (WC, WC) bf16
            b1 = p_refs[6 * lvl + 1][...]                  # (1, WC)  f32
            taps = p_refs[6 * lvl + 2]                     # (9, WC)  f32 ref
            b2 = p_refs[6 * lvl + 3][...]                  # (1, WC)  f32
            ush = p_refs[6 * lvl + 4][...]                 # (R, R) reads y+1
            dsh = p_refs[6 * lvl + 5][...]                 # (R, R) reads y-1

            x = x_refs[lvl][...]                           # (R, WC) f32
            # 1x1 pointwise conv (BN1 folded) as one big MXU matmul against a
            # block-diagonal bf16 weight; keeps the lane-dense layout.
            h = jnp.dot(x.astype(jnp.bfloat16), wblk,
                        preferred_element_type=jnp.float32)
            h = jnp.maximum(h + b1, 0.0)

            # 3x3 depthwise (BN2 folded), padding=1.
            acc = None
            h_dn = jnp.dot(dsh, h, preferred_element_type=jnp.float32)  # h[y-1]
            acc = _acc_dx_taps(taps, 0, h_dn, acc, C, WC)
            acc = _acc_dx_taps(taps, 1, h, acc, C, WC)
            h_up = jnp.dot(ush, h, preferred_element_type=jnp.float32)  # h[y+1]
            acc = _acc_dx_taps(taps, 2, h_up, acc, C, WC)
            y = jnp.maximum(acc + b2, 0.0)

            if prev is not None:
                # Nearest 2x upsample of the coarser output as two small
                # separable 0/1 matmuls (rows, then lanes) on the idle MXU.
                sh = u_refs[2 * lvl + 0][...]              # (R, R_coarse)
                dw = u_refs[2 * lvl + 1][...]              # (WC_coarse, WC)
                up = jnp.dot(sh, prev, preferred_element_type=jnp.float32)
                up = jnp.dot(up, dw, preferred_element_type=jnp.float32)
                y = y + up

            o_refs[lvl][...] = y.astype(o_refs[lvl].dtype)
            prev = y

    return kernel


# ----------------------------------------------------------------------------
# Constant builders (run once, outside the kernel)
# ----------------------------------------------------------------------------
def _build_level_constants(w1s, b1, dwt, b2, N, H, W):
    """Expand folded DWUnit params into the (rows=N*H, lanes=W*C) layout."""
    C = w1s.shape[0]
    WC = W * C
    R = N * H
    # Block-diagonal 1x1 weight: W copies of (C_in, C_out) on the diagonal.
    wblk = jnp.kron(jnp.eye(W, dtype=jnp.float32), w1s).astype(jnp.bfloat16)
    b1_t = jnp.tile(jnp.reshape(b1, (1, C)), (1, W))       # (1, WC)
    b2_t = jnp.tile(jnp.reshape(b2, (1, C)), (1, W))       # (1, WC)
    # 9 depthwise taps tiled over W; zero the roll wrap-around border lanes.
    taps = np.zeros((9, WC), np.float32)
    dwt_np = np.asarray(dwt, np.float32)                   # (3, 3, C)
    for kd in range(3):
        for kx in range(3):
            row = np.tile(dwt_np[kd, kx], W)
            if kx == 0:                   # reads x-1: invalid at w == 0
                row[:C] = 0.0
            elif kx == 2:                 # reads x+1: invalid at w == W-1
                row[(W - 1) * C:] = 0.0
            taps[3 * kd + kx] = row
    # dy shift matrices (0/1): read y+1 / y-1, zeroed at image/batch borders.
    ush = np.zeros((R, R), np.float32)
    dsh = np.zeros((R, R), np.float32)
    for r in range(R):
        if r % H != H - 1:
            ush[r, r + 1] = 1.0
        if r % H != 0:
            dsh[r, r - 1] = 1.0
    return (wblk, b1_t, jnp.asarray(taps), b2_t,
            jnp.asarray(ush), jnp.asarray(dsh))


def _build_upsample_matrices(N, H, W, C):
    """Separable nearest-2x upsample: rows (N*H) via sh, lanes (W*C) via dw."""
    Hc, Wc = H // 2, W // 2
    R, Rc = N * H, N * Hc
    sh = np.zeros((R, Rc), np.float32)
    for n in range(N):
        for y in range(H):
            sh[n * H + y, n * Hc + y // 2] = 1.0
    dw = np.zeros((Wc * C, W * C), np.float32)
    for w in range(W):
        wc = w // 2
        dw[wc * C:(wc + 1) * C, w * C:(w + 1) * C] = np.eye(C, dtype=np.float32)
    return jnp.asarray(sh), jnp.asarray(dw)


def _cost(level_hw, N, C):
    flops = 0
    bytes_accessed = 0
    for lvl, (H, W) in enumerate(level_hw):
        R, WC = N * H, W * C
        flops += 2 * R * WC * WC            # block-diag 1x1 matmul
        flops += 2 * 2 * R * R * WC         # dy shift matmuls
        flops += 2 * 9 * R * WC             # depthwise taps
        bytes_accessed += R * WC * 4 * 2    # x in + y out
        bytes_accessed += WC * WC * 2       # bf16 weight
        if lvl < len(level_hw) - 1:
            Hc, Wc = level_hw[lvl + 1]
            Rc, WCc = N * Hc, Wc * C
            flops += 2 * (R * Rc * WCc + R * WCc * WC)
            bytes_accessed += (R * Rc + WCc * WC) * 4
    return int(flops), int(bytes_accessed)


# ----------------------------------------------------------------------------
# Wrapper: one pallas_call for the whole FPN
# ----------------------------------------------------------------------------
def yunet_fpn(feature_maps, params_list):
    """Fused YunetFpn forward.

    feature_maps: list of NHWC arrays (N, H, W, C), low -> high level
                  (each level spatially 2x the next one).
    params_list:  list of folded DWUnit params (w1s, b1, dwt, b2) per level.
    Returns a list of NHWC arrays with the same shapes as feature_maps.
    """
    if len(feature_maps) == 0:
        raise ValueError('The channels list is empty.')
    if len(feature_maps) != len(params_list):
        raise ValueError('feature_maps must have the same length as channels.')
    C = int(feature_maps[0].shape[-1])
    if any(x.shape[-1] != C for x in feature_maps):
        raise ValueError('All channels must be equals')
    N = int(feature_maps[0].shape[0])
    level_hw = tuple((int(x.shape[1]), int(x.shape[2])) for x in feature_maps)
    L = len(level_hw)
    for (hf, wf), (hc, wc) in zip(level_hw[:-1], level_hw[1:]):
        if hf != 2 * hc or wf != 2 * wc:
            raise ValueError('Each level must be 2x the spatial size of the next.')

    inputs, in_specs = [], []
    # Feature maps: batch folded into rows, channels into lanes -> (N*H, W*C).
    for x, (H, W) in zip(feature_maps, level_hw):
        x2d = x.reshape(N * H, W * C)          # metadata-only on NHWC data
        inputs.append(x2d)
        in_specs.append(pl.BlockSpec((N * H, W * C), lambda i: (0, 0)))
    # Per-level DWUnit constants in kernel layout.
    for (w1s, b1, dwt, b2), (H, W) in zip(params_list, level_hw):
        for c_arr in _build_level_constants(w1s, b1, dwt, b2, N, H, W):
            inputs.append(c_arr)
            in_specs.append(pl.BlockSpec(c_arr.shape, lambda i: (0, 0)))
    # Separable nearest-2x upsample matrices for every non-top level.
    for lvl in range(L - 1):
        H, W = level_hw[lvl]
        for c_arr in _build_upsample_matrices(N, H, W, C):
            inputs.append(c_arr)
            in_specs.append(pl.BlockSpec(c_arr.shape, lambda i: (0, 0)))

    out_shape = tuple(jax.ShapeDtypeStruct((N * H, W * C), feature_maps[l].dtype)
                      for l, (H, W) in enumerate(level_hw))
    out_specs = tuple(pl.BlockSpec((N * H, W * C), lambda i: (0, 0))
                      for (H, W) in level_hw)

    flops, bytes_accessed = _cost(level_hw, N, C)
    outs = pl.pallas_call(
        _make_fpn_kernel(level_hw, C),
        out_shape=out_shape,
        grid=(1,),
        in_specs=in_specs,
        out_specs=out_specs,
        compiler_params=pltpu.CompilerParams(
            dimension_semantics=("arbitrary",),
            vmem_limit_bytes=32 * 1024 * 1024),
        cost_estimate=pl.CostEstimate(flops=flops, transcendentals=0,
                                      bytes_accessed=bytes_accessed),
    )(*inputs)
    return [o.reshape(N, H, W, C) for o, (H, W) in zip(outs, level_hw)]


# ----------------------------------------------------------------------------
# Parameter folding (eval-mode BatchNorm folded into conv weights)
# ----------------------------------------------------------------------------
def fold_dwunit_params(pw_weight, bn1, dw_weight, bn2, eps=1e-5):
    """pw_weight: (C, C, 1, 1) PyTorch 1x1 Conv2d weight (out, in).
       dw_weight: (C, 1, 3, 3) PyTorch depthwise Conv2d weight.
       bn1 / bn2: (gamma, beta, running_mean, running_var).
       Returns (w1s (C_in, C_out), b1 (C,), dwt (3, 3, C), b2 (C,))."""
    g1, be1, m1, v1 = bn1
    g2, be2, m2, v2 = bn2
    C = dw_weight.shape[0]
    pw = jnp.asarray(pw_weight, jnp.float32).reshape(C, C)   # (out, in)
    s1 = g1 / jnp.sqrt(v1 + eps)
    b1 = be1 - m1 * s1
    w1s = pw.T * s1[None, :]                                 # BN1 scale folded
    s2 = g2 / jnp.sqrt(v2 + eps)
    b2 = be2 - m2 * s2
    dwt = jnp.transpose(jnp.asarray(dw_weight, jnp.float32)[:, 0],
                        (1, 2, 0)) * s2                      # (3,3,C), BN2 folded
    return (w1s, b1, dwt, b2)


def init_dwunit_raw_params(key, c):
    """Deterministic synthetic PyTorch-style DWUnit parameters."""
    k = jax.random.split(key, 10)
    pw = jax.random.normal(k[0], (c, c, 1, 1), jnp.float32) / np.sqrt(c)
    bn1 = (1.0 + 0.1 * jax.random.normal(k[1], (c,), jnp.float32),
           0.1 * jax.random.normal(k[2], (c,), jnp.float32),
           0.1 * jax.random.normal(k[3], (c,), jnp.float32),
           jnp.abs(jax.random.normal(k[4], (c,), jnp.float32)) + 0.5)
    dw = jax.random.normal(k[5], (c, 1, 3, 3), jnp.float32) / 3.0
    bn2 = (1.0 + 0.1 * jax.random.normal(k[6], (c,), jnp.float32),
           0.1 * jax.random.normal(k[7], (c,), jnp.float32),
           0.1 * jax.random.normal(k[8], (c,), jnp.float32),
           jnp.abs(jax.random.normal(k[9], (c,), jnp.float32)) + 0.5)
    return pw, bn1, dw, bn2


# ----------------------------------------------------------------------------
# Pure-JAX reference (same folded params, same semantics as the PyTorch module)
# ----------------------------------------------------------------------------
def _dwunit_ref(x, params):
    w1s, b1, dwt, b2 = params
    N, H, W, C = x.shape
    h = jnp.einsum('nhwc,cd->nhwd', x, w1s, precision=jax.lax.Precision.HIGHEST)
    h = jnp.maximum(h + b1.reshape(1, 1, 1, C), 0.0)
    hp = jnp.pad(h, ((0, 0), (1, 1), (1, 1), (0, 0)))
    acc = jnp.zeros_like(h)
    for dy in range(3):
        for dx in range(3):
            acc = acc + hp[:, dy:dy + H, dx:dx + W, :] * dwt[dy, dx].reshape(1, 1, 1, C)
    return jnp.maximum(acc + b2.reshape(1, 1, 1, C), 0.0)


def _upsample2x_nearest(y):
    return jnp.repeat(jnp.repeat(y, 2, axis=1), 2, axis=2)


def yunet_fpn_ref(feature_maps, params_list):
    outputs = []
    for params, x in zip(reversed(params_list), reversed(feature_maps)):
        y = _dwunit_ref(x, params)
        if outputs:
            y = y + _upsample2x_nearest(outputs[0])
        outputs.insert(0, y)
    return outputs


# ----------------------------------------------------------------------------
if __name__ == "__main__":
    key = jax.random.PRNGKey(0)
    N, C = 2, 32
    spatial = [(16, 16), (8, 8), (4, 4)]            # low -> high level
    k_in, k_p = jax.random.split(key)
    keys_in = jax.random.split(k_in, len(spatial))
    keys_p = jax.random.split(k_p, len(spatial))

    # PyTorch-style NCHW inputs; one transpose at the boundary to NHWC.
    fmaps_nchw = [jax.random.normal(keys_in[i], (N, C, h, w), jnp.float32)
                  for i, (h, w) in enumerate(spatial)]
    fmaps = [jnp.transpose(x, (0, 2, 3, 1)) for x in fmaps_nchw]

    params_list = []
    for i in range(len(spatial)):
        pw, bn1, dw, bn2 = init_dwunit_raw_params(keys_p[i], C)
        params_list.append(fold_dwunit_params(pw, bn1, dw, bn2))

    outs = yunet_fpn(fmaps, params_list)
    outs = [jax.block_until_ready(o) for o in outs]

    refs = yunet_fpn_ref(fmaps, params_list)
    for o, r in zip(outs, refs):
        assert o.shape == r.shape
        np.testing.assert_allclose(np.asarray(o), np.asarray(r),
                                   atol=1e-2, rtol=1e-2)

    print("KERNEL_OK")
</pallas_src>

<mosaic_0001>
module attributes {stable_mosaic.version = 11 : i64} {
  func.func @kernel(%arg0: i32, %arg1: memref<32x512xf32, #tpu.memory_space<vmem>>, %arg2: memref<16x256xf32, #tpu.memory_space<vmem>>, %arg3: memref<8x128xf32, #tpu.memory_space<vmem>>, %arg4: memref<512x512xbf16, #tpu.memory_space<vmem>>, %arg5: memref<1x512xf32, #tpu.memory_space<vmem>>, %arg6: memref<9x512xf32, #tpu.memory_space<vmem>>, %arg7: memref<1x512xf32, #tpu.memory_space<vmem>>, %arg8: memref<32x32xf32, #tpu.memory_space<vmem>>, %arg9: memref<32x32xf32, #tpu.memory_space<vmem>>, %arg10: memref<256x256xbf16, #tpu.memory_space<vmem>>, %arg11: memref<1x256xf32, #tpu.memory_space<vmem>>, %arg12: memref<9x256xf32, #tpu.memory_space<vmem>>, %arg13: memref<1x256xf32, #tpu.memory_space<vmem>>, %arg14: memref<16x16xf32, #tpu.memory_space<vmem>>, %arg15: memref<16x16xf32, #tpu.memory_space<vmem>>, %arg16: memref<128x128xbf16, #tpu.memory_space<vmem>>, %arg17: memref<1x128xf32, #tpu.memory_space<vmem>>, %arg18: memref<9x128xf32, #tpu.memory_space<vmem>>, %arg19: memref<1x128xf32, #tpu.memory_space<vmem>>, %arg20: memref<8x8xf32, #tpu.memory_space<vmem>>, %arg21: memref<8x8xf32, #tpu.memory_space<vmem>>, %arg22: memref<32x16xf32, #tpu.memory_space<vmem>>, %arg23: memref<256x512xf32, #tpu.memory_space<vmem>>, %arg24: memref<16x8xf32, #tpu.memory_space<vmem>>, %arg25: memref<128x256xf32, #tpu.memory_space<vmem>>, %arg26: memref<32x512xf32, #tpu.memory_space<vmem>>, %arg27: memref<16x256xf32, #tpu.memory_space<vmem>>, %arg28: memref<8x128xf32, #tpu.memory_space<vmem>>) attributes {dimension_semantics = [#tpu.dimension_semantics<arbitrary>], iteration_bounds = array<i64: 1>, scalar_prefetch = 0 : i64, scratch_operands = 0 : i64, tpu.core_type = #tpu.core_type<tc>, window_params = [{pipeline_mode = #tpu.pipeline_mode<synchronous>, transform_indices = @transform_0, window_bounds = array<i64: 32, 512>}, {pipeline_mode = #tpu.pipeline_mode<synchronous>, transform_indices = @transform_1, window_bounds = array<i64: 16, 256>}, {pipeline_mode = #tpu.pipeline_mode<synchronous>, transform_indices = @transform_2, window_bounds = array<i64: 8, 128>}, {pipeline_mode = #tpu.pipeline_mode<synchronous>, transform_indices = @transform_3, window_bounds = array<i64: 512, 512>}, {pipeline_mode = #tpu.pipeline_mode<synchronous>, transform_indices = @transform_4, window_bounds = array<i64: 1, 512>}, {pipeline_mode = #tpu.pipeline_mode<synchronous>, transform_indices = @transform_5, window_bounds = array<i64: 9, 512>}, {pipeline_mode = #tpu.pipeline_mode<synchronous>, transform_indices = @transform_6, window_bounds = array<i64: 1, 512>}, {pipeline_mode = #tpu.pipeline_mode<synchronous>, transform_indices = @transform_7, window_bounds = array<i64: 32, 32>}, {pipeline_mode = #tpu.pipeline_mode<synchronous>, transform_indices = @transform_8, window_bounds = array<i64: 32, 32>}, {pipeline_mode = #tpu.pipeline_mode<synchronous>, transform_indices = @transform_9, window_bounds = array<i64: 256, 256>}, {pipeline_mode = #tpu.pipeline_mode<synchronous>, transform_indices = @transform_10, window_bounds = array<i64: 1, 256>}, {pipeline_mode = #tpu.pipeline_mode<synchronous>, transform_indices = @transform_11, window_bounds = array<i64: 9, 256>}, {pipeline_mode = #tpu.pipeline_mode<synchronous>, transform_indices = @transform_12, window_bounds = array<i64: 1, 256>}, {pipeline_mode = #tpu.pipeline_mode<synchronous>, transform_indices = @transform_13, window_bounds = array<i64: 16, 16>}, {pipeline_mode = #tpu.pipeline_mode<synchronous>, transform_indices = @transform_14, window_bounds = array<i64: 16, 16>}, {pipeline_mode = #tpu.pipeline_mode<synchronous>, transform_indices = @transform_15, window_bounds = array<i64: 128, 128>}, {pipeline_mode = #tpu.pipeline_mode<synchronous>, transform_indices = @transform_16, window_bounds = array<i64: 1, 128>}, {pipeline_mode = #tpu.pipeline_mode<synchronous>, transform_indices = @transform_17, window_bounds = array<i64: 9, 128>}, {pipeline_mode = #tpu.pipeline_mode<synchronous>, transform_indices = @transform_18, window_bounds = array<i64: 1, 128>}, {pipeline_mode = #tpu.pipeline_mode<synchronous>, transform_indices = @transform_19, window_bounds = array<i64: 8, 8>}, {pipeline_mode = #tpu.pipeline_mode<synchronous>, transform_indices = @transform_20, window_bounds = array<i64: 8, 8>}, {pipeline_mode = #tpu.pipeline_mode<synchronous>, transform_indices = @transform_21, window_bounds = array<i64: 32, 16>}, {pipeline_mode = #tpu.pipeline_mode<synchronous>, transform_indices = @transform_22, window_bounds = array<i64: 256, 512>}, {pipeline_mode = #tpu.pipeline_mode<synchronous>, transform_indices = @transform_23, window_bounds = array<i64: 16, 8>}, {pipeline_mode = #tpu.pipeline_mode<synchronous>, transform_indices = @transform_24, window_bounds = array<i64: 128, 256>}, {pipeline_mode = #tpu.pipeline_mode<synchronous>, transform_indices = @transform_25, window_bounds = array<i64: 32, 512>}, {pipeline_mode = #tpu.pipeline_mode<synchronous>, transform_indices = @transform_26, window_bounds = array<i64: 16, 256>}, {pipeline_mode = #tpu.pipeline_mode<synchronous>, transform_indices = @transform_27, window_bounds = array<i64: 8, 128>}]} {
    %c0 = arith.constant 0 : index
    %c0_0 = arith.constant 0 : index
    %0 = vector.load %arg16[%c0, %c0_0] : memref<128x128xbf16, #tpu.memory_space<vmem>>, vector<128x128xbf16>
    %c0_1 = arith.constant 0 : index
    %c0_2 = arith.constant 0 : index
    %1 = vector.load %arg17[%c0_1, %c0_2] : memref<1x128xf32, #tpu.memory_space<vmem>>, vector<1x128xf32>
    %c0_3 = arith.constant 0 : index
    %c0_4 = arith.constant 0 : index
    %2 = vector.load %arg19[%c0_3, %c0_4] : memref<1x128xf32, #tpu.memory_space<vmem>>, vector<1x128xf32>
    %c0_5 = arith.constant 0 : index
    %c0_6 = arith.constant 0 : index
    %3 = vector.load %arg20[%c0_5, %c0_6] : memref<8x8xf32, #tpu.memory_space<vmem>>, vector<8x8xf32>
    %c0_7 = arith.constant 0 : index
    %c0_8 = arith.constant 0 : index
    %4 = vector.load %arg21[%c0_7, %c0_8] : memref<8x8xf32, #tpu.memory_space<vmem>>, vector<8x8xf32>
    %c0_9 = arith.constant 0 : index
    %c0_10 = arith.constant 0 : index
    %5 = vector.load %arg3[%c0_9, %c0_10] : memref<8x128xf32, #tpu.memory_space<vmem>>, vector<8x128xf32>
    %6 = arith.truncf %5 : vector<8x128xf32> to vector<8x128xbf16>
    %cst = arith.constant dense<0.000000e+00> : vector<8x128xf32>
    %7 = tpu.matmul %6, %0, %cst {dimension_numbers = #tpu.dot_dimension_numbers<[1], [0], [0], [1], [0, 0, 1, 1], [], []>} : vector<8x128xbf16>, vector<128x128xbf16>, vector<8x128xf32> -> vector<8x128xf32>
    %8 = vector.broadcast %1 : vector<1x128xf32> to vector<8x128xf32>
    %9 = arith.addf %7, %8 : vector<8x128xf32>
    %cst_11 = arith.constant 0.000000e+00 : f32
    %10 = vector.broadcast %cst_11 : f32 to vector<8x128xf32>
    %11 = arith.maximumf %9, %10 : vector<8x128xf32>
    %cst_12 = arith.constant dense<0.000000e+00> : vector<8x128xf32>
    %12 = tpu.matmul %4, %11, %cst_12 {dimension_numbers = #tpu.dot_dimension_numbers<[1], [0], [0], [1], [0, 0, 1, 1], [], []>} : vector<8x8xf32>, vector<8x128xf32>, vector<8x128xf32> -> vector<8x128xf32>
    %c32_i32 = arith.constant 32 : i32
    %13 = tpu.dynamic_rotate %12 by %c32_i32 dim 1 : vector<8x128xf32>, i32 -> vector<8x128xf32>
    %c0_13 = arith.constant 0 : index
    %c0_14 = arith.constant 0 : index
    %14 = vector.load %arg18[%c0_13, %c0_14] : memref<9x128xf32, #tpu.memory_space<vmem>>, vector<1x128xf32>
    %15 = vector.broadcast %14 : vector<1x128xf32> to vector<8x128xf32>
    %16 = arith.mulf %13, %15 : vector<8x128xf32>
    %c1 = arith.constant 1 : index
    %c0_15 = arith.constant 0 : index
    %17 = vector.load %arg18[%c1, %c0_15] : memref<9x128xf32, #tpu.memory_space<vmem>>, vector<1x128xf32>
    %18 = vector.broadcast %17 : vector<1x128xf32> to vector<8x128xf32>
    %19 = arith.mulf %12, %18 : vector<8x128xf32>
    %20 = arith.addf %16, %19 : vector<8x128xf32>
    %c96_i32 = arith.constant 96 : i32
    %21 = tpu.dynamic_rotate %12 by %c96_i32 dim 1 : vector<8x128xf32>, i32 -> vector<8x128xf32>
    %c2 = arith.constant 2 : index
    %c0_16 = arith.constant 0 : index
    %22 = vector.load %arg18[%c2, %c0_16] : memref<9x128xf32, #tpu.memory_space<vmem>>, vector<1x128xf32>
    %23 = vector.broadcast %22 : vector<1x128xf32> to vector<8x128xf32>
    %24 = arith.mulf %21, %23 : vector<8x128xf32>
    %25 = arith.addf %20, %24 : vector<8x128xf32>
    %c32_i32_17 = arith.constant 32 : i32
    %26 = tpu.dynamic_rotate %11 by %c32_i32_17 dim 1 : vector<8x128xf32>, i32 -> vector<8x128xf32>
    %c3 = arith.constant 3 : index
    %c0_18 = arith.constant 0 : index
    %27 = vector.load %arg18[%c3, %c0_18] : memref<9x128xf32, #tpu.memory_space<vmem>>, vector<1x128xf32>
    %28 = vector.broadcast %27 : vector<1x128xf32> to vector<8x128xf32>
    %29 = arith.mulf %26, %28 : vector<8x128xf32>
    %30 = arith.addf %25, %29 : vector<8x128xf32>
    %c4 = arith.constant 4 : index
    %c0_19 = arith.constant 0 : index
    %31 = vector.load %arg18[%c4, %c0_19] : memref<9x128xf32, #tpu.memory_space<vmem>>, vector<1x128xf32>
    %32 = vector.broadcast %31 : vector<1x128xf32> to vector<8x128xf32>
    %33 = arith.mulf %11, %32 : vector<8x128xf32>
    %34 = arith.addf %30, %33 : vector<8x128xf32>
    %c96_i32_20 = arith.constant 96 : i32
    %35 = tpu.dynamic_rotate %11 by %c96_i32_20 dim 1 : vector<8x128xf32>, i32 -> vector<8x128xf32>
    %c5 = arith.constant 5 : index
    %c0_21 = arith.constant 0 : index
    %36 = vector.load %arg18[%c5, %c0_21] : memref<9x128xf32, #tpu.memory_space<vmem>>, vector<1x128xf32>
    %37 = vector.broadcast %36 : vector<1x128xf32> to vector<8x128xf32>
    %38 = arith.mulf %35, %37 : vector<8x128xf32>
    %39 = arith.addf %34, %38 : vector<8x128xf32>
    %cst_22 = arith.constant dense<0.000000e+00> : vector<8x128xf32>
    %40 = tpu.matmul %3, %11, %cst_22 {dimension_numbers = #tpu.dot_dimension_numbers<[1], [0], [0], [1], [0, 0, 1, 1], [], []>} : vector<8x8xf32>, vector<8x128xf32>, vector<8x128xf32> -> vector<8x128xf32>
    %c32_i32_23 = arith.constant 32 : i32
    %41 = tpu.dynamic_rotate %40 by %c32_i32_23 dim 1 : vector<8x128xf32>, i32 -> vector<8x128xf32>
    %c6 = arith.constant 6 : index
    %c0_24 = arith.constant 0 : index
    %42 = vector.load %arg18[%c6, %c0_24] : memref<9x128xf32, #tpu.memory_space<vmem>>, vector<1x128xf32>
    %43 = vector.broadcast %42 : vector<1x128xf32> to vector<8x128xf32>
    %44 = arith.mulf %41, %43 : vector<8x128xf32>
    %45 = arith.addf %39, %44 : vector<8x128xf32>
    %c7 = arith.constant 7 : index
    %c0_25 = arith.constant 0 : index
    %46 = vector.load %arg18[%c7, %c0_25] : memref<9x128xf32, #tpu.memory_space<vmem>>, vector<1x128xf32>
    %47 = vector.broadcast %46 : vector<1x128xf32> to vector<8x128xf32>
    %48 = arith.mulf %40, %47 : vector<8x128xf32>
    %49 = arith.addf %45, %48 : vector<8x128xf32>
    %c96_i32_26 = arith.constant 96 : i32
    %50 = tpu.dynamic_rotate %40 by %c96_i32_26 dim 1 : vector<8x128xf32>, i32 -> vector<8x128xf32>
    %c8 = arith.constant 8 : index
    %c0_27 = arith.constant 0 : index
    %51 = vector.load %arg18[%c8, %c0_27] : memref<9x128xf32, #tpu.memory_space<vmem>>, vector<1x128xf32>
    %52 = vector.broadcast %51 : vector<1x128xf32> to vector<8x128xf32>
    %53 = arith.mulf %50, %52 : vector<8x128xf32>
    %54 = arith.addf %49, %53 : vector<8x128xf32>
    %55 = vector.broadcast %2 : vector<1x128xf32> to vector<8x128xf32>
    %56 = arith.addf %54, %55 : vector<8x128xf32>
    %cst_28 = arith.constant 0.000000e+00 : f32
    %57 = vector.broadcast %cst_28 : f32 to vector<8x128xf32>
    %58 = arith.maximumf %56, %57 : vector<8x128xf32>
    %c0_29 = arith.constant 0 : index
    %c0_30 = arith.constant 0 : index
    %59 = vector.load %arg28[%c0_29, %c0_30] : memref<8x128xf32, #tpu.memory_space<vmem>>, vector<8x128xf32>
    tpu.vector_store %arg28[%c0_29, %c0_30], %58 {strides = array<i32>} : memref<8x128xf32, #tpu.memory_space<vmem>>, vector<8x128xf32>,
    %c0_31 = arith.constant 0 : index
    %c0_32 = arith.constant 0 : index
    %60 = vector.load %arg10[%c0_31, %c0_32] : memref<256x256xbf16, #tpu.memory_space<vmem>>, vector<256x256xbf16>
    %c0_33 = arith.constant 0 : index
    %c0_34 = arith.constant 0 : index
    %61 = vector.load %arg11[%c0_33, %c0_34] : memref<1x256xf32, #tpu.memory_space<vmem>>, vector<1x256xf32>
    %c0_35 = arith.constant 0 : index
    %c0_36 = arith.constant 0 : index
    %62 = vector.load %arg13[%c0_35, %c0_36] : memref<1x256xf32, #tpu.memory_space<vmem>>, vector<1x256xf32>
    %c0_37 = arith.constant 0 : index
    %c0_38 = arith.constant 0 : index
    %63 = vector.load %arg14[%c0_37, %c0_38] : memref<16x16xf32, #tpu.memory_space<vmem>>, vector<16x16xf32>
    %c0_39 = arith.constant 0 : index
    %c0_40 = arith.constant 0 : index
    %64 = vector.load %arg15[%c0_39, %c0_40] : memref<16x16xf32, #tpu.memory_space<vmem>>, vector<16x16xf32>
    %c0_41 = arith.constant 0 : index
    %c0_42 = arith.constant 0 : index
    %65 = vector.load %arg2[%c0_41, %c0_42] : memref<16x256xf32, #tpu.memory_space<vmem>>, vector<16x256xf32>
    %66 = arith.truncf %65 : vector<16x256xf32> to vector<16x256xbf16>
    %cst_43 = arith.constant dense<0.000000e+00> : vector<16x256xf32>
    %67 = tpu.matmul %66, %60, %cst_43 {dimension_numbers = #tpu.dot_dimension_numbers<[1], [0], [0], [1], [0, 0, 1, 1], [], []>} : vector<16x256xbf16>, vector<256x256xbf16>, vector<16x256xf32> -> vector<16x256xf32>
    %68 = vector.broadcast %61 : vector<1x256xf32> to vector<16x256xf32>
    %69 = arith.addf %67, %68 : vector<16x256xf32>
    %cst_44 = arith.constant 0.000000e+00 : f32
    %70 = vector.broadcast %cst_44 : f32 to vector<16x256xf32>
    %71 = arith.maximumf %69, %70 : vector<16x256xf32>
    %cst_45 = arith.constant dense<0.000000e+00> : vector<16x256xf32>
    %72 = tpu.matmul %64, %71, %cst_45 {dimension_numbers = #tpu.dot_dimension_numbers<[1], [0], [0], [1], [0, 0, 1, 1], [], []>} : vector<16x16xf32>, vector<16x256xf32>, vector<16x256xf32> -> vector<16x256xf32>
    %c32_i32_46 = arith.constant 32 : i32
    %73 = tpu.dynamic_rotate %72 by %c32_i32_46 dim 1 : vector<16x256xf32>, i32 -> vector<16x256xf32>
    %c0_47 = arith.constant 0 : index
    %c0_48 = arith.constant 0 : index
    %74 = vector.load %arg12[%c0_47, %c0_48] : memref<9x256xf32, #tpu.memory_space<vmem>>, vector<1x256xf32>
    %75 = vector.broadcast %74 : vector<1x256xf32> to vector<16x256xf32>
    %76 = arith.mulf %73, %75 : vector<16x256xf32>
    %c1_49 = arith.constant 1 : index
    %c0_50 = arith.constant 0 : index
    %77 = vector.load %arg12[%c1_49, %c0_50] : memref<9x256xf32, #tpu.memory_space<vmem>>, vector<1x256xf32>
    %78 = vector.broadcast %77 : vector<1x256xf32> to vector<16x256xf32>
    %79 = arith.mulf %72, %78 : vector<16x256xf32>
    %80 = arith.addf %76, %79 : vector<16x256xf32>
    %c224_i32 = arith.constant 224 : i32
    %81 = tpu.dynamic_rotate %72 by %c224_i32 dim 1 : vector<16x256xf32>, i32 -> vector<16x256xf32>
    %c2_51 = arith.constant 2 : index
    %c0_52 = arith.constant 0 : index
    %82 = vector.load %arg12[%c2_51, %c0_52] : memref<9x256xf32, #tpu.memory_space<vmem>>, vector<1x256xf32>
    %83 = vector.broadcast %82 : vector<1x256xf32> to vector<16x256xf32>
    %84 = arith.mulf %81, %83 : vector<16x256xf32>
    %85 = arith.addf %80, %84 : vector<16x256xf32>
    %c32_i32_53 = arith.constant 32 : i32
    %86 = tpu.dynamic_rotate %71 by %c32_i32_53 dim 1 : vector<16x256xf32>, i32 -> vector<16x256xf32>
    %c3_54 = arith.constant 3 : index
    %c0_55 = arith.constant 0 : index
    %87 = vector.load %arg12[%c3_54, %c0_55] : memref<9x256xf32, #tpu.memory_space<vmem>>, vector<1x256xf32>
    %88 = vector.broadcast %87 : vector<1x256xf32> to vector<16x256xf32>
    %89 = arith.mulf %86, %88 : vector<16x256xf32>
    %90 = arith.addf %85, %89 : vector<16x256xf32>
    %c4_56 = arith.constant 4 : index
    %c0_57 = arith.constant 0 : index
    %91 = vector.load %arg12[%c4_56, %c0_57] : memref<9x256xf32, #tpu.memory_space<vmem>>, vector<1x256xf32>
    %92 = vector.broadcast %91 : vector<1x256xf32> to vector<16x256xf32>
    %93 = arith.mulf %71, %92 : vector<16x256xf32>
    %94 = arith.addf %90, %93 : vector<16x256xf32>
    %c224_i32_58 = arith.constant 224 : i32
    %95 = tpu.dynamic_rotate %71 by %c224_i32_58 dim 1 : vector<16x256xf32>, i32 -> vector<16x256xf32>
    %c5_59 = arith.constant 5 : index
    %c0_60 = arith.constant 0 : index
    %96 = vector.load %arg12[%c5_59, %c0_60] : memref<9x256xf32, #tpu.memory_space<vmem>>, vector<1x256xf32>
    %97 = vector.broadcast %96 : vector<1x256xf32> to vector<16x256xf32>
    %98 = arith.mulf %95, %97 : vector<16x256xf32>
    %99 = arith.addf %94, %98 : vector<16x256xf32>
    %cst_61 = arith.constant dense<0.000000e+00> : vector<16x256xf32>
    %100 = tpu.matmul %63, %71, %cst_61 {dimension_numbers = #tpu.dot_dimension_numbers<[1], [0], [0], [1], [0, 0, 1, 1], [], []>} : vector<16x16xf32>, vector<16x256xf32>, vector<16x256xf32> -> vector<16x256xf32>
    %c32_i32_62 = arith.constant 32 : i32
    %101 = tpu.dynamic_rotate %100 by %c32_i32_62 dim 1 : vector<16x256xf32>, i32 -> vector<16x256xf32>
    %c6_63 = arith.constant 6 : index
    %c0_64 = arith.constant 0 : index
    %102 = vector.load %arg12[%c6_63, %c0_64] : memref<9x256xf32, #tpu.memory_space<vmem>>, vector<1x256xf32>
    %103 = vector.broadcast %102 : vector<1x256xf32> to vector<16x256xf32>
    %104 = arith.mulf %101, %103 : vector<16x256xf32>
    %105 = arith.addf %99, %104 : vector<16x256xf32>
    %c7_65 = arith.constant 7 : index
    %c0_66 = arith.constant 0 : index
    %106 = vector.load %arg12[%c7_65, %c0_66] : memref<9x256xf32, #tpu.memory_space<vmem>>, vector<1x256xf32>
    %107 = vector.broadcast %106 : vector<1x256xf32> to vector<16x256xf32>
    %108 = arith.mulf %100, %107 : vector<16x256xf32>
    %109 = arith.addf %105, %108 : vector<16x256xf32>
    %c224_i32_67 = arith.constant 224 : i32
    %110 = tpu.dynamic_rotate %100 by %c224_i32_67 dim 1 : vector<16x256xf32>, i32 -> vector<16x256xf32>
    %c8_68 = arith.constant 8 : index
    %c0_69 = arith.constant 0 : index
    %111 = vector.load %arg12[%c8_68, %c0_69] : memref<9x256xf32, #tpu.memory_space<vmem>>, vector<1x256xf32>
    %112 = vector.broadcast %111 : vector<1x256xf32> to vector<16x256xf32>
    %113 = arith.mulf %110, %112 : vector<16x256xf32>
    %114 = arith.addf %109, %113 : vector<16x256xf32>
    %115 = vector.broadcast %62 : vector<1x256xf32> to vector<16x256xf32>
    %116 = arith.addf %114, %115 : vector<16x256xf32>
    %cst_70 = arith.constant 0.000000e+00 : f32
    %117 = vector.broadcast %cst_70 : f32 to vector<16x256xf32>
    %118 = arith.maximumf %116, %117 : vector<16x256xf32>
    %c0_71 = arith.constant 0 : index
    %c0_72 = arith.constant 0 : index
    %119 = vector.load %arg24[%c0_71, %c0_72] : memref<16x8xf32, #tpu.memory_space<vmem>>, vector<16x8xf32>
    %c0_73 = arith.constant 0 : index
    %c0_74 = arith.constant 0 : index
    %120 = vector.load %arg25[%c0_73, %c0_74] : memref<128x256xf32, #tpu.memory_space<vmem>>, vector<128x256xf32>
    %cst_75 = arith.constant dense<0.000000e+00> : vector<16x128xf32>
    %121 = tpu.matmul %119, %58, %cst_75 {dimension_numbers = #tpu.dot_dimension_numbers<[1], [0], [0], [1], [0, 0, 1, 1], [], []>} : vector<16x8xf32>, vector<8x128xf32>, vector<16x128xf32> -> vector<16x128xf32>
    %cst_76 = arith.constant dense<0.000000e+00> : vector<16x256xf32>
    %122 = tpu.matmul %121, %120, %cst_76 {dimension_numbers = #tpu.dot_dimension_numbers<[1], [0], [0], [1], [0, 0, 1, 1], [], []>} : vector<16x128xf32>, vector<128x256xf32>, vector<16x256xf32> -> vector<16x256xf32>
    %123 = arith.addf %118, %122 : vector<16x256xf32>
    %c0_77 = arith.constant 0 : index
    %c0_78 = arith.constant 0 : index
    %124 = vector.load %arg27[%c0_77, %c0_78] : memref<16x256xf32, #tpu.memory_space<vmem>>, vector<16x256xf32>
    tpu.vector_store %arg27[%c0_77, %c0_78], %123 {strides = array<i32>} : memref<16x256xf32, #tpu.memory_space<vmem>>, vector<16x256xf32>,
    %c0_79 = arith.constant 0 : index
    %c0_80 = arith.constant 0 : index
    %125 = vector.load %arg4[%c0_79, %c0_80] : memref<512x512xbf16, #tpu.memory_space<vmem>>, vector<512x512xbf16>
    %c0_81 = arith.constant 0 : index
    %c0_82 = arith.constant 0 : index
    %126 = vector.load %arg5[%c0_81, %c0_82] : memref<1x512xf32, #tpu.memory_space<vmem>>, vector<1x512xf32>
    %c0_83 = arith.constant 0 : index
    %c0_84 = arith.constant 0 : index
    %127 = vector.load %arg7[%c0_83, %c0_84] : memref<1x512xf32, #tpu.memory_space<vmem>>, vector<1x512xf32>
    %c0_85 = arith.constant 0 : index
    %c0_86 = arith.constant 0 : index
    %128 = vector.load %arg8[%c0_85, %c0_86] : memref<32x32xf32, #tpu.memory_space<vmem>>, vector<32x32xf32>
    %c0_87 = arith.constant 0 : index
    %c0_88 = arith.constant 0 : index
    %129 = vector.load %arg9[%c0_87, %c0_88] : memref<32x32xf32, #tpu.memory_space<vmem>>, vector<32x32xf32>
    %c0_89 = arith.constant 0 : index
    %c0_90 = arith.constant 0 : index
    %130 = vector.load %arg1[%c0_89, %c0_90] : memref<32x512xf32, #tpu.memory_space<vmem>>, vector<32x512xf32>
    %131 = arith.truncf %130 : vector<32x512xf32> to vector<32x512xbf16>
    %cst_91 = arith.constant dense<0.000000e+00> : vector<32x512xf32>
    %132 = tpu.matmul %131, %125, %cst_91 {dimension_numbers = #tpu.dot_dimension_numbers<[1], [0], [0], [1], [0, 0, 1, 1], [], []>} : vector<32x512xbf16>, vector<512x512xbf16>, vector<32x512xf32> -> vector<32x512xf32>
    %133 = vector.broadcast %126 : vector<1x512xf32> to vector<32x512xf32>
    %134 = arith.addf %132, %133 : vector<32x512xf32>
    %cst_92 = arith.constant 0.000000e+00 : f32
    %135 = vector.broadcast %cst_92 : f32 to vector<32x512xf32>
    %136 = arith.maximumf %134, %135 : vector<32x512xf32>
    %cst_93 = arith.constant dense<0.000000e+00> : vector<32x512xf32>
    %137 = tpu.matmul %129, %136, %cst_93 {dimension_numbers = #tpu.dot_dimension_numbers<[1], [0], [0], [1], [0, 0, 1, 1], [], []>} : vector<32x32xf32>, vector<32x512xf32>, vector<32x512xf32> -> vector<32x512xf32>
    %c32_i32_94 = arith.constant 32 : i32
    %138 = tpu.dynamic_rotate %137 by %c32_i32_94 dim 1 : vector<32x512xf32>, i32 -> vector<32x512xf32>
    %c0_95 = arith.constant 0 : index
    %c0_96 = arith.constant 0 : index
    %139 = vector.load %arg6[%c0_95, %c0_96] : memref<9x512xf32, #tpu.memory_space<vmem>>, vector<1x512xf32>
    %140 = vector.broadcast %139 : vector<1x512xf32> to vector<32x512xf32>
    %141 = arith.mulf %138, %140 : vector<32x512xf32>
    %c1_97 = arith.constant 1 : index
    %c0_98 = arith.constant 0 : index
    %142 = vector.load %arg6[%c1_97, %c0_98] : memref<9x512xf32, #tpu.memory_space<vmem>>, vector<1x512xf32>
    %143 = vector.broadcast %142 : vector<1x512xf32> to vector<32x512xf32>
    %144 = arith.mulf %137, %143 : vector<32x512xf32>
    %145 = arith.addf %141, %144 : vector<32x512xf32>
    %c480_i32 = arith.constant 480 : i32
    %146 = tpu.dynamic_rotate %137 by %c480_i32 dim 1 : vector<32x512xf32>, i32 -> vector<32x512xf32>
    %c2_99 = arith.constant 2 : index
    %c0_100 = arith.constant 0 : index
    %147 = vector.load %arg6[%c2_99, %c0_100] : memref<9x512xf32, #tpu.memory_space<vmem>>, vector<1x512xf32>
    %148 = vector.broadcast %147 : vector<1x512xf32> to vector<32x512xf32>
    %149 = arith.mulf %146, %148 : vector<32x512xf32>
    %150 = arith.addf %145, %149 : vector<32x512xf32>
    %c32_i32_101 = arith.constant 32 : i32
    %151 = tpu.dynamic_rotate %136 by %c32_i32_101 dim 1 : vector<32x512xf32>, i32 -> vector<32x512xf32>
    %c3_102 = arith.constant 3 : index
    %c0_103 = arith.constant 0 : index
    %152 = vector.load %arg6[%c3_102, %c0_103] : memref<9x512xf32, #tpu.memory_space<vmem>>, vector<1x512xf32>
    %153 = vector.broadcast %152 : vector<1x512xf32> to vector<32x512xf32>
    %154 = arith.mulf %151, %153 : vector<32x512xf32>
    %155 = arith.addf %150, %154 : vector<32x512xf32>
    %c4_104 = arith.constant 4 : index
    %c0_105 = arith.constant 0 : index
    %156 = vector.load %arg6[%c4_104, %c0_105] : memref<9x512xf32, #tpu.memory_space<vmem>>, vector<1x512xf32>
    %157 = vector.broadcast %156 : vector<1x512xf32> to vector<32x512xf32>
    %158 = arith.mulf %136, %157 : vector<32x512xf32>
    %159 = arith.addf %155, %158 : vector<32x512xf32>
    %c480_i32_106 = arith.constant 480 : i32
    %160 = tpu.dynamic_rotate %136 by %c480_i32_106 dim 1 : vector<32x512xf32>, i32 -> vector<32x512xf32>
    %c5_107 = arith.constant 5 : index
    %c0_108 = arith.constant 0 : index
    %161 = vector.load %arg6[%c5_107, %c0_108] : memref<9x512xf32, #tpu.memory_space<vmem>>, vector<1x512xf32>
    %162 = vector.broadcast %161 : vector<1x512xf32> to vector<32x512xf32>
    %163 = arith.mulf %160, %162 : vector<32x512xf32>
    %164 = arith.addf %159, %163 : vector<32x512xf32>
    %cst_109 = arith.constant dense<0.000000e+00> : vector<32x512xf32>
    %165 = tpu.matmul %128, %136, %cst_109 {dimension_numbers = #tpu.dot_dimension_numbers<[1], [0], [0], [1], [0, 0, 1, 1], [], []>} : vector<32x32xf32>, vector<32x512xf32>, vector<32x512xf32> -> vector<32x512xf32>
    %c32_i32_110 = arith.constant 32 : i32
    %166 = tpu.dynamic_rotate %165 by %c32_i32_110 dim 1 : vector<32x512xf32>, i32 -> vector<32x512xf32>
    %c6_111 = arith.constant 6 : index
    %c0_112 = arith.constant 0 : index
    %167 = vector.load %arg6[%c6_111, %c0_112] : memref<9x512xf32, #tpu.memory_space<vmem>>, vector<1x512xf32>
    %168 = vector.broadcast %167 : vector<1x512xf32> to vector<32x512xf32>
    %169 = arith.mulf %166, %168 : vector<32x512xf32>
    %170 = arith.addf %164, %169 : vector<32x512xf32>
    %c7_113 = arith.constant 7 : index
    %c0_114 = arith.constant 0 : index
    %171 = vector.load %arg6[%c7_113, %c0_114] : memref<9x512xf32, #tpu.memory_space<vmem>>, vector<1x512xf32>
    %172 = vector.broadcast %171 : vector<1x512xf32> to vector<32x512xf32>
    %173 = arith.mulf %165, %172 : vector<32x512xf32>
    %174 = arith.addf %170, %173 : vector<32x512xf32>
    %c480_i32_115 = arith.constant 480 : i32
    %175 = tpu.dynamic_rotate %165 by %c480_i32_115 dim 1 : vector<32x512xf32>, i32 -> vector<32x512xf32>
    %c8_116 = arith.constant 8 : index
    %c0_117 = arith.constant 0 : index
    %176 = vector.load %arg6[%c8_116, %c0_117] : memref<9x512xf32, #tpu.memory_space<vmem>>, vector<1x512xf32>
    %177 = vector.broadcast %176 : vector<1x512xf32> to vector<32x512xf32>
    %178 = arith.mulf %175, %177 : vector<32x512xf32>
    %179 = arith.addf %174, %178 : vector<32x512xf32>
    %180 = vector.broadcast %127 : vector<1x512xf32> to vector<32x512xf32>
    %181 = arith.addf %179, %180 : vector<32x512xf32>
    %cst_118 = arith.constant 0.000000e+00 : f32
    %182 = vector.broadcast %cst_118 : f32 to vector<32x512xf32>
    %183 = arith.maximumf %181, %182 : vector<32x512xf32>
    %c0_119 = arith.constant 0 : index
    %c0_120 = arith.constant 0 : index
    %184 = vector.load %arg22[%c0_119, %c0_120] : memref<32x16xf32, #tpu.memory_space<vmem>>, vector<32x16xf32>
    %c0_121 = arith.constant 0 : index
    %c0_122 = arith.constant 0 : index
    %185 = vector.load %arg23[%c0_121, %c0_122] : memref<256x512xf32, #tpu.memory_space<vmem>>, vector<256x512xf32>
    %cst_123 = arith.constant dense<0.000000e+00> : vector<32x256xf32>
    %186 = tpu.matmul %184, %123, %cst_123 {dimension_numbers = #tpu.dot_dimension_numbers<[1], [0], [0], [1], [0, 0, 1, 1], [], []>} : vector<32x16xf32>, vector<16x256xf32>, vector<32x256xf32> -> vector<32x256xf32>
    %cst_124 = arith.constant dense<0.000000e+00> : vector<32x512xf32>
    %187 = tpu.matmul %186, %185, %cst_124 {dimension_numbers = #tpu.dot_dimension_numbers<[1], [0], [0], [1], [0, 0, 1, 1], [], []>} : vector<32x256xf32>, vector<256x512xf32>, vector<32x512xf32> -> vector<32x512xf32>
    %188 = arith.addf %183, %187 : vector<32x512xf32>
    %c0_125 = arith.constant 0 : index
    %c0_126 = arith.constant 0 : index
    %189 = vector.load %arg26[%c0_125, %c0_126] : memref<32x512xf32, #tpu.memory_space<vmem>>, vector<32x512xf32>
    tpu.vector_store %arg26[%c0_125, %c0_126], %188 {strides = array<i32>} : memref<32x512xf32, #tpu.memory_space<vmem>>, vector<32x512xf32>,
    return
  }
  func.func @transform_0(%arg0: i32) -> (i32, i32) {
    %c0_i32 = arith.constant 0 : i32
    %c0_i32_0 = arith.constant 0 : i32
    %c0_i32_1 = arith.constant 0 : i32
    return %c0_i32, %c0_i32_0 : i32, i32
  }
  func.func @transform_1(%arg0: i32) -> (i32, i32) {
    %c0_i32 = arith.constant 0 : i32
    %c0_i32_0 = arith.constant 0 : i32
    %c0_i32_1 = arith.constant 0 : i32
    return %c0_i32, %c0_i32_0 : i32, i32
  }
  func.func @transform_2(%arg0: i32) -> (i32, i32) {
    %c0_i32 = arith.constant 0 : i32
    %c0_i32_0 = arith.constant 0 : i32
    %c0_i32_1 = arith.constant 0 : i32
    return %c0_i32, %c0_i32_0 : i32, i32
  }
  func.func @transform_3(%arg0: i32) -> (i32, i32) {
    %c0_i32 = arith.constant 0 : i32
    %c0_i32_0 = arith.constant 0 : i32
    %c0_i32_1 = arith.constant 0 : i32
    return %c0_i32, %c0_i32_0 : i32, i32
  }
  func.func @transform_4(%arg0: i32) -> (i32, i32) {
    %c0_i32 = arith.constant 0 : i32
    %c0_i32_0 = arith.constant 0 : i32
    %c0_i32_1 = arith.constant 0 : i32
    return %c0_i32, %c0_i32_0 : i32, i32
  }
  func.func @transform_5(%arg0: i32) -> (i32, i32) {
    %c0_i32 = arith.constant 0 : i32
    %c0_i32_0 = arith.constant 0 : i32
    %c0_i32_1 = arith.constant 0 : i32
    return %c0_i32, %c0_i32_0 : i32, i32
  }
  func.func @transform_6(%arg0: i32) -> (i32, i32) {
    %c0_i32 = arith.constant 0 : i32
    %c0_i32_0 = arith.constant 0 : i32
    %c0_i32_1 = arith.constant 0 : i32
    return %c0_i32, %c0_i32_0 : i32, i32
  }
  func.func @transform_7(%arg0: i32) -> (i32, i32) {
    %c0_i32 = arith.constant 0 : i32
    %c0_i32_0 = arith.constant 0 : i32
    %c0_i32_1 = arith.constant 0 : i32
    return %c0_i32, %c0_i32_0 : i32, i32
  }
  func.func @transform_8(%arg0: i32) -> (i32, i32) {
    %c0_i32 = arith.constant 0 : i32
    %c0_i32_0 = arith.constant 0 : i32
    %c0_i32_1 = arith.constant 0 : i32
    return %c0_i32, %c0_i32_0 : i32, i32
  }
  func.func @transform_9(%arg0: i32) -> (i32, i32) {
    %c0_i32 = arith.constant 0 : i32
    %c0_i32_0 = arith.constant 0 : i32
    %c0_i32_1 = arith.constant 0 : i32
    return %c0_i32, %c0_i32_0 : i32, i32
  }
  func.func @transform_10(%arg0: i32) -> (i32, i32) {
    %c0_i32 = arith.constant 0 : i32
    %c0_i32_0 = arith.constant 0 : i32
    %c0_i32_1 = arith.constant 0 : i32
    return %c0_i32, %c0_i32_0 : i32, i32
  }
  func.func @transform_11(%arg0: i32) -> (i32, i32) {
    %c0_i32 = arith.constant 0 : i32
    %c0_i32_0 = arith.constant 0 : i32
    %c0_i32_1 = arith.constant 0 : i32
    return %c0_i32, %c0_i32_0 : i32, i32
  }
  func.func @transform_12(%arg0: i32) -> (i32, i32) {
    %c0_i32 = arith.constant 0 : i32
    %c0_i32_0 = arith.constant 0 : i32
    %c0_i32_1 = arith.constant 0 : i32
    return %c0_i32, %c0_i32_0 : i32, i32
  }
  func.func @transform_13(%arg0: i32) -> (i32, i32) {
    %c0_i32 = arith.constant 0 : i32
    %c0_i32_0 = arith.constant 0 : i32
    %c0_i32_1 = arith.constant 0 : i32
    return %c0_i32, %c0_i32_0 : i32, i32
  }
  func.func @transform_14(%arg0: i32) -> (i32, i32) {
    %c0_i32 = arith.constant 0 : i32
    %c0_i32_0 = arith.constant 0 : i32
    %c0_i32_1 = arith.constant 0 : i32
    return %c0_i32, %c0_i32_0 : i32, i32
  }
  func.func @transform_15(%arg0: i32) -> (i32, i32) {
    %c0_i32 = arith.constant 0 : i32
    %c0_i32_0 = arith.constant 0 : i32
    %c0_i32_1 = arith.constant 0 : i32
    return %c0_i32, %c0_i32_0 : i32, i32
  }
  func.func @transform_16(%arg0: i32) -> (i32, i32) {
    %c0_i32 = arith.constant 0 : i32
    %c0_i32_0 = arith.constant 0 : i32
    %c0_i32_1 = arith.constant 0 : i32
    return %c0_i32, %c0_i32_0 : i32, i32
  }
  func.func @transform_17(%arg0: i32) -> (i32, i32) {
    %c0_i32 = arith.constant 0 : i32
    %c0_i32_0 = arith.constant 0 : i32
    %c0_i32_1 = arith.constant 0 : i32
    return %c0_i32, %c0_i32_0 : i32, i32
  }
  func.func @transform_18(%arg0: i32) -> (i32, i32) {
    %c0_i32 = arith.constant 0 : i32
    %c0_i32_0 = arith.constant 0 : i32
    %c0_i32_1 = arith.constant 0 : i32
    return %c0_i32, %c0_i32_0 : i32, i32
  }
  func.func @transform_19(%arg0: i32) -> (i32, i32) {
    %c0_i32 = arith.constant 0 : i32
    %c0_i32_0 = arith.constant 0 : i32
    %c0_i32_1 = arith.constant 0 : i32
    return %c0_i32, %c0_i32_0 : i32, i32
  }
  func.func @transform_20(%arg0: i32) -> (i32, i32) {
    %c0_i32 = arith.constant 0 : i32
    %c0_i32_0 = arith.constant 0 : i32
    %c0_i32_1 = arith.constant 0 : i32
    return %c0_i32, %c0_i32_0 : i32, i32
  }
  func.func @transform_21(%arg0: i32) -> (i32, i32) {
    %c0_i32 = arith.constant 0 : i32
    %c0_i32_0 = arith.constant 0 : i32
    %c0_i32_1 = arith.constant 0 : i32
    return %c0_i32, %c0_i32_0 : i32, i32
  }
  func.func @transform_22(%arg0: i32) -> (i32, i32) {
    %c0_i32 = arith.constant 0 : i32
    %c0_i32_0 = arith.constant 0 : i32
    %c0_i32_1 = arith.constant 0 : i32
    return %c0_i32, %c0_i32_0 : i32, i32
  }
  func.func @transform_23(%arg0: i32) -> (i32, i32) {
    %c0_i32 = arith.constant 0 : i32
    %c0_i32_0 = arith.constant 0 : i32
    %c0_i32_1 = arith.constant 0 : i32
    return %c0_i32, %c0_i32_0 : i32, i32
  }
  func.func @transform_24(%arg0: i32) -> (i32, i32) {
    %c0_i32 = arith.constant 0 : i32
    %c0_i32_0 = arith.constant 0 : i32
    %c0_i32_1 = arith.constant 0 : i32
    return %c0_i32, %c0_i32_0 : i32, i32
  }
  func.func @transform_25(%arg0: i32) -> (i32, i32) {
    %c0_i32 = arith.constant 0 : i32
    %c0_i32_0 = arith.constant 0 : i32
    %c0_i32_1 = arith.constant 0 : i32
    return %c0_i32, %c0_i32_0 : i32, i32
  }
  func.func @transform_26(%arg0: i32) -> (i32, i32) {
    %c0_i32 = arith.constant 0 : i32
    %c0_i32_0 = arith.constant 0 : i32
    %c0_i32_1 = arith.constant 0 : i32
    return %c0_i32, %c0_i32_0 : i32, i32
  }
  func.func @transform_27(%arg0: i32) -> (i32, i32) {
    %c0_i32 = arith.constant 0 : i32
    %c0_i32_0 = arith.constant 0 : i32
    %c0_i32_1 = arith.constant 0 : i32
    return %c0_i32, %c0_i32_0 : i32, i32
  }
}

</mosaic_0001>

<bundles_post_ra>
// kernel: tpu_custom_call.1
= control target key start
LH: loop header
LB: loop body
LE: loop exit
PB: predicated region body
PF: predicated region fallthrough
CT: control target
= control target key end

     0   :  { %s8054_s0 = inlined_call_operand.hbm [shape: f32[32,512], index: 0, kind: input, shape index: {}]   ;;  %s8055_s1 = inlined_call_operand.hbm [shape: f32[16,256], index: 1, kind: input, shape index: {}]   ;;  %s8056_s2 = inlined_call_operand.hbm [shape: f32[8,128], index: 2, kind: input, shape index: {}]   ;;  %s8057_s3 = inlined_call_operand.hbm [shape: bf16[512,512], index: 3, kind: input, shape index: {}]   ;;  %s8058_s4 = inlined_call_operand.hbm [shape: f32[1,512], index: 4, kind: input, shape index: {}]   ;;  %s8059_s5 = inlined_call_operand.vmem [shape: f32[9,512], index: 5, kind: input, shape index: {}]   ;;  %s8060_s6 = inlined_call_operand.hbm [shape: f32[1,512], index: 6, kind: input, shape index: {}]   ;;  %s8061_s7 = inlined_call_operand.hbm [shape: f32[32,32], index: 7, kind: input, shape index: {}]   ;;  %s8062_s8 = inlined_call_operand.hbm [shape: f32[32,32], index: 8, kind: input, shape index: {}]   ;;  %s8063_s9 = inlined_call_operand.hbm [shape: bf16[256,256], index: 9, kind: input, shape index: {}]   ;;  %s8064_s10 = inlined_call_operand.hbm [shape: f32[1,256], index: 10, kind: input, shape index: {}]   ;;  %s8065_s11 = inlined_call_operand.hbm [shape: f32[9,256], index: 11, kind: input, shape index: {}]   ;;  %s8066_s12 = inlined_call_operand.hbm [shape: f32[1,256], index: 12, kind: input, shape index: {}]   ;;  %s8067_s13 = inlined_call_operand.hbm [shape: f32[16,16], index: 13, kind: input, shape index: {}]   ;;  %s8068_s14 = inlined_call_operand.hbm [shape: f32[16,16], index: 14, kind: input, shape index: {}]   ;;  %s8069_s15 = inlined_call_operand.vmem [shape: bf16[128,128], index: 15, kind: input, shape index: {}]   ;;  %s8070_s16 = inlined_call_operand.vmem [shape: f32[1,128], index: 16, kind: input, shape index: {}]   ;;  %s8071_s17 = inlined_call_operand.hbm [shape: f32[9,128], index: 17, kind: input, shape index: {}]   ;;  %s8072_s18 = inlined_call_operand.vmem [shape: f32[1,128], index: 18, kind: input, shape index: {}]   ;;  %s8073_s19 = inlined_call_operand.hbm [shape: f32[8,8], index: 19, kind: input, shape index: {}]   ;;  %s8074_s20 = inlined_call_operand.hbm [shape: f32[8,8], index: 20, kind: input, shape index: {}]   ;;  %s8075_s21 = inlined_call_operand.vmem [shape: f32[32,16], index: 21, kind: input, shape index: {}]   ;;  %s8076_s22 = inlined_call_operand.hbm [shape: f32[256,512], index: 22, kind: input, shape index: {}]   ;;  %s8077_s23 = inlined_call_operand.vmem [shape: f32[16,8], index: 23, kind: input, shape index: {}]   ;;  %s8078_s24 = inlined_call_operand.hbm [shape: f32[128,256], index: 24, kind: input, shape index: {}]   ;;  %s8079_s25 = inlined_call_operand.hbm [shape: f32[32,512], index: 25, kind: output, shape index: {0}]   ;;  %s8080_s26 = inlined_call_operand.hbm [shape: f32[16,256], index: 26, kind: output, shape index: {1}]   ;;  %s8081_s27 = inlined_call_operand.hbm [shape: f32[8,128], index: 27, kind: output, shape index: {2}]  }
   0x1   :  { %8199 = sst [smem:[#allocation172_spill]] %s8054_s0 }
   0x2   :  { %8200 = sst [smem:[#allocation173_spill]] %s8055_s1 }
   0x3   :  { %8201 = sst [smem:[#allocation174_spill]] %s8056_s2 }
   0x4   :  { %8202 = sst [smem:[#allocation175_spill]] %s8057_s3 }
   0x5   :  { %8203 = sst [smem:[#allocation176_spill]] %s8058_s4 }
   0x6   :  { %8204 = sst [smem:[#allocation177_spill]] %s8059_s5 }
   0x7   :  { %8205 = sst [smem:[#allocation178_spill]] %s8060_s6 }
   0x8   :  { %8206 = sst [smem:[#allocation179_spill]] %s8061_s7 }
   0x9   :  { %8207 = sst [smem:[#allocation180_spill]] %s8062_s8 }
   0xa   :  { %8208 = sst [smem:[#allocation181_spill]] %s8063_s9 }
   0xb   :  { %8209 = sst [smem:[#allocation182_spill]] %s8064_s10 }
   0xc   :  { %8210 = sst [smem:[#allocation183_spill]] %s8065_s11 }
   0xd   :  { %8211 = sst [smem:[#allocation184_spill]] %s8079_s25 }
   0xe   :  { %8212 = sst [smem:[#allocation185_spill]] %s8080_s26 }
   0xf   :  { %8213 = sst [smem:[#allocation186_spill]] %s8081_s27 }
  0x10   :  { %33 = vsyncpa [#allocation3], 0 }
  0x11   :  { %34 = vsyncpa [#allocation6], 0 }
  0x12   :  { %35 = vsyncpa [#allocation9], 0 }
  0x13   :  { %36 = vsyncpa [#allocation12], 0 }
  0x14   :  { %37 = vsyncpa [#allocation15], 0 }
  0x15   :  { %38 = vsyncpa [#allocation18], 0 }
  0x16   :  { %39 = vsyncpa [#allocation21], 0 }
  0x17   :  { %40 = vsyncpa [#allocation24], 0 }
  0x18   :  { %41 = vsyncpa [#allocation27], 0 }
  0x19   :  { %42 = vsyncpa [#allocation30], 0 }
  0x1a   :  { %43 = vsyncpa [#allocation4], 0 }
  0x1b   :  { %44 = vsyncpa [#allocation34], 0  ;;  %s5624_s7 = smov [#allocation5]   ;;  %s8214_s9 = sld [smem:[#allocation173_spill]] }
  0x1c   :  { %s62_s4 = sshll.u32 %s5624_s7, 4  ;;  %s63_s4 = int_to_ptr.vmem [resolvable:$true] %s62_s4 }
  0x21   :  { %s5116_s5 = scalar_lea.hbm %s8214_s9, 512 }
  0x22   :  { %p5117_p0 = scmp.ne.s32.totalorder %s8214_s9, %s5116_s5  ;;  %p5120_p1 = scmp.lt.u32.totalorder %s5116_s5, %s8214_s9 }
  0x24   :  { %p5122_p2 = pnand %p5120_p1, %p5117_p0 }
  0x26   :  { %5125 = shalt.err (!%p5122_p2)
}
  0x27   :  { %s5126_s1 = scalar_lea.vmem %s63_s4, 512  ;;  %p5131_p4 = scmp.lt.s32.totalorder %s63_s4, %s63_s4 }
  0x28   :  { %p5127_p3 = scmp.ne.s32.totalorder %s63_s4, %s5126_s1  ;;  %p5132_p5 = scmp.lt.s32.totalorder %s5126_s1, %s5126_s1 }
  0x2a   :  { %p5133_p6 = por %p5132_p5, %p5131_p4 }
  0x2c   :  { %p5134_p7 = pnand %p5133_p6, %p5127_p3 }
  0x2e   :  { %5137 = shalt.err (!%p5134_p7)
}
  0x2f   :  { %s8097_s6 = smov 256   ;;  %s5626_s11 = smov 16  }
  0x30   :  { %68 = dma.hbm_to_vmem [thread:$0]  %s8214_s9, 512, %s63_s4, [#allocation6], %s8097_s6, %s8097_s6, %s5626_s11  }
  0x31   :  { %s5627_s7 = smov [#allocation8]   ;;  %s5628_s30 = smov [#allocation11]  }
  0x32   :  { %s84_s8 = sshll.u32 %s5627_s7, 4  ;;  %s109_s5 = sshll.u32 %s5628_s30, 4  ;;  %s85_s8 = int_to_ptr.vmem [resolvable:$true] %s84_s8  ;;  %s110_s5 = int_to_ptr.vmem [resolvable:$true] %s109_s5 }
  0x33   :  { %s8215_s10 = sld [smem:[#allocation175_spill]] }
  0x39   :  { %s5138_s29 = scalar_lea.hbm %s8215_s10, 16384 }
  0x3a   :  { %p5139_p8 = scmp.ne.s32.totalorder %s8215_s10, %s5138_s29  ;;  %p5142_p9 = scmp.lt.u32.totalorder %s5138_s29, %s8215_s10 }
  0x3c   :  { %p5144_p10 = pnand %p5142_p9, %p5139_p8 }
  0x3e   :  { %5147 = shalt.err (!%p5144_p10)
}
  0x3f   :  { %s5148_s4 = scalar_lea.vmem %s85_s8, 16384  ;;  %p5153_p12 = scmp.lt.s32.totalorder %s85_s8, %s85_s8 }
  0x40   :  { %p5149_p11 = scmp.ne.s32.totalorder %s85_s8, %s5148_s4  ;;  %p5154_p13 = scmp.lt.s32.totalorder %s5148_s4, %s5148_s4 }
  0x42   :  { %p5155_p0 = por %p5154_p13, %p5153_p12 }
  0x44   :  { %p5156_p1 = pnand %p5155_p0, %p5149_p11 }
  0x46   :  { %5159 = shalt.err (!%p5156_p1)
}
  0x47   :  { %90 = dma.hbm_to_vmem [thread:$0]  %s8215_s10, 16384, %s85_s8, [#allocation9], %s8097_s6, %s8097_s6, %s5626_s11  }
  0x48   :  { %s8216_s27 = sld [smem:[#allocation178_spill]] }
  0x4e   :  { %s5160_s3 = scalar_lea.hbm %s8216_s27, 64 }
  0x4f   :  { %p5161_p2 = scmp.ne.s32.totalorder %s8216_s27, %s5160_s3  ;;  %p5164_p3 = scmp.lt.u32.totalorder %s5160_s3, %s8216_s27 }
  0x51   :  { %p5166_p4 = pnand %p5164_p3, %p5161_p2 }
  0x53   :  { %5169 = shalt.err (!%p5166_p4)
}
  0x54   :  { %s5170_s29 = scalar_lea.vmem %s110_s5, 64  ;;  %p5175_p6 = scmp.lt.s32.totalorder %s110_s5, %s110_s5 }
  0x55   :  { %p5171_p5 = scmp.ne.s32.totalorder %s110_s5, %s5170_s29  ;;  %p5176_p7 = scmp.lt.s32.totalorder %s5170_s29, %s5170_s29 }
  0x57   :  { %p5177_p8 = por %p5176_p7, %p5175_p6 }
  0x59   :  { %p5178_p9 = pnand %p5177_p8, %p5171_p5 }
  0x5b   :  { %5181 = shalt.err (!%p5178_p9)
}
  0x5c   :  { %112 = dma.hbm_to_vmem [thread:$0]  %s8216_s27, 64, %s110_s5, [#allocation12]  }
  0x5d   :  { %s5629_s1 = smov [#allocation14]   ;;  %s5630_s9 = smov [#allocation17]  }
  0x5e   :  { %s130_s4 = sshll.u32 %s5629_s1, 4  ;;  %s155_s2 = sshll.u32 %s5630_s9, 4  ;;  %s131_s4 = int_to_ptr.vmem [resolvable:$true] %s130_s4  ;;  %s156_s2 = int_to_ptr.vmem [resolvable:$true] %s155_s2 }
  0x5f   :  { %s8217_s3 = sld [smem:[#allocation180_spill]] }
  0x65   :  { %s5182_s7 = scalar_lea.hbm %s8217_s3, 512 }
  0x66   :  { %p5183_p10 = scmp.ne.s32.totalorder %s8217_s3, %s5182_s7  ;;  %p5186_p11 = scmp.lt.u32.totalorder %s5182_s7, %s8217_s3 }
  0x68   :  { %p5188_p12 = pnand %p5186_p11, %p5183_p10 }
  0x6a   :  { %5191 = shalt.err (!%p5188_p12)
}
  0x6b   :  { %s5192_s5 = scalar_lea.vmem %s131_s4, 512  ;;  %p5197_p0 = scmp.lt.s32.totalorder %s131_s4, %s131_s4 }
  0x6c   :  { %p5193_p13 = scmp.ne.s32.totalorder %s131_s4, %s5192_s5  ;;  %p5198_p1 = scmp.lt.s32.totalorder %s5192_s5, %s5192_s5 }
  0x6e   :  { %p5199_p2 = por %p5198_p1, %p5197_p0 }
  0x70   :  { %p5200_p3 = pnand %p5199_p2, %p5193_p13 }
  0x72   :  { %5203 = shalt.err (!%p5200_p3)
}
  0x73   :  { %s5631_s27 = smov 128   ;;  %s5632_s8 = smov 8  }
  0x74   :  { %136 = dma.hbm_to_vmem [thread:$0]  %s8217_s3, 512, %s131_s4, [#allocation15], %s5631_s27, %s5631_s27, %s5632_s8  }
  0x75   :  { %s8218_s26 = sld [smem:[#allocation182_spill]] }
  0x7b   :  { %s5204_s7 = scalar_lea.hbm %s8218_s26, 32 }
  0x7c   :  { %p5205_p4 = scmp.ne.s32.totalorder %s8218_s26, %s5204_s7  ;;  %p5208_p5 = scmp.lt.u32.totalorder %s5204_s7, %s8218_s26 }
  0x7e   :  { %p5210_p6 = pnand %p5208_p5, %p5205_p4 }
  0x80   :  { %5213 = shalt.err (!%p5210_p6)
}
  0x81   :  { %s5214_s5 = scalar_lea.vmem %s156_s2, 32  ;;  %p5219_p8 = scmp.lt.s32.totalorder %s156_s2, %s156_s2 }
  0x82   :  { %p5215_p7 = scmp.ne.s32.totalorder %s156_s2, %s5214_s5  ;;  %p5220_p9 = scmp.lt.s32.totalorder %s5214_s5, %s5214_s5 }
  0x84   :  { %p5221_p10 = por %p5220_p9, %p5219_p8 }
  0x86   :  { %p5222_p11 = pnand %p5221_p10, %p5215_p7 }
  0x88   :  { %5225 = shalt.err (!%p5222_p11)
}
  0x89   :  { %158 = dma.hbm_to_vmem [thread:$0]  %s8218_s26, 32, %s156_s2, [#allocation18]  }
  0x8a   :  { %s5633_s10 = smov [#allocation20]   ;;  %s5634_s9 = smov [#allocation23]  }
  0x8b   :  { %s177_s1 = sshll.u32 %s5633_s10, 4  ;;  %s198_s25 = sshll.u32 %s5634_s9, 4  ;;  %s178_s1 = int_to_ptr.vmem [resolvable:$true] %s177_s1  ;;  %s199_s25 = int_to_ptr.vmem [resolvable:$true] %s198_s25 }
  0x8c   :  { %s5226_s28 = scalar_lea.hbm %s8066_s12, 32 }
  0x8d   :  { %p5227_p12 = scmp.ne.s32.totalorder %s8066_s12, %s5226_s28  ;;  %p5230_p13 = scmp.lt.u32.totalorder %s5226_s28, %s8066_s12 }
  0x8f   :  { %p5232_p0 = pnand %p5230_p13, %p5227_p12 }
  0x91   :  { %5235 = shalt.err (!%p5232_p0)
}
  0x92   :  { %s5236_s2 = scalar_lea.vmem %s178_s1, 32  ;;  %p5241_p2 = scmp.lt.s32.totalorder %s178_s1, %s178_s1 }
  0x93   :  { %p5237_p1 = scmp.ne.s32.totalorder %s178_s1, %s5236_s2  ;;  %p5242_p3 = scmp.lt.s32.totalorder %s5236_s2, %s5236_s2 }
  0x95   :  { %p5243_p4 = por %p5242_p3, %p5241_p2 }
  0x97   :  { %p5244_p5 = pnand %p5243_p4, %p5237_p1 }
  0x99   :  { %5247 = shalt.err (!%p5244_p5)
}
  0x9a   :  { %180 = dma.hbm_to_vmem [thread:$0]  %s8066_s12, 32, %s178_s1, [#allocation21]  }
  0x9b   :  { %s5248_s9 = scalar_lea.hbm %s8068_s14, 256 }
  0x9c   :  { %p5249_p6 = scmp.ne.s32.totalorder %s8068_s14, %s5248_s9  ;;  %p5252_p7 = scmp.lt.u32.totalorder %s5248_s9, %s8068_s14 }
  0x9e   :  { %p5254_p8 = pnand %p5252_p7, %p5249_p6 }
  0xa0   :  { %5257 = shalt.err (!%p5254_p8)
}
  0xa1   :  { %s5258_s0 = scalar_lea.vmem %s199_s25, 256  ;;  %p5263_p10 = scmp.lt.s32.totalorder %s199_s25, %s199_s25 }
  0xa2   :  { %p5259_p9 = scmp.ne.s32.totalorder %s199_s25, %s5258_s0  ;;  %p5264_p11 = scmp.lt.s32.totalorder %s5258_s0, %s5258_s0 }
  0xa4   :  { %p5265_p12 = por %p5264_p11, %p5263_p10 }
  0xa6   :  { %p5266_p13 = pnand %p5265_p12, %p5259_p9 }
  0xa8   :  { %5269 = shalt.err (!%p5266_p13)
}
  0xa9   :  { %204 = dma.hbm_to_vmem [thread:$0]  %s8068_s14, 256, %s199_s25, [#allocation24], %s5631_s27, %s5631_s27, %s5632_s8  }
  0xaa   :  { %s5635_s29 = smov [#allocation26]   ;;  %s5270_s4 = scalar_lea.hbm %s8073_s19, 128 }
  0xab   :  { %s229_s5 = sshll.u32 %s5635_s29, 4  ;;  %p5271_p0 = scmp.ne.s32.totalorder %s8073_s19, %s5270_s4  ;;  %s230_s5 = int_to_ptr.vmem [resolvable:$true] %s229_s5 }
  0xac   :  { %p5274_p1 = scmp.lt.u32.totalorder %s5270_s4, %s8073_s19 }
  0xae   :  { %p5276_p2 = pnand %p5274_p1, %p5271_p0 }
  0xb0   :  { %5279 = shalt.err (!%p5276_p2)
}
  0xb1   :  { %s5280_s30 = scalar_lea.vmem %s230_s5, 128  ;;  %p5285_p4 = scmp.lt.s32.totalorder %s230_s5, %s230_s5 }
  0xb2   :  { %p5281_p3 = scmp.ne.s32.totalorder %s230_s5, %s5280_s30  ;;  %p5286_p5 = scmp.lt.s32.totalorder %s5280_s30, %s5280_s30 }
  0xb4   :  { %p5287_p6 = por %p5286_p5, %p5285_p4 }
  0xb6   :  { %p5288_p7 = pnand %p5287_p6, %p5281_p3 }
  0xb8   :  { %5291 = shalt.err (!%p5288_p7)
}
  0xb9   :  { %232 = dma.hbm_to_vmem [thread:$0]  %s8073_s19, 128, %s230_s5, [#allocation27]  }
  0xba   :  { %s5636_s7 = smov [#allocation29]   ;;  %s5637_s0 = smov [#allocation2]  }
  0xbb   :  { %s250_s28 = sshll.u32 %s5636_s7, 4  ;;  %s50_s12 = sshll.u32 %s5637_s0, 4  ;;  %s251_s28 = int_to_ptr.vmem [resolvable:$true] %s250_s28  ;;  %s5903_s12 = int_to_ptr.vmem [resolvable:$true] %s50_s12 }
  0xbc   :  { %s5292_s2 = scalar_lea.hbm %s8076_s22, 16384 }
  0xbd   :  { %p5293_p8 = scmp.ne.s32.totalorder %s8076_s22, %s5292_s2  ;;  %p5296_p9 = scmp.lt.u32.totalorder %s5292_s2, %s8076_s22 }
  0xbf   :  { %p5298_p10 = pnand %p5296_p9, %p5293_p8 }
  0xc1   :  { %5301 = shalt.err (!%p5298_p10)
}
  0xc2   :  { %s5302_s19 = scalar_lea.vmem %s251_s28, 16384  ;;  %p5307_p12 = scmp.lt.s32.totalorder %s251_s28, %s251_s28 }
  0xc3   :  { %p5303_p11 = scmp.ne.s32.totalorder %s251_s28, %s5302_s19  ;;  %p5308_p13 = scmp.lt.s32.totalorder %s5302_s19, %s5302_s19 }
  0xc5   :  { %p5309_p0 = por %p5308_p13, %p5307_p12 }
  0xc7   :  { %p5310_p1 = pnand %p5309_p0, %p5303_p11 }
  0xc9   :  { %5313 = shalt.err (!%p5310_p1)
}
  0xca   :  { %s5638_s5 = smov 512   ;;  %s5639_s9 = smov 32  }
  0xcb   :  { %256 = dma.hbm_to_vmem [thread:$0]  %s8076_s22, 16384, %s251_s28, [#allocation30], %s5638_s5, %s5638_s5, %s5639_s9  }
  0xcc   :  { %s8219_s7 = sld [smem:[#allocation172_spill]] }
  0xd2   :  { %s5314_s0 = scalar_lea.hbm %s8219_s7, 2048 }
  0xd3   :  { %p5315_p2 = scmp.ne.s32.totalorder %s8219_s7, %s5314_s0  ;;  %p5318_p3 = scmp.lt.u32.totalorder %s5314_s0, %s8219_s7 }
  0xd5   :  { %p5320_p4 = pnand %p5318_p3, %p5315_p2 }
  0xd7   :  { %5323 = shalt.err (!%p5320_p4)
}
  0xd8   :  { %s5324_s4 = scalar_lea.vmem %s5903_s12, 2048  ;;  %p5329_p6 = scmp.lt.s32.totalorder %s5903_s12, %s5903_s12 }
  0xd9   :  { %p5325_p5 = scmp.ne.s32.totalorder %s5903_s12, %s5324_s4  ;;  %p5330_p7 = scmp.lt.s32.totalorder %s5324_s4, %s5324_s4 }
  0xdb   :  { %p5331_p8 = por %p5330_p7, %p5329_p6 }
  0xdd   :  { %p5332_p9 = pnand %p5331_p8, %p5325_p5 }
  0xdf   :  { %5335 = shalt.err (!%p5332_p9)
}
  0xe0   :  { %56 = dma.hbm_to_vmem [thread:$0]  %s8219_s7, 2048, %s5903_s12, [#allocation3], %s5638_s5, %s5638_s5, %s5639_s9  }
  0xe1   :  { %s5640_s3 = smov [#allocation7]   ;;  %s5641_s19 = smov [#allocation10]  }
  0xe2   :  { %s75_s10 = sshll.u32 %s5640_s3, 4  ;;  %s97_s6 = sshll.u32 %s5641_s19, 4  ;;  %s76_s10 = int_to_ptr.vmem [resolvable:$true] %s75_s10  ;;  %s98_s6 = int_to_ptr.vmem [resolvable:$true] %s97_s6 }
  0xe3   :  { %s8220_s25 = sld [smem:[#allocation174_spill]] }
  0xe9   :  { %s5336_s0 = scalar_lea.hbm %s8220_s25, 128 }
  0xea   :  { %p5337_p10 = scmp.ne.s32.totalorder %s8220_s25, %s5336_s0  ;;  %p5340_p11 = scmp.lt.u32.totalorder %s5336_s0, %s8220_s25 }
  0xec   :  { %p5342_p12 = pnand %p5340_p11, %p5337_p10 }
  0xee   :  { %5345 = shalt.err (!%p5342_p12)
}
  0xef   :  { %s5346_s12 = scalar_lea.vmem %s76_s10, 128  ;;  %p5351_p0 = scmp.lt.s32.totalorder %s76_s10, %s76_s10 }
  0xf0   :  { %p5347_p13 = scmp.ne.s32.totalorder %s76_s10, %s5346_s12  ;;  %p5352_p1 = scmp.lt.s32.totalorder %s5346_s12, %s5346_s12 }
  0xf2   :  { %p5353_p2 = por %p5352_p1, %p5351_p0 }
  0xf4   :  { %p5354_p3 = pnand %p5353_p2, %p5347_p13 }
  0xf6   :  { %5357 = shalt.err (!%p5354_p3)
}
  0xf7   :  { %78 = dma.hbm_to_vmem [thread:$0]  %s8220_s25, 128, %s76_s10, [#allocation6]  }
  0xf8   :  { %s8221_s3 = sld [smem:[#allocation176_spill]] }
  0xfe   :  { %s5358_s19 = scalar_lea.hbm %s8221_s3, 64 }
  0xff   :  { %p5359_p4 = scmp.ne.s32.totalorder %s8221_s3, %s5358_s19  ;;  %p5362_p5 = scmp.lt.u32.totalorder %s5358_s19, %s8221_s3 }
 0x101   :  { %p5364_p6 = pnand %p5362_p5, %p5359_p4 }
 0x103   :  { %5367 = shalt.err (!%p5364_p6)
}
 0x104   :  { %s5368_s29 = scalar_lea.vmem %s98_s6, 64  ;;  %p5373_p8 = scmp.lt.s32.totalorder %s98_s6, %s98_s6 }
 0x105   :  { %p5369_p7 = scmp.ne.s32.totalorder %s98_s6, %s5368_s29  ;;  %p5374_p9 = scmp.lt.s32.totalorder %s5368_s29, %s5368_s29 }
 0x107   :  { %p5375_p10 = por %p5374_p9, %p5373_p8 }
 0x109   :  { %p5376_p11 = pnand %p5375_p10, %p5369_p7 }
 0x10b   :  { %5379 = shalt.err (!%p5376_p11)
}
 0x10c   :  { %100 = dma.hbm_to_vmem [thread:$0]  %s8221_s3, 64, %s98_s6, [#allocation9]  }
 0x10d   :  { %s5642_s2 = smov [#allocation13]   ;;  %s5643_s12 = smov [#allocation16]  }
 0x10e   :  { %s118_s26 = sshll.u32 %s5642_s2, 4  ;;  %s142_s7 = sshll.u32 %s5643_s12, 4  ;;  %s119_s26 = int_to_ptr.vmem [resolvable:$true] %s118_s26  ;;  %s5964_s7 = int_to_ptr.vmem [resolvable:$true] %s142_s7 }
 0x10f   :  { %s8222_s28 = sld [smem:[#allocation179_spill]] }
 0x115   :  { %s5380_s19 = scalar_lea.hbm %s8222_s28, 512 }
 0x116   :  { %p5381_p12 = scmp.ne.s32.totalorder %s8222_s28, %s5380_s19  ;;  %p5384_p13 = scmp.lt.u32.totalorder %s5380_s19, %s8222_s28 }
 0x118   :  { %p5386_p0 = pnand %p5384_p13, %p5381_p12 }
 0x11a   :  { %5389 = shalt.err (!%p5386_p0)
}
 0x11b   :  { %s5390_s6 = scalar_lea.vmem %s119_s26, 512  ;;  %p5395_p2 = scmp.lt.s32.totalorder %s119_s26, %s119_s26 }
 0x11c   :  { %p5391_p1 = scmp.ne.s32.totalorder %s119_s26, %s5390_s6  ;;  %p5396_p3 = scmp.lt.s32.totalorder %s5390_s6, %s5390_s6 }
 0x11e   :  { %p5397_p4 = por %p5396_p3, %p5395_p2 }
 0x120   :  { %p5398_p5 = pnand %p5397_p4, %p5391_p1 }
 0x122   :  { %5401 = shalt.err (!%p5398_p5)
}
 0x123   :  { %124 = dma.hbm_to_vmem [thread:$0]  %s8222_s28, 512, %s119_s26, [#allocation12], %s5631_s27, %s5631_s27, %s5632_s8  }
 0x124   :  { %s8223_s2 = sld [smem:[#allocation181_spill]] }
 0x12a   :  { %s5402_s12 = scalar_lea.hbm %s8223_s2, 4096 }
 0x12b   :  { %p5403_p6 = scmp.ne.s32.totalorder %s8223_s2, %s5402_s12  ;;  %p5406_p7 = scmp.lt.u32.totalorder %s5402_s12, %s8223_s2 }
 0x12d   :  { %p5408_p8 = pnand %p5406_p7, %p5403_p6 }
 0x12f   :  { %5411 = shalt.err (!%p5408_p8)
}
 0x130   :  { %s5412_s14 = scalar_lea.vmem %s5964_s7, 4096  ;;  %p5417_p10 = scmp.lt.s32.totalorder %s5964_s7, %s5964_s7 }
 0x131   :  { %p5413_p9 = scmp.ne.s32.totalorder %s5964_s7, %s5412_s14  ;;  %p5418_p11 = scmp.lt.s32.totalorder %s5412_s14, %s5412_s14 }
 0x133   :  { %p5419_p12 = por %p5418_p11, %p5417_p10 }
 0x135   :  { %p5420_p13 = pnand %p5419_p12, %p5413_p9 }
 0x137   :  { %5423 = shalt.err (!%p5420_p13)
}
 0x138   :  { %148 = dma.hbm_to_vmem [thread:$0]  %s8223_s2, 4096, %s5964_s7, [#allocation15], %s5631_s27, %s5631_s27, %s5632_s8  }
 0x139   :  { %s5644_s0 = smov [#allocation19]   ;;  %s5645_s6 = smov [#allocation22]  }
 0x13a   :  { %s164_s1 = sshll.u32 %s5644_s0, 4  ;;  %s186_s3 = sshll.u32 %s5645_s6, 4  ;;  %s165_s1 = int_to_ptr.vmem [resolvable:$true] %s164_s1  ;;  %s6001_s3 = int_to_ptr.vmem [resolvable:$true] %s186_s3 }
 0x13b   :  { %s8224_s25 = sld [smem:[#allocation183_spill]] }
 0x141   :  { %s5424_s12 = scalar_lea.hbm %s8224_s25, 512 }
 0x142   :  { %p5425_p0 = scmp.ne.s32.totalorder %s8224_s25, %s5424_s12  ;;  %p5428_p1 = scmp.lt.u32.totalorder %s5424_s12, %s8224_s25 }
 0x144   :  { %p5430_p2 = pnand %p5428_p1, %p5425_p0 }
 0x146   :  { %5433 = shalt.err (!%p5430_p2)
}
 0x147   :  { %s5434_s7 = scalar_lea.vmem %s165_s1, 512  ;;  %p5439_p4 = scmp.lt.s32.totalorder %s165_s1, %s165_s1 }
 0x148   :  { %p5435_p3 = scmp.ne.s32.totalorder %s165_s1, %s5434_s7  ;;  %p5440_p5 = scmp.lt.s32.totalorder %s5434_s7, %s5434_s7 }
 0x14a   :  { %p5441_p6 = por %p5440_p5, %p5439_p4 }
 0x14c   :  { %p5442_p7 = pnand %p5441_p6, %p5435_p3 }
 0x14e   :  { %5445 = shalt.err (!%p5442_p7)
}
 0x14f   :  { %s8225_s2 = smov 256   ;;  %s5446_s6 = scalar_lea.hbm %s8067_s13, 256 }
 0x150   :  { %170 = dma.hbm_to_vmem [thread:$0]  %s8224_s25, 512, %s165_s1, [#allocation18], %s8225_s2, %s8225_s2, %s5626_s11  }
 0x151   :  { %p5447_p8 = scmp.ne.s32.totalorder %s8067_s13, %s5446_s6  ;;  %p5450_p9 = scmp.lt.u32.totalorder %s5446_s6, %s8067_s13 }
 0x153   :  { %p5452_p10 = pnand %p5450_p9, %p5447_p8 }
 0x155   :  { %5455 = shalt.err (!%p5452_p10)
}
 0x156   :  { %s5456_s22 = scalar_lea.vmem %s6001_s3, 256  ;;  %p5461_p12 = scmp.lt.s32.totalorder %s6001_s3, %s6001_s3 }
 0x157   :  { %p5457_p11 = scmp.ne.s32.totalorder %s6001_s3, %s5456_s22  ;;  %p5462_p13 = scmp.lt.s32.totalorder %s5456_s22, %s5456_s22 }
 0x159   :  { %p5463_p0 = por %p5462_p13, %p5461_p12 }
 0x15b   :  { %p5464_p1 = pnand %p5463_p0, %p5457_p11 }
 0x15d   :  { %5467 = shalt.err (!%p5464_p1)
}
 0x15e   :  { %192 = dma.hbm_to_vmem [thread:$0]  %s8067_s13, 256, %s6001_s3, [#allocation21], %s5631_s27, %s5631_s27, %s5632_s8  }
 0x15f   :  { %s5646_s19 = smov [#allocation25]   ;;  %s5647_s7 = smov [#allocation28]  }
 0x160   :  { %s214_s30 = sshll.u32 %s5646_s19, 4  ;;  %s239_s14 = sshll.u32 %s5647_s7, 4  ;;  %s215_s30 = int_to_ptr.vmem [resolvable:$true] %s214_s30  ;;  %s240_s14 = int_to_ptr.vmem [resolvable:$true] %s239_s14 }
 0x161   :  { %s5468_s0 = scalar_lea.hbm %s8071_s17, 256 }
 0x162   :  { %p5469_p2 = scmp.ne.s32.totalorder %s8071_s17, %s5468_s0  ;;  %p5472_p3 = scmp.lt.u32.totalorder %s5468_s0, %s8071_s17 }
 0x164   :  { %p5474_p4 = pnand %p5472_p3, %p5469_p2 }
 0x166   :  { %5477 = shalt.err (!%p5474_p4)
}
 0x167   :  { %s5478_s13 = scalar_lea.vmem %s215_s30, 256  ;;  %p5483_p6 = scmp.lt.s32.totalorder %s215_s30, %s215_s30 }
 0x168   :  { %p5479_p5 = scmp.ne.s32.totalorder %s215_s30, %s5478_s13  ;;  %p5484_p7 = scmp.lt.s32.totalorder %s5478_s13, %s5478_s13 }
 0x16a   :  { %p5485_p8 = por %p5484_p7, %p5483_p6 }
 0x16c   :  { %p5486_p9 = pnand %p5485_p8, %p5479_p5 }
 0x16e   :  { %5489 = shalt.err (!%p5486_p9)
}
 0x16f   :  { %220 = dma.hbm_to_vmem [thread:$0]  %s8071_s17, 256, %s215_s30, [#allocation24], %s5631_s27, %s5631_s27, %s5632_s8  }
 0x170   :  { %s5490_s25 = scalar_lea.hbm %s8074_s20, 128 }
 0x171   :  { %p5491_p10 = scmp.ne.s32.totalorder %s8074_s20, %s5490_s25  ;;  %p5494_p11 = scmp.lt.u32.totalorder %s5490_s25, %s8074_s20 }
 0x173   :  { %p5496_p12 = pnand %p5494_p11, %p5491_p10 }
 0x175   :  { %5499 = shalt.err (!%p5496_p12)
}
 0x176   :  { %s5500_s0 = scalar_lea.vmem %s240_s14, 128  ;;  %p5505_p0 = scmp.lt.s32.totalorder %s240_s14, %s240_s14 }
 0x177   :  { %p5501_p13 = scmp.ne.s32.totalorder %s240_s14, %s5500_s0  ;;  %p5506_p1 = scmp.lt.s32.totalorder %s5500_s0, %s5500_s0 }
 0x179   :  { %p5507_p2 = por %p5506_p1, %p5505_p0 }
 0x17b   :  { %p5508_p3 = pnand %p5507_p2, %p5501_p13 }
 0x17d   :  { %5511 = shalt.err (!%p5508_p3)
}
 0x17e   :  { %242 = dma.hbm_to_vmem [thread:$0]  %s8074_s20, 128, %s240_s14, [#allocation27]  }
 0x17f   :  { %s5648_s8 = smov [#allocation31]   ;;  %s5512_s10 = scalar_lea.hbm %s8078_s24, 4096 }
 0x180   :  { %s264_s30 = sshll.u32 %s5648_s8, 4  ;;  %p5513_p4 = scmp.ne.s32.totalorder %s8078_s24, %s5512_s10  ;;  %s265_s30 = int_to_ptr.vmem [resolvable:$true] %s264_s30 }
 0x181   :  { %p5516_p5 = scmp.lt.u32.totalorder %s5512_s10, %s8078_s24 }
 0x183   :  { %p5518_p6 = pnand %p5516_p5, %p5513_p4 }
 0x185   :  { %5521 = shalt.err (!%p5518_p6)
}
 0x186   :  { %s5522_s22 = scalar_lea.vmem %s265_s30, 4096  ;;  %p5527_p8 = scmp.lt.s32.totalorder %s265_s30, %s265_s30 }
 0x187   :  { %p5523_p7 = scmp.ne.s32.totalorder %s265_s30, %s5522_s22  ;;  %p5528_p9 = scmp.lt.s32.totalorder %s5522_s22, %s5522_s22 }
 0x189   :  { %p5529_p10 = por %p5528_p9, %p5527_p8 }
 0x18b   :  { %p5530_p11 = pnand %p5529_p10, %p5523_p7 }
 0x18d   :  { %5533 = shalt.err (!%p5530_p11)
}
 0x18e   :  { %270 = dma.hbm_to_vmem [thread:$0]  %s8078_s24, 4096, %s265_s30, [#allocation30], %s8225_s2, %s8225_s2, %s5626_s11  }
 0x18f   :  { %5600 = dma.done.wait [#allocation3], 2048  }
 0x190   :  { %5601 = vsyncadd [#allocation3], 4294965248 }
 0x191   :  { %5602 = dma.done.wait [#allocation6], 640  }
 0x192   :  { %5603 = vsyncadd [#allocation6], 4294966656 }
 0x193   :  { %5604 = dma.done.wait [#allocation9], 16448  }
 0x194   :  { %5605 = vsyncadd [#allocation9], 4294950848 }
 0x195   :  { %5606 = dma.done.wait [#allocation12], 576  }
 0x196   :  { %5607 = vsyncadd [#allocation12], 4294966720 }
 0x197   :  { %5608 = dma.done.wait [#allocation15], 4608  }
 0x198   :  { %5609 = vsyncadd [#allocation15], 4294962688 }
 0x199   :  { %5610 = dma.done.wait [#allocation18], 544  }
 0x19a   :  { %5611 = vsyncadd [#allocation18], 4294966752 }
 0x19b   :  { %5612 = dma.done.wait [#allocation21], 288  }
 0x19c   :  { %5613 = vsyncadd [#allocation21], 4294967008 }
 0x19d   :  { %5614 = dma.done.wait [#allocation24], 512  }
 0x19e   :  { %5615 = vsyncadd [#allocation24], 4294966784 }
 0x19f   :  { %5616 = dma.done.wait [#allocation27], 256  }
 0x1a0   :  { %5617 = vsyncadd [#allocation27], 4294967040 }
 0x1a1   :  { %5618 = dma.done.wait [#allocation30], 20480  }
 0x1a2   :  { %5619 = vsyncadd [#allocation30], 4294946816  ;;  %v8099_v0 = vmov 0.0   ;;  %vm5650_vm0 = vmmov 0   ;;  %v4866_v1 = vld [vmem:[%s8069_s15] sm:$0xff]   ;;  %v4867_v2 = vld [vmem:[%s8069_s15 + $0x8] sm:$0xff]  }
 0x1a3   :  { %4564 = vmatprep.subr.bf16.mxu0 %v8099_v0  ;;  %4580 = vmatprep.mubr.msk.bf16.mxu0 %vm5650_vm0, %v8099_v0  ;;  %v4868_v3 = vld [vmem:[%s8069_s15 + $0x10] sm:$0xff]   ;;  %v4869_v4 = vld [vmem:[%s8069_s15 + $0x18] sm:$0xff]   ;;  %v4870_v5 = vld [vmem:[%s8069_s15 + $0x20] sm:$0xff]   ;;  %vm446_vm1 = vcmask 64512   ;;  %vm938_vm2 = vcmask 130048   ;;  %vm2635_vm3 = vcmask 261120  }
 0x1a4   :  { %4584 = vmatprep.subr.mxu1 %v8099_v0  ;;  %4586 = vmatprep.mubr.msk.f32.mxu1 %vm5650_vm0, %v8099_v0  ;;  %v4871_v6 = vld [vmem:[%s8069_s15 + $0x28] sm:$0xff]   ;;  %v4872_v7 = vld [vmem:[%s8069_s15 + $0x30] sm:$0xff]   ;;  %v4873_v8 = vld [vmem:[%s8069_s15 + $0x38] sm:$0xff]   ;;  %s5651_s15 = smov 96  }
 0x1a5   :  { %4565 = vmatpush3.bf16.msra.mxu0 %v4866_v1  ;;  %v349_v9 = vld [vmem:[#allocation7] sm:$0xff]  ;;  %v348_v18 = vld [vmem:[#allocation28] sm:$0xff]  ;;  %v4876_v19 = vld [vmem:[#allocation16 + $0x4] ss:$8 sps:$4 sm:$0xff]  }
 0x1a6   :  { %4566 = vmatprep.subr.bf16.mxu0 %v8099_v0  ;;  %v350_v10 = vpack.c.bf16 %v349_v9, %v349_v9  ;;  %v4333_v11 = vld [vmem:[%s8070_s16] ss:$0 sm:$0xff]  ;;  %v715_v20 = vld [vmem:[#allocation5 + $0x8] sm:$0xff]  ;;  %v717_v21 = vld [vmem:[#allocation5 + $0x18] sm:$0xff] }
 0x1a7   :  { %v4874_v22 = vld [vmem:[#allocation16] ss:$8 sps:$4 sm:$0xff]   ;;  %v347_v23 = vld [vmem:[#allocation26] sm:$0xff]  ;;  %v719_v24 = vpack.c.bf16 %v717_v21, %v715_v20  ;;  %v4882_v27 = vld [vmem:[#allocation16 + $0x24] ss:$8 sps:$4 sm:$0xff]  }
 0x1a8   :  { %v4879_v25 = vld [vmem:[#allocation16 + $0x14] ss:$8 sps:$4 sm:$0xff]   ;;  %v4877_v26 = vld [vmem:[#allocation16 + $0x10] ss:$8 sps:$4 sm:$0xff]   ;;  %v4880_v28 = vld [vmem:[#allocation16 + $0x20] ss:$8 sps:$4 sm:$0xff]  }
 0x1a9   :  { %4567 = vmatpush3.bf16.msra.mxu0 %v4867_v2  ;;  %v4885_v29 = vld [vmem:[#allocation16 + $0x34] ss:$8 sps:$4 sm:$0xff]   ;;  %v4883_v30 = vld [vmem:[#allocation16 + $0x30] ss:$8 sps:$4 sm:$0xff]   ;;  %v4888_v31 = vld [vmem:[#allocation16 + $0x44] ss:$8 sps:$4 sm:$0xff]  }
 0x1aa   :  { %4568 = vmatprep.subr.bf16.mxu0 %v8099_v0  ;;  %v4886_v32 = vld [vmem:[#allocation16 + $0x40] ss:$8 sps:$4 sm:$0xff]   ;;  %v4891_v33 = vld [vmem:[#allocation16 + $0x54] ss:$8 sps:$4 sm:$0xff]   ;;  %v4889_v34 = vld [vmem:[#allocation16 + $0x50] ss:$8 sps:$4 sm:$0xff]  }
 0x1ab   :  { %v4894_v35 = vld [vmem:[#allocation16 + $0x64] ss:$8 sps:$4 sm:$0xff]   ;;  %v4892_v36 = vld [vmem:[#allocation16 + $0x60] ss:$8 sps:$4 sm:$0xff]   ;;  %v4897_v37 = vld [vmem:[#allocation16 + $0x74] ss:$8 sps:$4 sm:$0xff]  }
 0x1ac   :  { %v4895_v38 = vld [vmem:[#allocation16 + $0x70] ss:$8 sps:$4 sm:$0xff]   ;;  %v4900_v39 = vld [vmem:[#allocation16 + $0x84] ss:$8 sps:$4 sm:$0xff]   ;;  %v4898_v40 = vld [vmem:[#allocation16 + $0x80] ss:$8 sps:$4 sm:$0xff]  }
 0x1ad   :  { %4569 = vmatpush3.bf16.msra.mxu0 %v4868_v3  ;;  %v4903_v41 = vld [vmem:[#allocation16 + $0x94] ss:$8 sps:$4 sm:$0xff]   ;;  %v4901_v42 = vld [vmem:[#allocation16 + $0x90] ss:$8 sps:$4 sm:$0xff]   ;;  %v4906_v43 = vld [vmem:[#allocation16 + $0xa4] ss:$8 sps:$4 sm:$0xff]  }
 0x1ae   :  { %4570 = vmatprep.subr.bf16.mxu0 %v8099_v0  ;;  %v4904_v44 = vld [vmem:[#allocation16 + $0xa0] ss:$8 sps:$4 sm:$0xff]   ;;  %v4909_v45 = vld [vmem:[#allocation16 + $0xb4] ss:$8 sps:$4 sm:$0xff]   ;;  %v4907_v46 = vld [vmem:[#allocation16 + $0xb0] ss:$8 sps:$4 sm:$0xff]  }
 0x1af   :  { %v4912_v47 = vld [vmem:[#allocation16 + $0xc4] ss:$8 sps:$4 sm:$0xff]   ;;  %v4910_v48 = vld [vmem:[#allocation16 + $0xc0] ss:$8 sps:$4 sm:$0xff]   ;;  %v4915_v49 = vld [vmem:[#allocation16 + $0xd4] ss:$8 sps:$4 sm:$0xff]  }
 0x1b0   :  { %v4913_v50 = vld [vmem:[#allocation16 + $0xd0] ss:$8 sps:$4 sm:$0xff]   ;;  %v4918_v51 = vld [vmem:[#allocation16 + $0xe4] ss:$8 sps:$4 sm:$0xff]   ;;  %v4916_v52 = vld [vmem:[#allocation16 + $0xe0] ss:$8 sps:$4 sm:$0xff]  }
 0x1b1   :  { %4571 = vmatpush3.bf16.msra.mxu0 %v4869_v4  ;;  %v4921_v53 = vld [vmem:[#allocation16 + $0xf4] ss:$8 sps:$4 sm:$0xff]   ;;  %v4919_v54 = vld [vmem:[#allocation16 + $0xf0] ss:$8 sps:$4 sm:$0xff]   ;;  %v716_v56 = vld [vmem:[#allocation5 + $0x10] sm:$0xff] }
 0x1b2   :  { %4572 = vmatprep.subr.bf16.mxu0 %v8099_v0  ;;  %v714_v55 = vld [vmem:[#allocation5] sm:$0xff]  ;;  %v4922_v58 = vld [vmem:[#allocation8] ss:$16 sps:$4 sm:$0xff]   ;;  %v4924_v59 = vld [vmem:[#allocation8 + $0x4] ss:$16 sps:$4 sm:$0xff]  }
 0x1b3   :  { %v718_v57 = vpack.c.bf16 %v716_v56, %v714_v55  ;;  %v4927_v60 = vld [vmem:[#allocation8 + $0x24] ss:$16 sps:$4 sm:$0xff]   ;;  %v4925_v61 = vld [vmem:[#allocation8 + $0x20] ss:$16 sps:$4 sm:$0xff]  }
 0x1b4   :  { %v4930_v62 = vld [vmem:[#allocation8 + $0x44] ss:$16 sps:$4 sm:$0xff]   ;;  %v4928_v63 = vld [vmem:[#allocation8 + $0x40] ss:$16 sps:$4 sm:$0xff]  }
 0x1b5   :  { %4573 = vmatpush3.bf16.msra.mxu0 %v4870_v5  ;;  %v4933_v1 = vld [vmem:[#allocation8 + $0x64] ss:$16 sps:$4 sm:$0xff]   ;;  %v4931_v2 = vld [vmem:[#allocation8 + $0x60] ss:$16 sps:$4 sm:$0xff]  }
 0x1b6   :  { %4574 = vmatprep.subr.bf16.mxu0 %v8099_v0  ;;  %v4936_v3 = vld [vmem:[#allocation8 + $0x84] ss:$16 sps:$4 sm:$0xff]   ;;  %v4934_v4 = vld [vmem:[#allocation8 + $0x80] ss:$16 sps:$4 sm:$0xff]  }
 0x1b7   :  { %v4939_v5 = vld [vmem:[#allocation8 + $0xa4] ss:$16 sps:$4 sm:$0xff]   ;;  %v4943_v9 = vld [vmem:[#allocation8 + $0xe0] ss:$16 sps:$4 sm:$0xff]  }
 0x1b8   :  { %v4957_v21 = vld [vmem:[#allocation8 + $0x164] ss:$16 sps:$4 sm:$0xff]   ;;  %v4982_v56 = vld [vmem:[#allocation8 + $0x280] ss:$16 sps:$4 sm:$0xff]  }
 0x1b9   :  { %4575 = vmatpush3.bf16.msra.mxu0 %v4871_v6  ;;  %v4937_v6 = vld [vmem:[#allocation8 + $0xa0] ss:$16 sps:$4 sm:$0xff]   ;;  %v4984_v55 = vld [vmem:[#allocation8 + $0x284] ss:$16 sps:$4 sm:$0xff]  }
 0x1ba   :  { %4576 = vmatprep.subr.bf16.mxu0 %v8099_v0 }
 0x1bd   :  { %4577 = vmatpush3.bf16.msra.mxu0 %v4872_v7  ;;  %v4942_v7 = vld [vmem:[#allocation8 + $0xc4] ss:$16 sps:$4 sm:$0xff]  }
 0x1be   :  { %4578 = vmatprep.subr.bf16.mxu0 %v8099_v0 }
 0x1c1   :  { %4579 = vmatpush3.bf16.msra.mxu0 %v4873_v8  ;;  %v4940_v8 = vld [vmem:[#allocation8 + $0xc0] ss:$16 sps:$4 sm:$0xff]  }
 0x1c4   :  { %4581 = vmatmul.mubr.bf16.vlgmr.msra.gmra.mrb[0].mxu0 %v350_v10  ;;  %v4945_v10 = vld [vmem:[#allocation8 + $0xe4] ss:$16 sps:$4 sm:$0xff]  }
 0x1c5   :  { %1009 = vmatprep.mubr.f32.mxu0 %v8099_v0 }
 0x297   :  { %v439_v12 = vpop.f32.mrb[0].mxu0 }
 0x298   :  { %v440_v13 = vadd.f32 %v4333_v11, %v439_v12  ;;  %v4582_v14 = vpop.f32.mrb[1].mxu0  ;;  %v4948_v11 = vld [vmem:[#allocation8 + $0x104] ss:$16 sps:$4 sm:$0xff]   ;;  %v4946_v12 = vld [vmem:[#allocation8 + $0x100] ss:$16 sps:$4 sm:$0xff]  }
 0x299   :  { %v442_v15 = vpop.f32.mrb[2].mxu0  ;;  %v4949_v14 = vld [vmem:[#allocation8 + $0x120] ss:$16 sps:$4 sm:$0xff]  }
 0x29a   :  { %v6121_v16 = vmax.f32 %v440_v13, 0.0  ;;  %v4583_v17 = vpop.f32.mrb[3].mxu0  ;;  %v4951_v13 = vld [vmem:[#allocation8 + $0x124] ss:$16 sps:$4 sm:$0xff]  }
 0x29c   :  { %544 = vrot.lane.b32.xlu1 %v6121_v16, %s5639_s9  ;;  %4585 = vmatpush3.msra.mxu1 %v6121_v16 }
 0x29d   :  { %4587 = vmatmul.mubr.msk.f32.vlgmr.msra.gmra.mrb[0].mxu1 %vm446_vm1, %v348_v18  ;;  %4589 = vmatprep.subr.mxu1 %v8099_v0  ;;  %v4954_v18 = vld [vmem:[#allocation8 + $0x144] ss:$16 sps:$4 sm:$0xff]  }
 0x29e   :  { %4590 = vmatpush3.msra.mxu1 %v6121_v16  ;;  %4591 = vmatprep.mubr.msk.f32.mxu1 %vm5650_vm0, %v8099_v0 }
 0x29f   :  { %891 = vmatprep.subr.bf16.mxu1 %v4876_v19  ;;  %v4952_v19 = vld [vmem:[#allocation8 + $0x140] ss:$16 sps:$4 sm:$0xff]  }
 0x2a0   :  { %560 = vrot.lane.b32.xlu1 %v6121_v16, %s5651_s15 }
 0x2a1   :  { %4592 = vmatmul.mubr.msk.f32.vlgmr.msra.gmra.mrb[2].mxu1 %vm446_vm1, %v347_v23  ;;  %v4955_v23 = vld [vmem:[#allocation8 + $0x160] ss:$16 sps:$4 sm:$0xff]  }
 0x2a2   :  { %892 = vmatpush1.bf16.msra.mxu1 %v4874_v22  ;;  %923 = vmatprep.mubr.bf16.mxu1 %v719_v24  ;;  %v4960_v24 = vld [vmem:[#allocation8 + $0x184] ss:$16 sps:$4 sm:$0xff]  }
 0x2a3   :  { %893 = vmatprep.subr.bf16.mxu1 %v4879_v25  ;;  %v4958_v25 = vld [vmem:[#allocation8 + $0x180] ss:$16 sps:$4 sm:$0xff]  }
 0x2a6   :  { %894 = vmatpush1.bf16.msra.mxu1 %v4877_v26  ;;  %v4961_v26 = vld [vmem:[#allocation8 + $0x1a0] ss:$16 sps:$4 sm:$0xff]  }
 0x2a7   :  { %895 = vmatprep.subr.bf16.mxu1 %v4882_v27  ;;  %v4963_v27 = vld [vmem:[#allocation8 + $0x1a4] ss:$16 sps:$4 sm:$0xff]  }
 0x2aa   :  { %896 = vmatpush1.bf16.msra.mxu1 %v4880_v28  ;;  %v4966_v28 = vld [vmem:[#allocation8 + $0x1c4] ss:$16 sps:$4 sm:$0xff]  }
 0x2ab   :  { %897 = vmatprep.subr.bf16.mxu1 %v4885_v29  ;;  %v1723_v29 = vld [vmem:[#allocation2 + $0x8] sm:$0xff] }
 0x2ae   :  { %898 = vmatpush1.bf16.msra.mxu1 %v4883_v30  ;;  %v1727_v30 = vld [vmem:[#allocation2 + $0x28] sm:$0xff] }
 0x2af   :  { %899 = vmatprep.subr.bf16.mxu1 %v4888_v31  ;;  %v6146_v31 = vpack.c.bf16 %v1727_v30, %v1723_v29 }
 0x2b2   :  { %900 = vmatpush1.bf16.msra.mxu1 %v4886_v32  ;;  %v4964_v32 = vld [vmem:[#allocation8 + $0x1c0] ss:$16 sps:$4 sm:$0xff]  }
 0x2b3   :  { %901 = vmatprep.subr.bf16.mxu1 %v4891_v33  ;;  %v4969_v33 = vld [vmem:[#allocation8 + $0x1e4] ss:$16 sps:$4 sm:$0xff]  }
 0x2b6   :  { %902 = vmatpush1.bf16.msra.mxu1 %v4889_v34  ;;  %v4967_v34 = vld [vmem:[#allocation8 + $0x1e0] ss:$16 sps:$4 sm:$0xff]  }
 0x2b7   :  { %903 = vmatprep.subr.bf16.mxu1 %v4894_v35  ;;  %v1722_v35 = vld [vmem:[#allocation2] sm:$0xff] }
 0x2ba   :  { %904 = vmatpush1.bf16.msra.mxu1 %v4892_v36  ;;  %v1726_v36 = vld [vmem:[#allocation2 + $0x20] sm:$0xff] }
 0x2bb   :  { %905 = vmatprep.subr.bf16.mxu1 %v4897_v37  ;;  %v4972_v37 = vld [vmem:[#allocation8 + $0x204] ss:$16 sps:$4 sm:$0xff]  }
 0x2be   :  { %906 = vmatpush1.bf16.msra.mxu1 %v4895_v38  ;;  %v6149_v38 = vpack.c.bf16 %v1726_v36, %v1722_v35  ;;  %v5011_v35 = vld [vmem:[#allocation8 + $0x3a4] ss:$16 sps:$4 sm:$0xff]   ;;  %v5009_v36 = vld [vmem:[#allocation8 + $0x3a0] ss:$16 sps:$4 sm:$0xff]  }
 0x2bf   :  { %907 = vmatprep.subr.bf16.mxu1 %v4900_v39  ;;  %v4970_v39 = vld [vmem:[#allocation8 + $0x200] ss:$16 sps:$4 sm:$0xff]  }
 0x2c2   :  { %908 = vmatpush1.bf16.msra.mxu1 %v4898_v40  ;;  %v1731_v40 = vld [vmem:[#allocation2 + $0x48] sm:$0xff] }
 0x2c3   :  { %909 = vmatprep.subr.bf16.mxu1 %v4903_v41  ;;  %v4975_v41 = vld [vmem:[#allocation8 + $0x224] ss:$16 sps:$4 sm:$0xff]  }
 0x2c6   :  { %910 = vmatpush1.bf16.msra.mxu1 %v4901_v42  ;;  %v1735_v42 = vld [vmem:[#allocation2 + $0x68] sm:$0xff] }
 0x2c7   :  { %911 = vmatprep.subr.bf16.mxu1 %v4906_v43  ;;  %v6151_v43 = vpack.c.bf16 %v1735_v42, %v1731_v40  ;;  %v5012_v40 = vld [vmem:[#allocation8 + $0x3c0] ss:$16 sps:$4 sm:$0xff]   ;;  %v5017_v42 = vld [vmem:[#allocation8 + $0x3e4] ss:$16 sps:$4 sm:$0xff]  }
 0x2ca   :  { %912 = vmatpush1.bf16.msra.mxu1 %v4904_v44  ;;  %v4973_v44 = vld [vmem:[#allocation8 + $0x220] ss:$16 sps:$4 sm:$0xff]  }
 0x2cb   :  { %913 = vmatprep.subr.bf16.mxu1 %v4909_v45  ;;  %v1730_v45 = vld [vmem:[#allocation2 + $0x40] sm:$0xff] }
 0x2ce   :  { %914 = vmatpush1.bf16.msra.mxu1 %v4907_v46  ;;  %v1734_v46 = vld [vmem:[#allocation2 + $0x60] sm:$0xff] }
 0x2cf   :  { %915 = vmatprep.subr.bf16.mxu1 %v4912_v47  ;;  %v4978_v47 = vld [vmem:[#allocation8 + $0x244] ss:$16 sps:$4 sm:$0xff]  }
 0x2d2   :  { %916 = vmatpush1.bf16.msra.mxu1 %v4910_v48  ;;  %v1725_v48 = vld [vmem:[#allocation2 + $0x18] sm:$0xff] }
 0x2d3   :  { %917 = vmatprep.subr.bf16.mxu1 %v4915_v49  ;;  %v1729_v49 = vld [vmem:[#allocation2 + $0x38] sm:$0xff] }
 0x2d6   :  { %918 = vmatpush1.bf16.msra.mxu1 %v4913_v50  ;;  %v6155_v50 = vpack.c.bf16 %v1734_v46, %v1730_v45  ;;  %v1724_v45 = vld [vmem:[#allocation2 + $0x10] sm:$0xff] }
 0x2d7   :  { %919 = vmatprep.subr.bf16.mxu1 %v4918_v51  ;;  %v4976_v51 = vld [vmem:[#allocation8 + $0x240] ss:$16 sps:$4 sm:$0xff]   ;;  %v1728_v46 = vld [vmem:[#allocation2 + $0x30] sm:$0xff] }
 0x2da   :  { %920 = vmatpush1.bf16.msra.mxu1 %v4916_v52  ;;  %v6157_v52 = vpack.c.bf16 %v1729_v49, %v1725_v48  ;;  %v1733_v48 = vld [vmem:[#allocation2 + $0x58] sm:$0xff] }
 0x2db   :  { %921 = vmatprep.subr.bf16.mxu1 %v4921_v53  ;;  %v4981_v53 = vld [vmem:[#allocation8 + $0x264] ss:$16 sps:$4 sm:$0xff]  }
 0x2dc   :  { %v1737_v49 = vld [vmem:[#allocation2 + $0x78] sm:$0xff] }
 0x2de   :  { %922 = vmatpush1.bf16.msra.mxu1 %v4919_v54  ;;  %v4979_v54 = vld [vmem:[#allocation8 + $0x260] ss:$16 sps:$4 sm:$0xff]  }
 0x2df   :  { %2407 = vmatprep.subr.bf16.mxu1 %v4924_v59  ;;  %v4990_v59 = vld [vmem:[#allocation8 + $0x2c4] ss:$16 sps:$4 sm:$0xff]  }
 0x2e1   :  { %924 = vmatmul.mubr.bf16.vlgmr.msra.gmra.mrb[4].mxu1 %v718_v57  ;;  %v4987_v57 = vld [vmem:[#allocation8 + $0x2a4] ss:$16 sps:$4 sm:$0xff]  }
 0x2e2   :  { %2408 = vmatpush1.bf16.msra.mxu1 %v4922_v58  ;;  %2439 = vmatprep.mubr.bf16.mxu1 %v6146_v31  ;;  %v4985_v58 = vld [vmem:[#allocation8 + $0x2a0] ss:$16 sps:$4 sm:$0xff]  }
 0x2e3   :  { %2409 = vmatprep.subr.bf16.mxu1 %v4927_v60  ;;  %v4988_v60 = vld [vmem:[#allocation8 + $0x2c0] ss:$16 sps:$4 sm:$0xff]  }
 0x2e6   :  { %2410 = vmatpush1.bf16.msra.mxu1 %v4925_v61  ;;  %v4993_v61 = vld [vmem:[#allocation8 + $0x2e4] ss:$16 sps:$4 sm:$0xff]  }
 0x2e7   :  { %2411 = vmatprep.subr.bf16.mxu1 %v4930_v62  ;;  %v721_v62 = vlaneseq }
 0x2ea   :  { %2412 = vmatpush1.bf16.msra.mxu1 %v4928_v63  ;;  %v4991_v63 = vld [vmem:[#allocation8 + $0x2e0] ss:$16 sps:$4 sm:$0xff]  }
 0x2eb   :  { %2413 = vmatprep.subr.bf16.mxu1 %v4933_v1  ;;  %v4996_v1 = vld [vmem:[#allocation8 + $0x304] ss:$16 sps:$4 sm:$0xff]  }
 0x2ee   :  { %2414 = vmatpush1.bf16.msra.mxu1 %v4931_v2  ;;  %v6162_v2 = vshrl.u32 %v721_v62, 7 }
 0x2ef   :  { %2415 = vmatprep.subr.bf16.mxu1 %v4936_v3  ;;  %v4994_v3 = vld [vmem:[#allocation8 + $0x300] ss:$16 sps:$4 sm:$0xff]  }
 0x2f2   :  { %2416 = vmatpush1.bf16.msra.mxu1 %v4934_v4  ;;  %v4999_v4 = vld [vmem:[#allocation8 + $0x324] ss:$16 sps:$4 sm:$0xff]  }
 0x2f3   :  { %2417 = vmatprep.subr.bf16.mxu1 %v4939_v5  ;;  %v6165_v5 = vsub.s32 0, %v6162_v2 }
 0x2f6   :  { %2418 = vmatpush1.bf16.msra.mxu1 %v4937_v6  ;;  %v708_v6 = vld [vmem:[#allocation17] sm:$0x3] }
 0x2f7   :  { %2419 = vmatprep.subr.bf16.mxu1 %v4942_v7  ;;  %v6168_v7 = vsub.s32 1, %v6162_v2 }
 0x2fa   :  { %2420 = vmatpush1.bf16.msra.mxu1 %v4940_v8  ;;  %v4997_v8 = vld [vmem:[#allocation8 + $0x320] ss:$16 sps:$4 sm:$0xff]  }
 0x2fb   :  { %2421 = vmatprep.subr.bf16.mxu1 %v4945_v10  ;;  %v724_v10 = vrot.slane %v708_v6, %v6165_v5 }
 0x2fe   :  { %2422 = vmatpush1.bf16.msra.mxu1 %v4943_v9  ;;  %v5002_v9 = vld [vmem:[#allocation8 + $0x344] ss:$16 sps:$4 sm:$0xff]  }
 0x2ff   :  { %2423 = vmatprep.subr.bf16.mxu1 %v4948_v11  ;;  %v728_v11 = vrot.slane %v708_v6, %v6168_v7  ;;  %v4346_v6 = vld [vmem:[#allocation25 + $0x3] ss:$0 sm:$0xff] }
 0x302   :  { %2424 = vmatpush1.bf16.msra.mxu1 %v4946_v12  ;;  %v5000_v12 = vld [vmem:[#allocation8 + $0x340] ss:$16 sps:$4 sm:$0xff]  }
 0x303   :  { %2425 = vmatprep.subr.bf16.mxu1 %v4951_v13  ;;  %v5005_v13 = vld [vmem:[#allocation8 + $0x364] ss:$16 sps:$4 sm:$0xff]  }
 0x306   :  { %2426 = vmatpush1.bf16.msra.mxu1 %v4949_v14 }
 0x307   :  { %2427 = vmatprep.subr.bf16.mxu1 %v4954_v18 }
 0x30a   :  { %2428 = vmatpush1.bf16.msra.mxu1 %v4952_v19 }
 0x30b   :  { %2429 = vmatprep.subr.bf16.mxu1 %v4957_v21 }
 0x30e   :  { %2430 = vmatpush1.bf16.msra.mxu1 %v4955_v23 }
 0x30f   :  { %2431 = vmatprep.subr.bf16.mxu1 %v4960_v24 }
 0x312   :  { %2432 = vmatpush1.bf16.msra.mxu1 %v4958_v25 }
 0x313   :  { %2433 = vmatprep.subr.bf16.mxu1 %v4963_v27 }
 0x316   :  { %2434 = vmatpush1.bf16.msra.mxu1 %v4961_v26  ;;  %v5008_v26 = vld [vmem:[#allocation8 + $0x384] ss:$16 sps:$4 sm:$0xff]  }
 0x317   :  { %2435 = vmatprep.subr.bf16.mxu1 %v4966_v28 }
 0x31a   :  { %2436 = vmatpush1.bf16.msra.mxu1 %v4964_v32  ;;  %v5006_v32 = vld [vmem:[#allocation8 + $0x380] ss:$16 sps:$4 sm:$0xff]  }
 0x31b   :  { %2437 = vmatprep.subr.bf16.mxu1 %v4969_v33 }
 0x31e   :  { %2438 = vmatpush1.bf16.msra.mxu1 %v4967_v34 }
 0x31f   :  { %2460 = vmatprep.subr.bf16.mxu1 %v4972_v37  ;;  %v712_v37 = vld [vmem:[#allocation23] sm:$0xff] }
 0x321   :  { %2440 = vmatmul.mubr.bf16.vlgmr.msra.gmra.mrb[8].mxu1 %v6149_v38 }
 0x322   :  { %2461 = vmatpush1.bf16.msra.mxu1 %v4970_v39  ;;  %2449 = vmatprep.mubr.bf16.mxu1 %v6151_v43  ;;  %v5014_v39 = vld [vmem:[#allocation8 + $0x3c4] ss:$16 sps:$4 sm:$0xff]  }
 0x323   :  { %2462 = vmatprep.subr.bf16.mxu1 %v4975_v41  ;;  %v713_v41 = vld [vmem:[#allocation23 + $0x8] sm:$0xff] }
 0x326   :  { %2463 = vmatpush1.bf16.msra.mxu1 %v4973_v44  ;;  %v5015_v44 = vld [vmem:[#allocation8 + $0x3e0] ss:$16 sps:$4 sm:$0xff]  }
 0x327   :  { %2464 = vmatprep.subr.bf16.mxu1 %v4978_v47  ;;  %v710_v47 = vld [vmem:[#allocation22] sm:$0xff] }
 0x329   :  { %2450 = vmatmul.mubr.bf16.gmra.mrb[12].mxu1 %v6155_v50 }
 0x32a   :  { %2465 = vmatpush1.bf16.msra.mxu1 %v4976_v51  ;;  %2492 = vmatprep.mubr.bf16.mxu1 %v6157_v52  ;;  %v6204_v51 = vpack.c.bf16 %v1728_v46, %v1724_v45  ;;  %v1386_v46 = vld [vmem:[#allocation31] sm:$0xff] }
 0x32b   :  { %2466 = vmatprep.subr.bf16.mxu1 %v4981_v53  ;;  %v6207_v53 = vpack.c.bf16 %v1737_v49, %v1733_v48  ;;  %v1391_v49 = vld [vmem:[#allocation31 + $0x28] sm:$0xff] }
 0x32e   :  { %2467 = vmatpush1.bf16.msra.mxu1 %v4979_v54  ;;  %v711_v54 = vld [vmem:[#allocation22 + $0x8] sm:$0xff] }
 0x32f   :  { %2468 = vmatprep.subr.bf16.mxu1 %v4984_v55  ;;  %v1384_v55 = vld [vmem:[%s8077_s23] sm:$0xff] }
 0x332   :  { %2469 = vmatpush1.bf16.msra.mxu1 %v4982_v56  ;;  %v1732_v56 = vld [vmem:[#allocation2 + $0x50] sm:$0xff] }
 0x333   :  { %2470 = vmatprep.subr.bf16.mxu1 %v4987_v57  ;;  %v1736_v57 = vld [vmem:[#allocation2 + $0x70] sm:$0xff] }
 0x336   :  { %2471 = vmatpush1.bf16.msra.mxu1 %v4985_v58  ;;  %v6217_v58 = vpack.c.bf16 %v1736_v57, %v1732_v56  ;;  %v1390_v56 = vld [vmem:[#allocation31 + $0x20] sm:$0xff]  ;;  %v1392_v57 = vld [vmem:[#allocation31 + $0x30] sm:$0xff] }
 0x337   :  { %2472 = vmatprep.subr.bf16.mxu1 %v4990_v59  ;;  %v4343_v59 = vld [vmem:[#allocation25] ss:$0 sm:$0xff] }
 0x33a   :  { %2473 = vmatpush1.bf16.msra.mxu1 %v4988_v60  ;;  %v4344_v60 = vld [vmem:[#allocation25 + $0x1] ss:$0 sm:$0xff] }
 0x33b   :  { %2474 = vmatprep.subr.bf16.mxu1 %v4993_v61 }
 0x33e   :  { %2475 = vmatpush1.bf16.msra.mxu1 %v4991_v63 }
 0x33f   :  { %2476 = vmatprep.subr.bf16.mxu1 %v4996_v1  ;;  %v545_v1 = vpop.permute.xlu1 %544 }
 0x342   :  { %2477 = vmatpush1.bf16.msra.mxu1 %v4994_v3  ;;  %v4345_v3 = vld [vmem:[#allocation25 + $0x2] ss:$0 sm:$0xff] }
 0x343   :  { %2478 = vmatprep.subr.bf16.mxu1 %v4999_v4 }
 0x346   :  { %2479 = vmatpush1.bf16.msra.mxu1 %v4997_v8 }
 0x347   :  { %2480 = vmatprep.subr.bf16.mxu1 %v5002_v9 }
 0x34a   :  { %2481 = vmatpush1.bf16.msra.mxu1 %v5000_v12  ;;  %v551_v12 = vmul.f32 %v4346_v6, %v545_v1  ;;  %v1401_v6 = vld [vmem:[#allocation31 + $0x78] sm:$0xff] }
 0x34b   :  { %2482 = vmatprep.subr.bf16.mxu1 %v5005_v13 }
 0x370   :  { %v6134_v15 = vpop.f32.mrb[0].mxu1 }
 0x371   :  { %520 = vrot.lane.b32.xlu0 %v6134_v15, %s5639_s9  ;;  %v4588_v17 = vpop.f32.mrb[1].mxu1  ;;  %v533_v4 = vmul.f32 %v4344_v60, %v6134_v15  ;;  %v1395_v60 = vld [vmem:[#allocation31 + $0x48] sm:$0xff] }
 0x374   :  { %v6138_v20 = vpop.f32.mrb[2].mxu1 }
 0x375   :  { %535 = vrot.lane.b32.xlu0 %v6134_v15, %s5651_s15  ;;  %v4593_v22 = vpop.f32.mrb[3].mxu1  ;;  %658 = vrot.lane.b32.xlu1 %v6138_v20, %s5651_s15  ;;  %v4352_v15 = vld [vmem:[#allocation25 + $0x8] ss:$0 sm:$0xff] }
 0x376   :  { %v5003_v22 = vld [vmem:[#allocation8 + $0x360] ss:$16 sps:$4 sm:$0xff]  }
 0x377   :  { %2483 = vmatpush1.bf16.msra.mxu1 %v5003_v22 }
 0x378   :  { %2484 = vmatprep.subr.bf16.mxu1 %v5008_v26 }
 0x379   :  { %642 = vrot.lane.b32.xlu0 %v6138_v20, %s5639_s9 }
 0x37b   :  { %2485 = vmatpush1.bf16.msra.mxu1 %v5006_v32 }
 0x37c   :  { %2486 = vmatprep.subr.bf16.mxu1 %v5011_v35 }
 0x37f   :  { %2487 = vmatpush1.bf16.msra.mxu1 %v5009_v36 }
 0x380   :  { %2488 = vmatprep.subr.bf16.mxu1 %v5014_v39  ;;  %v4353_v39 = vld [vmem:[%s8072_s18] ss:$0 sm:$0xff] }
 0x383   :  { %2489 = vmatpush1.bf16.msra.mxu1 %v5012_v40 }
 0x384   :  { %2490 = vmatprep.subr.bf16.mxu1 %v5017_v42 }
 0x387   :  { %2491 = vmatpush1.bf16.msra.mxu1 %v5015_v44  ;;  %v1389_v44 = vld [vmem:[#allocation31 + $0x18] sm:$0xff] }
 0x38a   :  { %2493 = vmatmul.mubr.bf16.vlgmr.msra.gmra.mrb[8].mxu1 %v6204_v51 }
 0x38b   :  { %2502 = vmatprep.mubr.bf16.mxu1 %v6207_v53 }
 0x392   :  { %2503 = vmatmul.mubr.bf16.gmra.mrb[12].mxu1 %v6217_v58 }
 0x393   :  { %2712 = vmatprep.mubr.f32.mxu1 %v8099_v0 }
 0x3b4   :  { %v925_v14 = vpop.f32.mrb[4].mxu1 }
 0x3b5   :  { %v926_v17 = vadd.f32 %v925_v14, %v724_v10  ;;  %v927_v18 = vpop.f32.mrb[5].mxu1  ;;  %v4348_v14 = vld [vmem:[#allocation25 + $0x5] ss:$0 sm:$0xff] }
 0x3b6   :  { %v928_v19 = vadd.f32 %v927_v18, %v728_v11  ;;  %v929_v21 = vpop.f32.mrb[6].mxu1  ;;  %v4350_v18 = vld [vmem:[#allocation25 + $0x6] ss:$0 sm:$0xff] }
 0x3b7   :  { %v6172_v23 = vmax.f32 %v926_v17, 0.0  ;;  %v930_v24 = vadd.f32 %v929_v21, %v724_v10  ;;  %v931_v25 = vpop.f32.mrb[7].mxu1  ;;  %v561_v17 = vpop.permute.xlu1 %560 }
 0x3b8   :  { %v6174_v27 = vmax.f32 %v928_v19, 0.0  ;;  %v932_v28 = vadd.f32 %v931_v25, %v728_v11  ;;  %v4347_v11 = vld [vmem:[#allocation25 + $0x4] ss:$0 sm:$0xff] }
 0x3b9   :  { %v6176_v29 = vmax.f32 %v930_v24, 0.0  ;;  %1108 = vrot.lane.b32.xlu0 %v6172_v23, %s5639_s9  ;;  %v558_v22 = vmul.f32 %v4347_v11, %v6121_v16  ;;  %v567_v24 = vmul.f32 %v4348_v14, %v561_v17  ;;  %v1385_v16 = vld [vmem:[%s8077_s23 + $0x8] sm:$0xff] }
 0x3ba   :  { %v6180_v30 = vmax.f32 %v932_v28, 0.0  ;;  %v4351_v28 = vld [vmem:[#allocation25 + $0x7] ss:$0 sm:$0xff]  ;;  %v1400_v11 = vld [vmem:[#allocation31 + $0x70] sm:$0xff] }
 0x3bb   :  { %v4601_v33 = vpack.c.bf16 %v6176_v29, %v6172_v23  ;;  %1110 = vrot.lane.b32.xlu1 %v6176_v29, %s5639_s9 }
 0x3bc   :  { %v4599_v34 = vpack.c.bf16 %v6180_v30, %v6174_v27 }
 0x3bd   :  { %1162 = vrot.lane.b32.xlu0 %v6172_v23, %s5651_s15 }
 0x3be   :  { %4600 = vmatprep.subr.bf16.mxu0 %v4599_v34 }
 0x3bf   :  { %4602 = vmatpush1.bf16.msra.mxu0 %v4601_v33  ;;  %1164 = vrot.lane.b32.xlu1 %v6176_v29, %s5651_s15 }
 0x3c0   :  { %4604 = vmatprep.subr.bf16.mxu0 %v4599_v34  ;;  %v656_v34 = vmul.f32 %v4351_v28, %v6138_v20  ;;  %v1387_v20 = vld [vmem:[#allocation31 + $0x8] sm:$0xff]  ;;  %v1408_v28 = vld [vmem:[#allocation31 + $0xb0] sm:$0xff] }
 0x3c1   :  { %1112 = vrot.lane.b32.xlu0 %v6174_v27, %s5639_s9  ;;  %v4607_v45 = vpack.c.bf16 %v1389_v44, %v1387_v20  ;;  %v5020_v44 = vld [vmem:[#allocation8 + $0xc] ss:$16 sps:$4 sm:$0xff]  }
 0x3c2   :  { %4386 = vmatmul.mubr.msk.f32.vlgmr.msra.gmra.mrb[4].mxu0 %vm938_vm2, %v712_v37 }
 0x3c3   :  { %1015 = vmatprep.mubr.f32.mxu0 %v8099_v0  ;;  %4606 = vmatpush1.bf16.msra.mxu0 %v4601_v33 }
 0x3c4   :  { %1114 = vrot.lane.b32.xlu1 %v6180_v30, %s5639_s9 }
 0x3c5   :  { %1166 = vrot.lane.b32.xlu0 %v6174_v27, %s5651_s15 }
 0x3c6   :  { %4387 = vmatmul.mubr.msk.f32.gmra.mrb[6].mxu0 %vm938_vm2, %v713_v41 }
 0x3c7   :  { %1265 = vmatprep.mubr.f32.mxu0 %v8099_v0 }
 0x3c8   :  { %1168 = vrot.lane.b32.xlu1 %v6180_v30, %s5651_s15 }
 0x3ca   :  { %4388 = vmatmul.mubr.msk.f32.vlgmr.msra.gmra.mrb[8].mxu0 %vm938_vm2, %v710_v47  ;;  %v1388_v47 = vld [vmem:[#allocation31 + $0x10] sm:$0xff] }
 0x3cb   :  { %1271 = vmatprep.mubr.f32.mxu0 %v8099_v0  ;;  %v4609_v48 = vpack.c.bf16 %v1388_v47, %v1386_v46 }
 0x3ce   :  { %4389 = vmatmul.mubr.msk.f32.gmra.mrb[10].mxu0 %vm938_vm2, %v711_v54  ;;  %v1393_v54 = vld [vmem:[#allocation31 + $0x38] sm:$0xff] }
 0x3cf   :  { %4596 = vmatprep.mubr.msk.f32.mxu0 %vm446_vm1, %v1384_v55  ;;  %v4611_v55 = vpack.c.bf16 %v1393_v54, %v1391_v49 }
 0x3e3   :  { %v521_v61 = vpop.permute.xlu0 %520 }
 0x3e4   :  { %v527_v63 = vmul.f32 %v4343_v59, %v521_v61  ;;  %v4613_v59 = vpack.c.bf16 %v1392_v57, %v1390_v56  ;;  %v1397_v61 = vld [vmem:[#allocation31 + $0x58] sm:$0xff] }
 0x3e5   :  { %v4615_v1 = vpack.c.bf16 %v1397_v61, %v1395_v60 }
 0x3e6   :  { %v534_v9 = vadd.f32 %v533_v4, %v527_v63  ;;  %v1394_v63 = vld [vmem:[#allocation31 + $0x40] sm:$0xff]  ;;  %v1399_v4 = vld [vmem:[#allocation31 + $0x68] sm:$0xff] }
 0x3e7   :  { %v536_v8 = vpop.permute.xlu0 %535  ;;  %v659_v33 = vpop.permute.xlu1 %658 }
 0x3e8   :  { %v542_v10 = vmul.f32 %v4345_v3, %v536_v8  ;;  %v665_v36 = vmul.f32 %v4352_v15, %v659_v33  ;;  %v1396_v3 = vld [vmem:[#allocation31 + $0x50] sm:$0xff]  ;;  %v1413_v15 = vld [vmem:[#allocation31 + $0xd8] sm:$0xff] }
 0x3e9   :  { %v4617_v8 = vpack.c.bf16 %v1396_v3, %v1394_v63 }
 0x3ea   :  { %v543_v13 = vadd.f32 %v542_v10, %v534_v9  ;;  %v4619_v9 = vpack.c.bf16 %v1401_v6, %v1399_v4  ;;  %v1398_v10 = vld [vmem:[#allocation31 + $0x60] sm:$0xff] }
 0x3eb   :  { %v643_v19 = vpop.permute.xlu0 %642  ;;  %v4621_v14 = vpack.c.bf16 %v1400_v11, %v1398_v10 }
 0x3ec   :  { %v552_v21 = vadd.f32 %v551_v12, %v543_v13  ;;  %v649_v26 = vmul.f32 %v4350_v18, %v643_v19  ;;  %v1403_v12 = vld [vmem:[#allocation31 + $0x88] sm:$0xff]  ;;  %v1405_v13 = vld [vmem:[#allocation31 + $0x98] sm:$0xff]  ;;  %v1402_v18 = vld [vmem:[#allocation31 + $0x80] sm:$0xff] }
 0x3ed   :  { %v4623_v17 = vpack.c.bf16 %v1405_v13, %v1403_v12  ;;  %v1404_v19 = vld [vmem:[#allocation31 + $0x90] sm:$0xff] }
 0x3ee   :  { %v559_v25 = vadd.f32 %v558_v22, %v552_v21  ;;  %v1407_v21 = vld [vmem:[#allocation31 + $0xa8] sm:$0xff]  ;;  %v1409_v22 = vld [vmem:[#allocation31 + $0xb8] sm:$0xff] }
 0x3f0   :  { %v568_v32 = vadd.f32 %v567_v24, %v559_v25  ;;  %v4625_v24 = vpack.c.bf16 %v1404_v19, %v1402_v18  ;;  %v4627_v25 = vpack.c.bf16 %v1409_v22, %v1407_v21 }
 0x3f2   :  { %v650_v35 = vadd.f32 %v649_v26, %v568_v32  ;;  %v1406_v26 = vld [vmem:[#allocation31 + $0xa0] sm:$0xff]  ;;  %v1411_v32 = vld [vmem:[#allocation31 + $0xc8] sm:$0xff] }
 0x3f3   :  { %v4629_v33 = vpack.c.bf16 %v1408_v28, %v1406_v26 }
 0x3f4   :  { %v657_v37 = vadd.f32 %v656_v34, %v650_v35  ;;  %v4631_v34 = vpack.c.bf16 %v1413_v15, %v1411_v32  ;;  %v1410_v35 = vld [vmem:[#allocation31 + $0xc0] sm:$0xff] }
 0x3f6   :  { %v666_v40 = vadd.f32 %v665_v36, %v657_v37  ;;  %v1412_v36 = vld [vmem:[#allocation31 + $0xd0] sm:$0xff]  ;;  %v1415_v37 = vld [vmem:[#allocation31 + $0xe8] sm:$0xff] }
 0x3f8   :  { %v673_v41 = vadd.f32 %v4353_v39, %v666_v40  ;;  %v1417_v39 = vld [vmem:[#allocation31 + $0xf8] sm:$0xff]  ;;  %v4633_v40 = vpack.c.bf16 %v1412_v36, %v1410_v35 }
 0x3fa   :  { %v674_v42 = vmax.f32 %v673_v41, 0.0  ;;  %v4635_v41 = vpack.c.bf16 %v1417_v39, %v1415_v37  ;;  %v6320_v37 = vld [vmem:[#allocation14] sm:$0xff]  ;;  %v6329_v39 = vld [vmem:[#allocation14 + $0x8] sm:$0xff] }
 0x3fb   :  { %8235 = vst [vmem:[#allocation57_spill] sm:$0xff] %v6320_v37  ;;  %8236 = vst [vmem:[#allocation58_spill] sm:$0xff] %v6329_v39 }
 0x3fc   :  { %4594 = vmatprep.subr.mxu0 %v674_v42  ;;  %675 = vst [vmem:[#allocation35] sm:$0xff] %v674_v42 }
 0x3fd   :  { %4595 = vmatpush3.msra.mxu0 %v674_v42  ;;  %v1414_v42 = vld [vmem:[#allocation31 + $0xe0] sm:$0xff] }
 0x3fe   :  { %4597 = vmatmul.mubr.msk.f32.vlgmr.msra.gmra.mrb[12].mxu0 %vm446_vm1, %v1385_v16  ;;  %4608 = vmatprep.subr.bf16.mxu0 %v4607_v45  ;;  %v1416_v16 = vld [vmem:[#allocation31 + $0xf0] sm:$0xff] }
 0x3ff   :  { %1563 = vmatprep.mubr.f32.mxu0 %v8099_v0  ;;  %4610 = vmatpush1.bf16.msra.mxu0 %v4609_v48  ;;  %v4637_v20 = vpack.c.bf16 %v1416_v16, %v1414_v42  ;;  %v5018_v42 = vld [vmem:[#allocation8 + $0x8] ss:$16 sps:$4 sm:$0xff]  }
 0x400   :  { %4612 = vmatprep.subr.bf16.mxu0 %v4611_v55 }
 0x403   :  { %4614 = vmatpush1.bf16.msra.mxu0 %v4613_v59  ;;  %v6262_v59 = vld [vmem:[#allocation10] sm:$0xf] }
 0x404   :  { %4616 = vmatprep.subr.bf16.mxu0 %v4615_v1  ;;  %8226 = vst [vmem:[#allocation48_spill] sm:$0xff] %v6262_v59  ;;  %v1750_v61 = vrot.slane %v6262_v59, %v6165_v5  ;;  %v1754_v63 = vrot.slane %v6262_v59, %v6168_v7 }
 0x407   :  { %4618 = vmatpush1.bf16.msra.mxu0 %v4617_v8 }
 0x408   :  { %4620 = vmatprep.subr.bf16.mxu0 %v4619_v9 }
 0x40b   :  { %4622 = vmatpush1.bf16.msra.mxu0 %v4621_v14 }
 0x40c   :  { %4624 = vmatprep.subr.bf16.mxu0 %v4623_v17 }
 0x40f   :  { %4626 = vmatpush1.bf16.msra.mxu0 %v4625_v24 }
 0x410   :  { %4628 = vmatprep.subr.bf16.mxu0 %v4627_v25 }
 0x413   :  { %4630 = vmatpush1.bf16.msra.mxu0 %v4629_v33 }
 0x414   :  { %4632 = vmatprep.subr.bf16.mxu0 %v4631_v34 }
 0x417   :  { %4634 = vmatpush1.bf16.msra.mxu0 %v4633_v40  ;;  %v1720_v40 = vld [vmem:[#allocation14 + $0x10] sm:$0xff] }
 0x418   :  { %4636 = vmatprep.subr.bf16.mxu0 %v4635_v41  ;;  %v1721_v41 = vld [vmem:[#allocation14 + $0x18] sm:$0xff] }
 0x41b   :  { %4638 = vmatpush1.bf16.msra.mxu0 %v4637_v20  ;;  %v5023_v20 = vld [vmem:[#allocation8 + $0x2c] ss:$16 sps:$4 sm:$0xff]  }
 0x41c   :  { %2513 = vmatprep.subr.bf16.mxu0 %v5020_v44 }
 0x45d   :  { %v2494_v57 = vpop.f32.mrb[8].mxu1 }
 0x45e   :  { %v2496_v60 = vpop.f32.mrb[9].mxu1  ;;  %v4803_v3 = vadd.f32 %v2494_v57, %v1750_v61  ;;  %v5021_v57 = vld [vmem:[#allocation8 + $0x28] ss:$16 sps:$4 sm:$0xff]  }
 0x45f   :  { %v2498_v1 = vpop.f32.mrb[10].mxu1  ;;  %v4804_v4 = vadd.f32 %v2496_v60, %v1754_v63  ;;  %v5026_v60 = vld [vmem:[#allocation8 + $0x4c] ss:$16 sps:$4 sm:$0xff]  }
 0x460   :  { %v2500_v6 = vpop.f32.mrb[11].mxu1  ;;  %v6272_v10 = vmax.f32 %v4803_v3, 0.0  ;;  %v4805_v12 = vadd.f32 %v2498_v1, %v1750_v61  ;;  %v5027_v1 = vld [vmem:[#allocation8 + $0x68] ss:$16 sps:$4 sm:$0xff]   ;;  %v5032_v3 = vld [vmem:[#allocation8 + $0x8c] ss:$16 sps:$4 sm:$0xff]  }
 0x461   :  { %v4806_v8 = vadd.f32 %v2500_v6, %v1754_v63  ;;  %v6274_v11 = vmax.f32 %v4804_v4, 0.0  ;;  %v5030_v4 = vld [vmem:[#allocation8 + $0x88] ss:$16 sps:$4 sm:$0xff]   ;;  %v5035_v6 = vld [vmem:[#allocation8 + $0xac] ss:$16 sps:$4 sm:$0xff]  }
 0x462   :  { %8227 = vst [vmem:[#allocation49_spill] sm:$0xff] %v6272_v10  ;;  %v6282_v21 = vmax.f32 %v4805_v12, 0.0  ;;  %v5036_v12 = vld [vmem:[#allocation8 + $0xc8] ss:$16 sps:$4 sm:$0xff]  }
 0x463   :  { %8228 = vst [vmem:[#allocation50_spill] sm:$0xff] %v6274_v11  ;;  %v6280_v17 = vmax.f32 %v4806_v8, 0.0  ;;  %v5033_v8 = vld [vmem:[#allocation8 + $0xa8] ss:$16 sps:$4 sm:$0xff]  }
 0x464   :  { %8230 = vst [vmem:[#allocation52_spill] sm:$0xff] %v6282_v21  ;;  %v6294_v15 = vpack.c.bf16 %v6282_v21, %v6272_v10 }
 0x465   :  { %v2504_v9 = vpop.f32.mrb[12].mxu1  ;;  %8229 = vst [vmem:[#allocation51_spill] sm:$0xff] %v6280_v17  ;;  %v6288_v26 = vpack.c.bf16 %v6280_v17, %v6274_v11 }
 0x466   :  { %v4807_v13 = vadd.f32 %v2504_v9, %v1750_v61  ;;  %v2506_v14 = vpop.f32.mrb[13].mxu1  ;;  %v5038_v9 = vld [vmem:[#allocation8 + $0xcc] ss:$16 sps:$4 sm:$0xff]  }
 0x467   :  { %v4808_v18 = vadd.f32 %v2506_v14, %v1754_v63  ;;  %v2508_v19 = vpop.f32.mrb[14].mxu1  ;;  %4640 = vmatprep.subr.bf16.mxu1 %v6288_v26  ;;  %v5044_v14 = vld [vmem:[#allocation8 + $0x10c] ss:$16 sps:$4 sm:$0xff]  }
 0x468   :  { %v2510_v22 = vpop.f32.mrb[15].mxu1  ;;  %v6290_v28 = vmax.f32 %v4807_v13, 0.0  ;;  %v4809_v32 = vadd.f32 %v2508_v19, %v1750_v61  ;;  %4642 = vmatpush1.bf16.msra.mxu1 %v6294_v15  ;;  %v5024_v61 = vld [vmem:[#allocation8 + $0x48] ss:$16 sps:$4 sm:$0xff]   ;;  %v5041_v13 = vld [vmem:[#allocation8 + $0xec] ss:$16 sps:$4 sm:$0xff]  }
 0x469   :  { %v6284_v24 = vmax.f32 %v4808_v18, 0.0  ;;  %v4810_v25 = vadd.f32 %v2510_v22, %v1754_v63  ;;  %v5029_v63 = vld [vmem:[#allocation8 + $0x6c] ss:$16 sps:$4 sm:$0xff]   ;;  %v5042_v18 = vld [vmem:[#allocation8 + $0x108] ss:$16 sps:$4 sm:$0xff]   ;;  %v6370_v22 = vpop.permute.xlu0 %1108 }
 0x46a   :  { %8232 = vst [vmem:[#allocation54_spill] sm:$0xff] %v6290_v28  ;;  %v6302_v34 = vmax.f32 %v4809_v32, 0.0  ;;  %v5047_v19 = vld [vmem:[#allocation8 + $0x12c] ss:$16 sps:$4 sm:$0xff]  }
 0x46b   :  { %8231 = vst [vmem:[#allocation53_spill] sm:$0xff] %v6284_v24  ;;  %v6300_v33 = vmax.f32 %v4810_v25, 0.0  ;;  %v5045_v25 = vld [vmem:[#allocation8 + $0x128] ss:$16 sps:$4 sm:$0xff]   ;;  %v5050_v32 = vld [vmem:[#allocation8 + $0x14c] ss:$16 sps:$4 sm:$0xff]  }
 0x46c   :  { %8234 = vst [vmem:[#allocation56_spill] sm:$0xff] %v6302_v34  ;;  %v6312_v36 = vpack.c.bf16 %v6302_v34, %v6290_v28 }
 0x46d   :  { %8233 = vst [vmem:[#allocation55_spill] sm:$0xff] %v6300_v33  ;;  %v6308_v35 = vpack.c.bf16 %v6300_v33, %v6284_v24 }
 0x46f   :  { %4644 = vmatprep.subr.bf16.mxu1 %v6308_v35 }
 0x470   :  { %4646 = vmatpush1.bf16.msra.mxu1 %v6312_v36 }
 0x473   :  { %4520 = vmatmul.mubr.msk.f32.vlgmr.msra.gmra.mrb[16].mxu1 %vm2635_vm3, %v6320_v37 }
 0x474   :  { %2718 = vmatprep.mubr.f32.mxu1 %v8099_v0 }
 0x477   :  { %4521 = vmatmul.mubr.msk.f32.gmra.mrb[18].mxu1 %vm2635_vm3, %v6329_v39 }
 0x478   :  { %2724 = vmatprep.mubr.f32.mxu1 %v8099_v0 }
 0x47b   :  { %4522 = vmatmul.mubr.msk.f32.gmra.mrb[20].mxu1 %vm2635_vm3, %v1720_v40  ;;  %v6372_v40 = vpop.permute.xlu1 %1110 }
 0x47c   :  { %2730 = vmatprep.mubr.f32.mxu1 %v8099_v0 }
 0x47f   :  { %4523 = vmatmul.mubr.msk.f32.gmra.mrb[22].mxu1 %vm2635_vm3, %v1721_v41  ;;  %v6374_v41 = vpop.permute.xlu0 %1162 }
 0x480   :  { %2801 = vmatprep.mubr.f32.mxu1 %v8099_v0 }
 0x495   :  { %v6232_v45 = vpop.f32.mrb[4].mxu0 }
 0x496   :  { %1022 = vrot.lane.b32.xlu0 %v6232_v45, %s5639_s9  ;;  %v6236_v46 = vpop.f32.mrb[5].mxu0 }
 0x499   :  { %v6238_v47 = vpop.f32.mrb[6].mxu0 }
 0x49a   :  { %1074 = vrot.lane.b32.xlu0 %v6232_v45, %s5651_s15  ;;  %1024 = vrot.lane.b32.xlu1 %v6238_v47, %s5639_s9  ;;  %v6244_v48 = vpop.f32.mrb[7].mxu0 }
 0x49d   :  { %v6246_v49 = vpop.f32.mrb[8].mxu0 }
 0x49e   :  { %1026 = vrot.lane.b32.xlu0 %v6236_v46, %s5639_s9  ;;  %1076 = vrot.lane.b32.xlu1 %v6238_v47, %s5651_s15  ;;  %v6252_v54 = vpop.f32.mrb[9].mxu0 }
 0x4a1   :  { %v6254_v55 = vpop.f32.mrb[10].mxu0 }
 0x4a2   :  { %1078 = vrot.lane.b32.xlu0 %v6236_v46, %s5651_s15  ;;  %1028 = vrot.lane.b32.xlu1 %v6244_v48, %s5639_s9  ;;  %v6260_v56 = vpop.f32.mrb[11].mxu0 }
 0x4a6   :  { %1080 = vrot.lane.b32.xlu1 %v6244_v48, %s5651_s15  ;;  %1278 = vrot.lane.b32.xlu0 %v6246_v49, %s5639_s9 }
 0x4aa   :  { %1332 = vrot.lane.b32.xlu0 %v6246_v49, %s5651_s15  ;;  %1280 = vrot.lane.b32.xlu1 %v6254_v55, %s5639_s9 }
 0x4ae   :  { %1282 = vrot.lane.b32.xlu0 %v6252_v54, %s5639_s9  ;;  %1334 = vrot.lane.b32.xlu1 %v6254_v55, %s5651_s15 }
 0x4b2   :  { %1336 = vrot.lane.b32.xlu0 %v6252_v54, %s5651_s15  ;;  %1284 = vrot.lane.b32.xlu1 %v6260_v56, %s5639_s9 }
 0x4b6   :  { %1338 = vrot.lane.b32.xlu1 %v6260_v56, %s5651_s15  ;;  %3070 = vrot.lane.b32.xlu0 %v6272_v10, %s5639_s9 }
 0x4ba   :  { %3072 = vrot.lane.b32.xlu1 %v6282_v21, %s5639_s9  ;;  %3074 = vrot.lane.b32.xlu0 %v6290_v28, %s5639_s9 }
 0x4be   :  { %3076 = vrot.lane.b32.xlu1 %v6302_v34, %s5639_s9  ;;  %3078 = vrot.lane.b32.xlu0 %v6274_v11, %s5639_s9 }
 0x4c2   :  { %3080 = vrot.lane.b32.xlu1 %v6280_v17, %s5639_s9  ;;  %3082 = vrot.lane.b32.xlu0 %v6284_v24, %s5639_s9 }
 0x4c6   :  { %3084 = vrot.lane.b32.xlu1 %v6300_v33, %s5639_s9  ;;  %3228 = vrot.lane.b32.xlu0 %v6272_v10, %s5651_s15 }
 0x4ca   :  { %3230 = vrot.lane.b32.xlu1 %v6282_v21, %s5651_s15  ;;  %3232 = vrot.lane.b32.xlu0 %v6290_v28, %s5651_s15 }
 0x4ce   :  { %3234 = vrot.lane.b32.xlu1 %v6302_v34, %s5651_s15  ;;  %3236 = vrot.lane.b32.xlu0 %v6274_v11, %s5651_s15 }
 0x4d1   :  { %v4598_v16 = vpop.f32.mrb[12].mxu0 }
 0x4d2   :  { %v1490_v44 = vpop.f32.mrb[13].mxu0  ;;  %3238 = vrot.lane.b32.xlu1 %v6280_v17, %s5651_s15  ;;  %3240 = vrot.lane.b32.xlu0 %v6284_v24, %s5651_s15  ;;  %v5071_v17 = vld [vmem:[#allocation8 + $0x22c] ss:$16 sps:$4 sm:$0xff]  }
 0x4d3   :  { %1564 = vmatmul.mubr.f32.vlgmr.msra.gmra.mrb[14].mxu0 %v1490_v44  ;;  %v5051_v44 = vld [vmem:[#allocation8 + $0x168] ss:$16 sps:$4 sm:$0xff]  }
 0x4d4   :  { %2514 = vmatpush1.bf16.msra.mxu0 %v5018_v42  ;;  %1569 = vmatprep.mubr.f32.mxu0 %v8099_v0  ;;  %v5048_v42 = vld [vmem:[#allocation8 + $0x148] ss:$16 sps:$4 sm:$0xff]  }
 0x4d5   :  { %2515 = vmatprep.subr.bf16.mxu0 %v5023_v20  ;;  %v6376_v20 = vpop.permute.xlu1 %1164 }
 0x4d6   :  { %3242 = vrot.lane.b32.xlu1 %v6300_v33, %s5651_s15 }
 0x4d7   :  { %1570 = vmatmul.mubr.f32.gmra.mrb[16].mxu0 %v4598_v16  ;;  %v5053_v16 = vld [vmem:[#allocation8 + $0x16c] ss:$16 sps:$4 sm:$0xff]  }
 0x4d8   :  { %2516 = vmatpush1.bf16.msra.mxu0 %v5021_v57  ;;  %2545 = vmatprep.mubr.bf16.mxu0 %v6146_v31  ;;  %v5039_v31 = vld [vmem:[#allocation8 + $0xe8] ss:$16 sps:$4 sm:$0xff]   ;;  %v5056_v57 = vld [vmem:[#allocation8 + $0x18c] ss:$16 sps:$4 sm:$0xff]  }
 0x4d9   :  { %2517 = vmatprep.subr.bf16.mxu0 %v5026_v60  ;;  %v1113_v60 = vpop.permute.xlu0 %1112 }
 0x4dc   :  { %2518 = vmatpush1.bf16.msra.mxu0 %v5024_v61  ;;  %v5054_v61 = vld [vmem:[#allocation8 + $0x188] ss:$16 sps:$4 sm:$0xff]  }
 0x4dd   :  { %2519 = vmatprep.subr.bf16.mxu0 %v5029_v63  ;;  %v5059_v63 = vld [vmem:[#allocation8 + $0x1ac] ss:$16 sps:$4 sm:$0xff]  }
 0x4e0   :  { %2520 = vmatpush1.bf16.msra.mxu0 %v5027_v1  ;;  %v6378_v1 = vpop.permute.xlu1 %1114 }
 0x4e1   :  { %2521 = vmatprep.subr.bf16.mxu0 %v5032_v3  ;;  %v6380_v3 = vpop.permute.xlu0 %1166 }
 0x4e4   :  { %2522 = vmatpush1.bf16.msra.mxu0 %v5030_v4  ;;  %v5057_v4 = vld [vmem:[#allocation8 + $0x1a8] ss:$16 sps:$4 sm:$0xff]  }
 0x4e5   :  { %2523 = vmatprep.subr.bf16.mxu0 %v5035_v6  ;;  %v5062_v6 = vld [vmem:[#allocation8 + $0x1cc] ss:$16 sps:$4 sm:$0xff]  }
 0x4e8   :  { %2524 = vmatpush1.bf16.msra.mxu0 %v5033_v8  ;;  %v6382_v8 = vpop.permute.xlu1 %1168 }
 0x4e9   :  { %2525 = vmatprep.subr.bf16.mxu0 %v5038_v9 }
 0x4ec   :  { %2526 = vmatpush1.bf16.msra.mxu0 %v5036_v12  ;;  %v5060_v12 = vld [vmem:[#allocation8 + $0x1c8] ss:$16 sps:$4 sm:$0xff]  }
 0x4ed   :  { %2527 = vmatprep.subr.bf16.mxu0 %v5041_v13  ;;  %v5065_v13 = vld [vmem:[#allocation8 + $0x1ec] ss:$16 sps:$4 sm:$0xff]  }
 0x4f0   :  { %2528 = vmatpush1.bf16.msra.mxu0 %v5039_v31  ;;  %v1054_v31 = vld [vmem:[#allocation19 + $0x1] ss:$8 sm:$0x3] }
 0x4f1   :  { %2529 = vmatprep.subr.bf16.mxu0 %v5044_v14  ;;  %v1037_v14 = vld [vmem:[#allocation19] ss:$8 sm:$0x3] }
 0x4f4   :  { %2530 = vmatpush1.bf16.msra.mxu0 %v5042_v18  ;;  %v1142_v18 = vld [vmem:[#allocation19 + $0x4] ss:$8 sm:$0x3] }
 0x4f5   :  { %2531 = vmatprep.subr.bf16.mxu0 %v5047_v19  ;;  %v6385_v19 = vand.u32 127, %v721_v62  ;;  %v6392_v0 = vrot.slane %v1142_v18, %v6165_v5  ;;  %v6395_v62 = vrot.slane %v1142_v18, %v6168_v7 }
 0x4f7   :  { %vm1032_vm4 = vcmp.lt.s32.totalorder %v6385_v19, 32  ;;  %v1155_v37 = vmul.f32 %v6395_v62, %v6174_v27  ;;  %vm1082_vm5 = vcmp.lt.s32.totalorder %v6385_v19, 96 }
 0x4f8   :  { %2532 = vmatpush1.bf16.msra.mxu0 %v5045_v25 }
 0x4f9   :  { %2533 = vmatprep.subr.bf16.mxu0 %v5050_v32 }
 0x4fc   :  { %2534 = vmatpush1.bf16.msra.mxu0 %v5048_v42  ;;  %v5063_v42 = vld [vmem:[#allocation8 + $0x1e8] ss:$16 sps:$4 sm:$0xff]  }
 0x4fd   :  { %2535 = vmatprep.subr.bf16.mxu0 %v5053_v16  ;;  %v1121_v16 = vld [vmem:[#allocation19 + $0x3] ss:$8 sm:$0x3] }
 0x500   :  { %2536 = vmatpush1.bf16.msra.mxu0 %v5051_v44  ;;  %v5068_v44 = vld [vmem:[#allocation8 + $0x20c] ss:$16 sps:$4 sm:$0xff]  }
 0x501   :  { %2537 = vmatprep.subr.bf16.mxu0 %v5056_v57  ;;  %v1059_v57 = vrot.slane %v1054_v31, %v6165_v5 }
 0x503   :  { %v1068_v59 = vmul.f32 %v1059_v57, %v6238_v47 }
 0x504   :  { %2538 = vmatpush1.bf16.msra.mxu0 %v5054_v61  ;;  %v1063_v61 = vrot.slane %v1054_v31, %v6168_v7  ;;  %v6404_v31 = vld [vmem:[#allocation19 + $0x5] ss:$8 sm:$0x3] }
 0x505   :  { %2539 = vmatprep.subr.bf16.mxu0 %v5059_v63  ;;  %v1042_v63 = vrot.slane %v1037_v14, %v6165_v5 }
 0x506   :  { %v1067_v11 = vmul.f32 %v1063_v61, %v6236_v46 }
 0x508   :  { %v1023_v9 = vpop.permute.xlu0 %1022  ;;  %2540 = vmatpush1.bf16.msra.mxu0 %v5057_v4  ;;  %v1046_v4 = vrot.slane %v1037_v14, %v6168_v7  ;;  %v5066_v14 = vld [vmem:[#allocation8 + $0x208] ss:$16 sps:$4 sm:$0xff]  }
 0x509   :  { %2541 = vmatprep.subr.bf16.mxu0 %v5062_v6  ;;  %v1088_v6 = vld [vmem:[#allocation19 + $0x2] ss:$8 sm:$0x3] }
 0x50a   :  { %v1093_v28 = vrot.slane %v1088_v6, %v6165_v5  ;;  %v1097_v21 = vrot.slane %v1088_v6, %v6168_v7 }
 0x50c   :  { %v1075_v25 = vpop.permute.xlu0 %1074  ;;  %v1025_v32 = vpop.permute.xlu1 %1024  ;;  %2542 = vmatpush1.bf16.msra.mxu0 %v5060_v12  ;;  %v6399_v12 = vrot.slane %v1121_v16, %v6165_v5 }
 0x50d   :  { %2543 = vmatprep.subr.bf16.mxu0 %v5065_v13  ;;  %v6402_v13 = vrot.slane %v1121_v16, %v6168_v7  ;;  %v1066_v16 = vmul.f32 %v1059_v57, %v6232_v45  ;;  %v1118_v45 = vsel %vm1032_vm4, %v1113_v60, %v6370_v22 }
 0x510   :  { %v1027_v34 = vpop.permute.xlu0 %1026  ;;  %v1077_v33 = vpop.permute.xlu1 %1076  ;;  %2544 = vmatpush1.bf16.msra.mxu0 %v5063_v42  ;;  %v1154_v42 = vmul.f32 %v6392_v0, %v6172_v23 }
 0x511   :  { %v1033_v24 = vsel %vm1032_vm4, %v1023_v9, %v1027_v34  ;;  %v1035_v18 = vsel %vm1032_vm4, %v1027_v34, %v1023_v9  ;;  %2566 = vmatprep.subr.bf16.mxu0 %v5068_v44  ;;  %v1116_v34 = vsel %vm1032_vm4, %v6370_v22, %v1113_v60  ;;  %v6423_v9 = vrot.slane %v6404_v31, %v6165_v5  ;;  %v5069_v44 = vld [vmem:[#allocation8 + $0x228] ss:$16 sps:$4 sm:$0xff]  }
 0x512   :  { %v1049_v10 = vmul.f32 %v1042_v63, %v1035_v18  ;;  %v1050_v39 = vmul.f32 %v1046_v4, %v1033_v24 }
 0x513   :  { %2546 = vmatmul.mubr.bf16.vlgmr.msra.gmra.mrb[20].mxu0 %v6149_v38 }
 0x514   :  { %v1070_v23 = vadd.f32 %v1066_v16, %v1049_v10  ;;  %v1071_v46 = vadd.f32 %v1067_v11, %v1050_v39  ;;  %v1079_v24 = vpop.permute.xlu0 %1078  ;;  %v1029_v27 = vpop.permute.xlu1 %1028  ;;  %2567 = vmatpush1.bf16.msra.mxu0 %v5066_v14  ;;  %2555 = vmatprep.mubr.bf16.mxu0 %v6151_v43  ;;  %v5074_v10 = vld [vmem:[#allocation8 + $0x24c] ss:$16 sps:$4 sm:$0xff]   ;;  %v1133_v43 = vmul.f32 %v6399_v12, %v1118_v45 }
 0x515   :  { %v1083_v6 = vsel %vm1082_vm5, %v1075_v25, %v1079_v24  ;;  %v1085_v38 = vsel %vm1082_vm5, %v1079_v24, %v1075_v25  ;;  %v1034_v18 = vsel %vm1032_vm4, %v1025_v32, %v1029_v27  ;;  %v1036_v22 = vsel %vm1032_vm4, %v1029_v27, %v1025_v32  ;;  %2568 = vmatprep.subr.bf16.mxu0 %v5071_v17 }
 0x516   :  { %v1100_v11 = vmul.f32 %v1093_v28, %v1083_v6  ;;  %v1101_v39 = vmul.f32 %v1097_v21, %v1085_v38  ;;  %v1051_v60 = vmul.f32 %v1042_v63, %v1036_v22  ;;  %v1052_v14 = vmul.f32 %v1046_v4, %v1034_v18 }
 0x517   :  { %v1134_v16 = vmul.f32 %v6402_v13, %v1116_v34  ;;  %v1069_v25 = vmul.f32 %v1063_v61, %v6244_v48  ;;  %v1117_v24 = vsel %vm1032_vm4, %v6372_v40, %v6378_v1  ;;  %v1119_v17 = vsel %vm1032_vm4, %v6378_v1, %v6372_v40  ;;  %v5072_v34 = vld [vmem:[#allocation8 + $0x248] ss:$16 sps:$4 sm:$0xff]   ;;  %v5077_v61 = vld [vmem:[#allocation8 + $0x26c] ss:$16 sps:$4 sm:$0xff]  }
 0x518   :  { %v1104_v32 = vadd.f32 %v1100_v11, %v1070_v23  ;;  %v1105_v63 = vadd.f32 %v1101_v39, %v1071_v46  ;;  %v1081_v4 = vpop.permute.xlu1 %1080  ;;  %v1279_v45 = vpop.permute.xlu0 %1278  ;;  %2569 = vmatpush1.bf16.msra.mxu0 %v5069_v44  ;;  %v1072_v27 = vadd.f32 %v1068_v59, %v1051_v60  ;;  %v1156_v1 = vmul.f32 %v6392_v0, %v6176_v29  ;;  %v1291_v44 = vld [vmem:[#allocation19 + $0x6] ss:$8 sm:$0x3] }
 0x519   :  { %v1073_v47 = vadd.f32 %v1069_v25, %v1052_v14  ;;  %v1084_v48 = vsel %vm1082_vm5, %v1077_v33, %v1081_v4  ;;  %v1086_v57 = vsel %vm1082_vm5, %v1081_v4, %v1077_v33  ;;  %2570 = vmatprep.subr.bf16.mxu0 %v5074_v10  ;;  %v1135_v23 = vmul.f32 %v6399_v12, %v1119_v17  ;;  %v1312_v33 = vld [vmem:[#allocation19 + $0x7] ss:$8 sm:$0x3]  ;;  %v5083_v4 = vld [vmem:[#allocation8 + $0x2ac] ss:$16 sps:$4 sm:$0xff]  }
 0x51a   :  { %v1137_v6 = vadd.f32 %v1133_v43, %v1104_v32  ;;  %v1138_v38 = vadd.f32 %v1134_v16, %v1105_v63  ;;  %v1102_v18 = vmul.f32 %v1093_v28, %v1084_v48  ;;  %v1103_v40 = vmul.f32 %v1097_v21, %v1086_v57  ;;  %v5075_v21 = vld [vmem:[#allocation8 + $0x268] ss:$16 sps:$4 sm:$0xff]  }
 0x51b   :  { %v1136_v59 = vmul.f32 %v6402_v13, %v1117_v24  ;;  %v1184_v46 = vrot.slane %v6404_v31, %v6168_v7  ;;  %2556 = vmatmul.mubr.bf16.gmra.mrb[24].mxu0 %v6155_v50  ;;  %v1157_v29 = vmul.f32 %v6395_v62, %v6180_v30  ;;  %v1170_v12 = vsel %vm1082_vm5, %v6374_v41, %v6380_v3  ;;  %v5080_v13 = vld [vmem:[#allocation8 + $0x28c] ss:$16 sps:$4 sm:$0xff]  }
 0x51c   :  { %v1106_v22 = vadd.f32 %v1102_v18, %v1072_v27  ;;  %v1107_v10 = vadd.f32 %v1103_v40, %v1073_v47  ;;  %v6462_v11 = vpop.permute.xlu0 %1332  ;;  %v1281_v28 = vpop.permute.xlu1 %1280  ;;  %2571 = vmatpush1.bf16.msra.mxu0 %v5072_v34  ;;  %v1158_v39 = vadd.f32 %v1154_v42, %v1137_v6  ;;  %v1159_v0 = vadd.f32 %v1155_v37, %v1138_v38 }
 0x51d   :  { %v1172_v50 = vsel %vm1082_vm5, %v6380_v3, %v6374_v41  ;;  %2572 = vmatprep.subr.bf16.mxu0 %v5077_v61  ;;  %2598 = vmatprep.mubr.bf16.mxu0 %v6157_v52  ;;  %v1296_v37 = vrot.slane %v1291_v44, %v6165_v5  ;;  %v1300_v30 = vrot.slane %v1291_v44, %v6168_v7  ;;  %v5078_v41 = vld [vmem:[#allocation8 + $0x288] ss:$16 sps:$4 sm:$0xff]  }
 0x51e   :  { %v1139_v31 = vadd.f32 %v1135_v23, %v1106_v22  ;;  %v1140_v42 = vadd.f32 %v1136_v59, %v1107_v10  ;;  %v1317_v62 = vrot.slane %v1312_v33, %v6165_v5  ;;  %v1321_v60 = vrot.slane %v1312_v33, %v6168_v7  ;;  %v5086_v23 = vld [vmem:[#allocation8 + $0x2cc] ss:$16 sps:$4 sm:$0xff]   ;;  %v5084_v10 = vld [vmem:[#allocation8 + $0x2c8] ss:$16 sps:$4 sm:$0xff]  }
 0x51f   :  { %v1187_v14 = vmul.f32 %v6423_v9, %v1170_v12  ;;  %v1188_v43 = vmul.f32 %v1184_v46, %v1172_v50  ;;  %v1171_v24 = vsel %vm1082_vm5, %v6376_v20, %v6382_v8  ;;  %v1173_v17 = vsel %vm1082_vm5, %v6382_v8, %v6376_v20  ;;  %v5081_v20 = vld [vmem:[#allocation8 + $0x2a8] ss:$16 sps:$4 sm:$0xff]   ;;  %v5092_v50 = vld [vmem:[#allocation8 + $0x30c] ss:$16 sps:$4 sm:$0xff]  }
 0x520   :  { %v1283_v16 = vpop.permute.xlu0 %1282  ;;  %v6480_v25 = vpop.permute.xlu1 %1334  ;;  %2573 = vmatpush1.bf16.msra.mxu0 %v5075_v21  ;;  %v1160_v3 = vadd.f32 %v1156_v1, %v1139_v31  ;;  %v1161_v52 = vadd.f32 %v1157_v29, %v1140_v42  ;;  %v1324_v57 = vmul.f32 %v1317_v62, %v6246_v49  ;;  %v1325_v61 = vmul.f32 %v1321_v60, %v6252_v54  ;;  %v5087_v12 = vld [vmem:[#allocation8 + $0x2e8] ss:$16 sps:$4 sm:$0xff]   ;;  %v5095_v31 = vld [vmem:[#allocation8 + $0x32c] ss:$16 sps:$4 sm:$0xff]  }
 0x521   :  { %v1286_v32 = vsel %vm1032_vm4, %v1279_v45, %v1283_v16  ;;  %v1288_v63 = vsel %vm1032_vm4, %v1283_v16, %v1279_v45  ;;  %2574 = vmatprep.subr.bf16.mxu0 %v5080_v13  ;;  %v1191_v34 = vadd.f32 %v1187_v14, %v1158_v39  ;;  %v1192_v27 = vadd.f32 %v1188_v43, %v1159_v0  ;;  %v5090_v13 = vld [vmem:[#allocation8 + $0x308] ss:$16 sps:$4 sm:$0xff]   ;;  %v5107_v14 = vld [vmem:[#allocation8 + $0x3ac] ss:$16 sps:$4 sm:$0xff]  }
 0x522   :  { %v1303_v47 = vmul.f32 %v1296_v37, %v1288_v63  ;;  %v1304_v48 = vmul.f32 %v1300_v30, %v1286_v32  ;;  %v1189_v8 = vmul.f32 %v6423_v9, %v1171_v24  ;;  %v1190_v40 = vmul.f32 %v1184_v46, %v1173_v17  ;;  %v5096_v42 = vld [vmem:[#allocation8 + $0x348] ss:$16 sps:$4 sm:$0xff]   ;;  %v5110_v16 = vld [vmem:[#allocation8 + $0x3cc] ss:$16 sps:$4 sm:$0xff]  }
 0x523   :  { %v1326_v9 = vmul.f32 %v1317_v62, %v6254_v55  ;;  %v1327_v46 = vmul.f32 %v1321_v60, %v6260_v56  ;;  %v5093_v55 = vld [vmem:[#allocation8 + $0x328] ss:$16 sps:$4 sm:$0xff]   ;;  %v5098_v56 = vld [vmem:[#allocation8 + $0x34c] ss:$16 sps:$4 sm:$0xff]   ;;  %v8237_v24 = vmov 0.0  }
 0x524   :  { %v1307_v6 = vadd.f32 %v1303_v47, %v1191_v34  ;;  %v1308_v38 = vadd.f32 %v1304_v48, %v1192_v27  ;;  %v1285_v18 = vpop.permute.xlu1 %1284  ;;  %2575 = vmatpush1.bf16.msra.mxu0 %v5078_v41  ;;  %v1193_v54 = vadd.f32 %v1189_v8, %v1160_v3  ;;  %v1194_v44 = vadd.f32 %v1190_v40, %v1161_v52  ;;  %v5104_v62 = vld [vmem:[#allocation8 + $0x38c] ss:$16 sps:$4 sm:$0xff]   ;;  %v5102_v60 = vld [vmem:[#allocation8 + $0x388] ss:$16 sps:$4 sm:$0xff]   ;;  %v1337_v63 = vpop.permute.xlu0 %1336 }
 0x525   :  { %v1287_v45 = vsel %vm1032_vm4, %v1281_v28, %v1285_v18  ;;  %v1289_v1 = vsel %vm1032_vm4, %v1285_v18, %v1281_v28  ;;  %2576 = vmatprep.subr.bf16.mxu0 %v5083_v4  ;;  %v5089_v28 = vld [vmem:[#allocation8 + $0x2ec] ss:$16 sps:$4 sm:$0xff]   ;;  %v5105_v43 = vld [vmem:[#allocation8 + $0x3a8] ss:$16 sps:$4 sm:$0xff]   ;;  %v1340_v27 = vsel %vm1082_vm5, %v6462_v11, %v1337_v63  ;;  %v1342_v47 = vsel %vm1082_vm5, %v1337_v63, %v6462_v11 }
 0x526   :  { %v6501_v59 = vadd.f32 %v1324_v57, %v1307_v6  ;;  %v6503_v49 = vadd.f32 %v1325_v61, %v1308_v38  ;;  %v1305_v33 = vmul.f32 %v1296_v37, %v1289_v1  ;;  %v1306_v22 = vmul.f32 %v1300_v30, %v1287_v45  ;;  %v5101_v37 = vld [vmem:[#allocation8 + $0x36c] ss:$16 sps:$4 sm:$0xff]   ;;  %v5099_v30 = vld [vmem:[#allocation8 + $0x368] ss:$16 sps:$4 sm:$0xff]  }
 0x527   :  { %v5108_v41 = vld [vmem:[#allocation8 + $0x3c8] ss:$16 sps:$4 sm:$0xff]   ;;  %v5113_v3 = vld [vmem:[#allocation8 + $0x3ec] ss:$16 sps:$4 sm:$0xff]  }
 0x528   :  { %2577 = vmatpush1.bf16.msra.mxu0 %v5081_v20  ;;  %v1309_v21 = vadd.f32 %v1305_v33, %v1193_v54  ;;  %v1310_v39 = vadd.f32 %v1306_v22, %v1194_v44  ;;  %v5111_v52 = vld [vmem:[#allocation8 + $0x3e8] ss:$16 sps:$4 sm:$0xff]   ;;  %v1339_v48 = vpop.permute.xlu1 %1338 }
 0x529   :  { %2578 = vmatprep.subr.bf16.mxu0 %v5086_v23  ;;  %v6519_v17 = vld [vmem:[#allocation13] sm:$0xff]  ;;  %v1345_v32 = vld [vmem:[#allocation19 + $0x10] ss:$8 sm:$0x3]  ;;  %v1341_v18 = vsel %vm1082_vm5, %v6480_v25, %v1339_v48  ;;  %v1343_v11 = vsel %vm1082_vm5, %v1339_v48, %v6480_v25 }
 0x52a   :  { %v6507_v0 = vadd.f32 %v1326_v9, %v1309_v21  ;;  %v6509_v29 = vadd.f32 %v1327_v46, %v1310_v39  ;;  %v1350_v4 = vrot.slane %v1345_v32, %v6165_v5  ;;  %v1354_v34 = vrot.slane %v1345_v32, %v6168_v7  ;;  %v709_v20 = vld [vmem:[#allocation20] sm:$0x3] }
 0x52b   :  { %v1369_v1 = vrot.slane %v709_v20, %v6165_v5  ;;  %v1373_v25 = vrot.slane %v709_v20, %v6168_v7  ;;  %v3850_v48 = vld [vmem:[#allocation29 + $0x58] sm:$0xff] }
 0x52c   :  { %2579 = vmatpush1.bf16.msra.mxu0 %v5084_v10  ;;  %v1357_v61 = vmul.f32 %v1350_v4, %v1340_v27  ;;  %v1358_v38 = vmul.f32 %v1354_v34, %v1342_v47  ;;  %v1359_v45 = vmul.f32 %v1350_v4, %v1341_v18  ;;  %v1360_v44 = vmul.f32 %v1354_v34, %v1343_v11  ;;  %v3841_v4 = vld [vmem:[#allocation29 + $0x10] sm:$0xff] }
 0x52d   :  { %2580 = vmatprep.subr.bf16.mxu0 %v5089_v28  ;;  %v3845_v34 = vld [vmem:[#allocation29 + $0x30] sm:$0xff] }
 0x52e   :  { %v1361_v40 = vadd.f32 %v1357_v61, %v6501_v59  ;;  %v1362_v54 = vadd.f32 %v1358_v38, %v6503_v49  ;;  %v1363_v33 = vadd.f32 %v1359_v45, %v6507_v0  ;;  %v1364_v59 = vadd.f32 %v1360_v44, %v6509_v29  ;;  %v3854_v38 = vld [vmem:[#allocation29 + $0x78] sm:$0xff]  ;;  %v3849_v11 = vld [vmem:[#allocation29 + $0x50] sm:$0xff] }
 0x52f   :  { %v4741_v47 = vpack.c.bf16 %v3845_v34, %v3841_v4  ;;  %v4743_v20 = vpack.c.bf16 %v3854_v38, %v3850_v48  ;;  %v3878_v4 = vld [vmem:[#allocation29 + $0x138] sm:$0xff] }
 0x530   :  { %2581 = vmatpush1.bf16.msra.mxu0 %v5087_v12  ;;  %v1376_v22 = vadd.f32 %v1369_v1, %v1361_v40  ;;  %v1377_v10 = vadd.f32 %v1373_v25, %v1362_v54  ;;  %v1378_v9 = vadd.f32 %v1369_v1, %v1363_v33  ;;  %v1379_v39 = vadd.f32 %v1373_v25, %v1364_v59  ;;  %v3853_v40 = vld [vmem:[#allocation29 + $0x70] sm:$0xff] }
 0x531   :  { %2582 = vmatprep.subr.bf16.mxu0 %v5092_v50  ;;  %v4745_v54 = vpack.c.bf16 %v3853_v40, %v3849_v11  ;;  %v3886_v40 = vld [vmem:[#allocation29 + $0x178] sm:$0xff] }
 0x532   :  { %v1380_v49 = vmax.f32 %v1376_v22, 0.0  ;;  %v1381_v21 = vmax.f32 %v1377_v10, 0.0  ;;  %v1382_v29 = vmax.f32 %v1378_v9, 0.0  ;;  %v3858_v22 = vld [vmem:[#allocation29 + $0x98] sm:$0xff] }
 0x533   :  { %v3862_v10 = vld [vmem:[#allocation29 + $0xb8] sm:$0xff] }
 0x534   :  { %2583 = vmatpush1.bf16.msra.mxu0 %v5090_v13  ;;  %v1383_v13 = vmax.f32 %v1379_v39, 0.0  ;;  %v4747_v9 = vpack.c.bf16 %v3862_v10, %v3858_v22  ;;  %v3840_v22 = vld [vmem:[#allocation29 + $0x8] sm:$0xff] }
 0x535   :  { %2584 = vmatprep.subr.bf16.mxu0 %v5095_v31  ;;  %v3844_v10 = vld [vmem:[#allocation29 + $0x28] sm:$0xff] }
 0x538   :  { %2585 = vmatpush1.bf16.msra.mxu0 %v5093_v55 }
 0x539   :  { %2586 = vmatprep.subr.bf16.mxu0 %v5098_v56 }
 0x53c   :  { %2587 = vmatpush1.bf16.msra.mxu0 %v5096_v42 }
 0x53d   :  { %2588 = vmatprep.subr.bf16.mxu0 %v5101_v37 }
 0x540   :  { %2589 = vmatpush1.bf16.msra.mxu0 %v5099_v30  ;;  %v3835_v30 = vld [vmem:[%s8075_s21] sm:$0xff] }
 0x541   :  { %2590 = vmatprep.subr.bf16.mxu0 %v5104_v62  ;;  %v3836_v62 = vld [vmem:[%s8075_s21 + $0x8] sm:$0xff] }
 0x544   :  { %2591 = vmatpush1.bf16.msra.mxu0 %v5102_v60  ;;  %v3837_v60 = vld [vmem:[%s8075_s21 + $0x10] sm:$0xff] }
 0x545   :  { %2592 = vmatprep.subr.bf16.mxu0 %v5107_v14  ;;  %v3838_v14 = vld [vmem:[%s8075_s21 + $0x18] sm:$0xff]  ;;  %s5652_s21 = smov [#allocation33]  }
 0x546   :  { %s4295_s0 = sshll.u32 %s5652_s21, 4  ;;  %s4296_s0 = int_to_ptr.vmem [resolvable:$true] %s4295_s0 }
 0x547   :  { %s5534_s17 = scalar_lea.vmem %s4296_s0, 512  ;;  %p5539_p13 = scmp.lt.s32.totalorder %s4296_s0, %s4296_s0 }
 0x548   :  { %2593 = vmatpush1.bf16.msra.mxu0 %v5105_v43  ;;  %v6627_v43 = vsub.s32 2, %v6162_v2  ;;  %p5535_p12 = scmp.ne.s32.totalorder %s4296_s0, %s5534_s17  ;;  %p5540_p0 = scmp.lt.s32.totalorder %s5534_s17, %s5534_s17 }
 0x549   :  { %2594 = vmatprep.subr.bf16.mxu0 %v5110_v16  ;;  %v6630_v16 = vsub.s32 3, %v6162_v2 }
 0x54a   :  { %p5541_p1 = por %p5540_p0, %p5539_p13 }
 0x54c   :  { %2595 = vmatpush1.bf16.msra.mxu0 %v5108_v41  ;;  %v3842_v41 = vld [vmem:[#allocation29 + $0x18] sm:$0xff]  ;;  %p5542_p2 = pnand %p5541_p1, %p5535_p12 }
 0x54d   :  { %2596 = vmatprep.subr.bf16.mxu0 %v5113_v3  ;;  %v3846_v3 = vld [vmem:[#allocation29 + $0x38] sm:$0xff] }
 0x54e   :  { %v4739_v63 = vpack.c.bf16 %v3846_v3, %v3842_v41 }
 0x550   :  { %2597 = vmatpush1.bf16.msra.mxu0 %v5111_v52  ;;  %v8238_v52 = vld [vmem:[#allocation48_spill] sm:$0xff] }
 0x551   :  { %4656 = vmatprep.subr.bf16.mxu0 %v6288_v26  ;;  %v6539_v26 = vpop.f32.mrb[16].mxu1  ;;  %v1758_v32 = vrot.slane %v8238_v52, %v6627_v43  ;;  %v1762_v27 = vrot.slane %v8238_v52, %v6630_v16  ;;  %v3874_v52 = vld [vmem:[#allocation29 + $0x118] sm:$0xff] }
 0x552   :  { %2826 = vrot.lane.b32.xlu0 %v6539_v26, %s5639_s9  ;;  %v4755_v48 = vpack.c.bf16 %v3878_v4, %v3874_v52  ;;  %v6699_v52 = vpop.permute.xlu0 %3070 }
 0x553   :  { %2599 = vmatmul.mubr.bf16.vlgmr.msra.gmra.mrb[20].mxu0 %v6204_v51  ;;  %v6524_v51 = vld [vmem:[#allocation13 + $0x8] sm:$0xff]  ;;  %8251 = vst [vmem:[#allocation66_spill] sm:$0xff] %v6699_v52 }
 0x554   :  { %2608 = vmatprep.mubr.bf16.mxu0 %v6207_v53  ;;  %4658 = vmatpush1.bf16.msra.mxu0 %v6294_v15  ;;  %v6529_v53 = vld [vmem:[#allocation13 + $0x10] sm:$0xff]  ;;  %v6541_v15 = vpop.f32.mrb[17].mxu1 }
 0x555   :  { %4660 = vmatprep.subr.bf16.mxu0 %v6308_v35  ;;  %v6545_v35 = vpop.f32.mrb[18].mxu1 }
 0x556   :  { %2828 = vrot.lane.b32.xlu1 %v6545_v35, %s5639_s9  ;;  %2967 = vrot.lane.b32.xlu0 %v6539_v26, %s5651_s15 }
 0x558   :  { %4662 = vmatpush1.bf16.msra.mxu0 %v6312_v36  ;;  %v6551_v36 = vpop.f32.mrb[19].mxu1 }
 0x559   :  { %v6569_v57 = vpop.f32.mrb[20].mxu1 }
 0x55a   :  { %2969 = vrot.lane.b32.xlu1 %v6545_v35, %s5651_s15  ;;  %2834 = vrot.lane.b32.xlu0 %v6541_v15, %s5639_s9  ;;  %v6571_v6 = vpop.f32.mrb[21].mxu1 }
 0x55b   :  { %2609 = vmatmul.mubr.bf16.gmra.mrb[24].mxu0 %v6217_v58  ;;  %v6534_v58 = vld [vmem:[#allocation13 + $0x18] sm:$0xff]  ;;  %v6583_v8 = vpop.f32.mrb[22].mxu1 }
 0x55c   :  { %3407 = vmatprep.mubr.f32.mxu0 %v8237_v24  ;;  %v6587_v23 = vpop.f32.mrb[23].mxu1 }
 0x55e   :  { %2836 = vrot.lane.b32.xlu1 %v6551_v36, %s5639_s9  ;;  %2975 = vrot.lane.b32.xlu0 %v6541_v15, %s5651_s15 }
 0x562   :  { %2977 = vrot.lane.b32.xlu1 %v6551_v36, %s5651_s15  ;;  %2830 = vrot.lane.b32.xlu0 %v6569_v57, %s5639_s9 }
 0x563   :  { %4533 = vmatmul.mubr.msk.f32.vlgmr.msra.gmra.mrb[18].mxu0 %vm2635_vm3, %v6519_v17 }
 0x564   :  { %3413 = vmatprep.mubr.f32.mxu0 %v8237_v24 }
 0x566   :  { %2832 = vrot.lane.b32.xlu1 %v6583_v8, %s5639_s9  ;;  %2971 = vrot.lane.b32.xlu0 %v6569_v57, %s5651_s15 }
 0x567   :  { %4534 = vmatmul.mubr.msk.f32.gmra.mrb[28].mxu0 %vm2635_vm3, %v6524_v51 }
 0x568   :  { %3419 = vmatprep.mubr.f32.mxu0 %v8237_v24 }
 0x56a   :  { %2973 = vrot.lane.b32.xlu1 %v6583_v8, %s5651_s15  ;;  %2838 = vrot.lane.b32.xlu0 %v6571_v6, %s5639_s9 }
 0x56b   :  { %4535 = vmatmul.mubr.msk.f32.gmra.mrb[30].mxu0 %vm2635_vm3, %v6529_v53 }
 0x56c   :  { %3425 = vmatprep.mubr.f32.mxu0 %v8237_v24 }
 0x56e   :  { %2840 = vrot.lane.b32.xlu1 %v6587_v23, %s5639_s9  ;;  %2979 = vrot.lane.b32.xlu0 %v6571_v6, %s5651_s15 }
 0x56f   :  { %4536 = vmatmul.mubr.msk.f32.gmra.mrb[32].mxu0 %vm2635_vm3, %v6534_v58 }
 0x570   :  { %4043 = vmatprep.mubr.f32.mxu0 %v8237_v24 }
 0x572   :  { %2981 = vrot.lane.b32.xlu1 %v6587_v23, %s5651_s15 }
 0x5a6   :  { %v1565_v46 = vpop.f32.mrb[14].mxu0 }
 0x5a7   :  { %v1576_v28 = vadd.f32 %v1565_v46, %v1380_v49  ;;  %v1567_v12 = vpop.f32.mrb[15].mxu0  ;;  %v3857_v46 = vld [vmem:[#allocation29 + $0x90] sm:$0xff] }
 0x5a8   :  { %v1577_v0 = vadd.f32 %v1567_v12, %v1381_v21  ;;  %v3861_v21 = vld [vmem:[#allocation29 + $0xb0] sm:$0xff] }
 0x5a9   :  { %1580 = vst [vmem:[#allocation33] sm:$0xff] %v1576_v28  ;;  %v4749_v12 = vpack.c.bf16 %v3861_v21, %v3857_v46  ;;  %v3889_v46 = vld [vmem:[#allocation29 + $0x190] sm:$0xff] }
 0x5aa   :  { %1581 = vst [vmem:[#allocation33 + $0x8] sm:$0xff] %v1577_v0  ;;  %v1571_v50 = vpop.f32.mrb[16].mxu0  ;;  %v3893_v21 = vld [vmem:[#allocation29 + $0x1b0] sm:$0xff] }
 0x5ab   :  { %v1578_v31 = vadd.f32 %v1571_v50, %v1382_v29  ;;  %v1573_v55 = vpop.f32.mrb[17].mxu0  ;;  %v3866_v29 = vld [vmem:[#allocation29 + $0xd8] sm:$0xff] }
 0x5ac   :  { %v1579_v56 = vadd.f32 %v1573_v55, %v1383_v13 }
 0x5ad   :  { %1582 = vst [vmem:[#allocation33 + $0x10] sm:$0xff] %v1578_v31  ;;  %v4673_v42 = vpack.c.bf16 %v1578_v31, %v1576_v28  ;;  %v3870_v31 = vld [vmem:[#allocation29 + $0xf8] sm:$0xff] }
 0x5ae   :  { %1583 = vst [vmem:[#allocation33 + $0x18] sm:$0xff] %v1579_v56  ;;  %v4671_v37 = vpack.c.bf16 %v1579_v56, %v1577_v0 }
 0x5b0   :  { %4672 = vmatprep.subr.bf16.mxu0 %v4671_v37  ;;  %v3865_v37 = vld [vmem:[#allocation29 + $0xd0] sm:$0xff] }
 0x5b1   :  { %4674 = vmatpush1.bf16.msra.mxu0 %v4673_v42  ;;  %v4751_v42 = vpack.c.bf16 %v3870_v31, %v3866_v29  ;;  %v4765_v29 = vpack.c.bf16 %v3893_v21, %v3889_v46  ;;  %v4675_v31 = vpack.c.bf16 %v3844_v10, %v3840_v22  ;;  %v3843_v22 = vld [vmem:[#allocation29 + $0x20] sm:$0xff]  ;;  %v3852_v46 = vld [vmem:[#allocation29 + $0x68] sm:$0xff]  ;;  %v3922_v21 = vld [vmem:[#allocation29 + $0x298] sm:$0xff] }
 0x5b2   :  { %4740 = vmatprep.subr.bf16.mxu0 %v4739_v63 }
 0x5b4   :  { %4544 = vmatmul.mubr.msk.f32.vlgmr.msra.gmra.mrb[34].mxu0 %vm938_vm2, %v3835_v30  ;;  %v3869_v30 = vld [vmem:[#allocation29 + $0xf0] sm:$0xff] }
 0x5b5   :  { %4049 = vmatprep.mubr.f32.mxu0 %v8237_v24  ;;  %4742 = vmatpush1.bf16.msra.mxu0 %v4741_v47 }
 0x5b6   :  { %4744 = vmatprep.subr.bf16.mxu0 %v4743_v20  ;;  %v3882_v20 = vld [vmem:[#allocation29 + $0x158] sm:$0xff] }
 0x5b8   :  { %4545 = vmatmul.mubr.msk.f32.gmra.mrb[36].mxu0 %vm938_vm2, %v3836_v62 }
 0x5b9   :  { %4055 = vmatprep.mubr.f32.mxu0 %v8237_v24  ;;  %4746 = vmatpush1.bf16.msra.mxu0 %v4745_v54  ;;  %v3885_v54 = vld [vmem:[#allocation29 + $0x170] sm:$0xff] }
 0x5ba   :  { %4748 = vmatprep.subr.bf16.mxu0 %v4747_v9 }
 0x5bc   :  { %4546 = vmatmul.mubr.msk.f32.gmra.mrb[38].mxu0 %vm938_vm2, %v3837_v60 }
 0x5bd   :  { %4061 = vmatprep.mubr.f32.mxu0 %v8237_v24  ;;  %4750 = vmatpush1.bf16.msra.mxu0 %v4749_v12  ;;  %v8245_v12 = vld [vmem:[#allocation57_spill] sm:$0xff] }
 0x5be   :  { %4752 = vmatprep.subr.bf16.mxu0 %v4751_v42 }
 0x5c0   :  { %4547 = vmatmul.mubr.msk.f32.gmra.mrb[40].mxu0 %vm938_vm2, %v3838_v14  ;;  %v4753_v14 = vpack.c.bf16 %v3869_v30, %v3865_v37  ;;  %v3897_v37 = vld [vmem:[#allocation29 + $0x1d0] sm:$0xff] }
 0x5c1   :  { %v3901_v30 = vld [vmem:[#allocation29 + $0x1f0] sm:$0xff] }
 0x5c2   :  { %4754 = vmatpush1.bf16.msra.mxu0 %v4753_v14  ;;  %v3906_v14 = vld [vmem:[#allocation29 + $0x218] sm:$0xff] }
 0x5c3   :  { %4756 = vmatprep.subr.bf16.mxu0 %v4755_v48 }
 0x626   :  { %v2600_v61 = vpop.f32.mrb[20].mxu0 }
 0x627   :  { %v4811_v18 = vadd.f32 %v2600_v61, %v1758_v32  ;;  %v2602_v2 = vpop.f32.mrb[21].mxu0  ;;  %v3877_v61 = vld [vmem:[#allocation29 + $0x130] sm:$0xff] }
 0x628   :  { %v4812_v45 = vadd.f32 %v2602_v2, %v1762_v27  ;;  %v2604_v1 = vpop.f32.mrb[22].mxu0 }
 0x629   :  { %v6636_v44 = vmax.f32 %v4811_v18, 0.0  ;;  %v4813_v25 = vadd.f32 %v2604_v1, %v1758_v32  ;;  %v2606_v33 = vpop.f32.mrb[23].mxu0  ;;  %v3881_v1 = vld [vmem:[#allocation29 + $0x150] sm:$0xff] }
 0x62a   :  { %v4814_v59 = vadd.f32 %v2606_v33, %v1762_v27  ;;  %v6642_v39 = vmax.f32 %v4812_v45, 0.0  ;;  %v4759_v45 = vpack.c.bf16 %v3886_v40, %v3882_v20  ;;  %v3890_v33 = vld [vmem:[#allocation29 + $0x198] sm:$0xff] }
 0x62b   :  { %v6638_v49 = vmax.f32 %v4813_v25, 0.0  ;;  %3086 = vrot.lane.b32.xlu0 %v6636_v44, %s5639_s9  ;;  %v4761_v25 = vpack.c.bf16 %v3885_v54, %v3881_v1  ;;  %v3914_v20 = vld [vmem:[#allocation29 + $0x258] sm:$0xff]  ;;  %v3913_v54 = vld [vmem:[#allocation29 + $0x250] sm:$0xff] }
 0x62c   :  { %v6644_v28 = vmax.f32 %v4814_v59, 0.0  ;;  %v3894_v59 = vld [vmem:[#allocation29 + $0x1b8] sm:$0xff] }
 0x62d   :  { %8239 = vst [vmem:[#allocation48_spill] sm:$0xff] %v6638_v49  ;;  %3088 = vrot.lane.b32.xlu1 %v6638_v49, %s5639_s9  ;;  %v6650_v0 = vpack.c.bf16 %v6638_v49, %v6636_v44  ;;  %v4763_v9 = vpack.c.bf16 %v3894_v59, %v3890_v33  ;;  %v3839_v33 = vld [vmem:[#allocation29] sm:$0xff]  ;;  %v3848_v59 = vld [vmem:[#allocation29 + $0x48] sm:$0xff] }
 0x62e   :  { %8240 = vst [vmem:[#allocation59_spill] sm:$0xff] %v6644_v28  ;;  %v2610_v50 = vpop.f32.mrb[24].mxu0  ;;  %v4647_v13 = vpack.c.bf16 %v6644_v28, %v6642_v39 }
 0x62f   :  { %v4815_v55 = vadd.f32 %v2610_v50, %v1758_v32  ;;  %v2612_v56 = vpop.f32.mrb[25].mxu0  ;;  %3244 = vrot.lane.b32.xlu0 %v6636_v44, %s5651_s15  ;;  %v3898_v50 = vld [vmem:[#allocation29 + $0x1d8] sm:$0xff] }
 0x630   :  { %v4816_v62 = vadd.f32 %v2612_v56, %v1762_v27  ;;  %v2614_v60 = vpop.f32.mrb[26].mxu0  ;;  %4648 = vmatprep.subr.bf16.mxu1 %v4647_v13 }
 0x631   :  { %v4817_v41 = vadd.f32 %v2614_v60, %v1758_v32  ;;  %v2616_v3 = vpop.f32.mrb[27].mxu0  ;;  %3246 = vrot.lane.b32.xlu1 %v6638_v49, %s5651_s15  ;;  %4650 = vmatpush1.bf16.msra.mxu1 %v6650_v0  ;;  %v6659_v34 = vmax.f32 %v4815_v55, 0.0  ;;  %v3873_v32 = vld [vmem:[#allocation29 + $0x110] sm:$0xff]  ;;  %v3902_v55 = vld [vmem:[#allocation29 + $0x1f8] sm:$0xff]  ;;  %v4769_v60 = vpack.c.bf16 %v3901_v30, %v3897_v37  ;;  %v4679_v30 = vpack.c.bf16 %v3852_v46, %v3848_v59  ;;  %v3864_v59 = vld [vmem:[#allocation29 + $0xc8] sm:$0xff] }
 0x632   :  { %v4818_v63 = vadd.f32 %v2616_v3, %v1762_v27  ;;  %v6665_v38 = vmax.f32 %v4816_v62, 0.0  ;;  %v4757_v2 = vpack.c.bf16 %v3877_v61, %v3873_v32  ;;  %v4767_v42 = vpack.c.bf16 %v3902_v55, %v3898_v50  ;;  %v3909_v32 = vld [vmem:[#allocation29 + $0x230] sm:$0xff] }
 0x633   :  { %8241 = vst [vmem:[#allocation60_spill] sm:$0xff] %v6659_v34  ;;  %v6661_v47 = vmax.f32 %v4817_v41, 0.0  ;;  %3094 = vrot.lane.b32.xlu0 %v6642_v39, %s5639_s9  ;;  %v3910_v41 = vld [vmem:[#allocation29 + $0x238] sm:$0xff]  ;;  %v4677_v55 = vpack.c.bf16 %v3843_v22, %v3839_v33  ;;  %v3925_v37 = vld [vmem:[#allocation29 + $0x2b0] sm:$0xff]  ;;  %v3855_v33 = vld [vmem:[#allocation29 + $0x80] sm:$0xff] }
 0x634   :  { %8243 = vst [vmem:[#allocation62_spill] sm:$0xff] %v6665_v38  ;;  %v6667_v18 = vmax.f32 %v4818_v63, 0.0  ;;  %4758 = vmatpush1.bf16.msra.mxu0 %v4757_v2  ;;  %v3905_v63 = vld [vmem:[#allocation29 + $0x210] sm:$0xff]  ;;  %v4771_v48 = vpack.c.bf16 %v3910_v41, %v3906_v14  ;;  %v6708_v2 = vpop.permute.xlu1 %3072  ;;  %v3856_v14 = vld [vmem:[#allocation29 + $0x88] sm:$0xff]  ;;  %v3859_v22 = vld [vmem:[#allocation29 + $0xa0] sm:$0xff] }
 0x635   :  { %8242 = vst [vmem:[#allocation61_spill] sm:$0xff] %v6661_v47  ;;  %3096 = vrot.lane.b32.xlu1 %v6644_v28, %s5639_s9  ;;  %v4653_v27 = vpack.c.bf16 %v6661_v47, %v6659_v34  ;;  %4760 = vmatprep.subr.bf16.mxu0 %v4759_v45  ;;  %8254 = vst [vmem:[#allocation69_spill] sm:$0xff] %v6708_v2  ;;  %v4773_v45 = vpack.c.bf16 %v3909_v32, %v3905_v63  ;;  %v3860_v63 = vld [vmem:[#allocation29 + $0xa8] sm:$0xff]  ;;  %v3934_v32 = vld [vmem:[#allocation29 + $0x2f8] sm:$0xff] }
 0x636   :  { %8244 = vst [vmem:[#allocation63_spill] sm:$0xff] %v6667_v18  ;;  %v4651_v11 = vpack.c.bf16 %v6667_v18, %v6665_v38 }
 0x637   :  { %3252 = vrot.lane.b32.xlu0 %v6642_v39, %s5651_s15 }
 0x638   :  { %4652 = vmatprep.subr.bf16.mxu1 %v4651_v11  ;;  %4762 = vmatpush1.bf16.msra.mxu0 %v4761_v25  ;;  %v3917_v25 = vld [vmem:[#allocation29 + $0x270] sm:$0xff] }
 0x639   :  { %3254 = vrot.lane.b32.xlu1 %v6644_v28, %s5651_s15  ;;  %4654 = vmatpush1.bf16.msra.mxu1 %v4653_v27  ;;  %v4777_v50 = vpack.c.bf16 %v3917_v25, %v3913_v54  ;;  %v3933_v54 = vld [vmem:[#allocation29 + $0x2f0] sm:$0xff]  ;;  %v4683_v25 = vpack.c.bf16 %v3860_v63, %v3856_v14  ;;  %v3946_v14 = vld [vmem:[#allocation29 + $0x358] sm:$0xff] }
 0x63a   :  { %4664 = vmatprep.subr.bf16.mxu1 %v4647_v13  ;;  %v6686_v13 = vpop.f32.mrb[18].mxu0  ;;  %4764 = vmatprep.subr.bf16.mxu0 %v4763_v9  ;;  %v6720_v9 = vpop.permute.xlu0 %3074 }
 0x63b   :  { %3090 = vrot.lane.b32.xlu0 %v6659_v34, %s5639_s9  ;;  %8246 = vst [vmem:[#allocation57_spill] sm:$0xff] %v6686_v13  ;;  %v6689_v56 = vpop.f32.mrb[19].mxu0  ;;  %8257 = vst [vmem:[#allocation72_spill] sm:$0xff] %v6720_v9 }
 0x63c   :  { %4524 = vmatmul.mubr.msk.f32.vlgmr.msra.gmra.mrb[24].mxu1 %vm2635_vm3, %v8245_v12  ;;  %8247 = vst [vmem:[#allocation64_spill] sm:$0xff] %v6689_v56  ;;  %v6693_v62 = vpop.f32.mrb[28].mxu0  ;;  %4766 = vmatpush1.bf16.msra.mxu0 %v4765_v29  ;;  %v3926_v12 = vld [vmem:[#allocation29 + $0x2b8] sm:$0xff] }
 0x63d   :  { %3092 = vrot.lane.b32.xlu1 %v6661_v47, %s5639_s9  ;;  %4666 = vmatpush1.bf16.msra.mxu1 %v6650_v0  ;;  %8248 = vst [vmem:[#allocation65_spill] sm:$0xff] %v6693_v62  ;;  %v8249_v0 = vld [vmem:[#allocation58_spill] sm:$0xff]  ;;  %v6697_v3 = vpop.f32.mrb[29].mxu0  ;;  %v4779_v41 = vpack.c.bf16 %v3926_v12, %v3922_v21 }
 0x63e   :  { %4668 = vmatprep.subr.bf16.mxu1 %v4651_v11  ;;  %2807 = vmatprep.mubr.f32.mxu1 %v8237_v24  ;;  %8250 = vst [vmem:[#allocation58_spill] sm:$0xff] %v6697_v3  ;;  %v6703_v4 = vpop.f32.mrb[30].mxu0  ;;  %v3918_v11 = vld [vmem:[#allocation29 + $0x278] sm:$0xff] }
 0x63f   :  { %3248 = vrot.lane.b32.xlu0 %v6659_v34, %s5651_s15  ;;  %8252 = vst [vmem:[#allocation67_spill] sm:$0xff] %v6703_v4  ;;  %v6706_v61 = vpop.f32.mrb[31].mxu0  ;;  %4768 = vmatprep.subr.bf16.mxu0 %v4767_v42  ;;  %v4775_v10 = vpack.c.bf16 %v3918_v11, %v3914_v20  ;;  %v5115_v29 = vld [vmem:[#allocation14 + $0x18] sm:$0xff]  ;;  %v6734_v11 = vpop.permute.xlu0 %3078 }
 0x640   :  { %4525 = vmatmul.mubr.msk.f32.gmra.mrb[26].mxu1 %vm2635_vm3, %v8249_v0  ;;  %8253 = vst [vmem:[#allocation68_spill] sm:$0xff] %v6706_v61  ;;  %4770 = vmatpush1.bf16.msra.mxu0 %v4769_v60  ;;  %v3921_v42 = vld [vmem:[#allocation29 + $0x290] sm:$0xff]  ;;  %v3847_v0 = vld [vmem:[#allocation29 + $0x40] sm:$0xff]  ;;  %8259 = vst [vmem:[#allocation74_spill] sm:$0xff] %v6734_v11 }
 0x641   :  { %3250 = vrot.lane.b32.xlu1 %v6661_v47, %s5651_s15  ;;  %4670 = vmatpush1.bf16.msra.mxu1 %v4653_v27  ;;  %v5114_v27 = vld [vmem:[#allocation14 + $0x10] sm:$0xff]  ;;  %v3851_v60 = vld [vmem:[#allocation29 + $0x60] sm:$0xff]  ;;  %v4781_v20 = vpack.c.bf16 %v3925_v37, %v3921_v42  ;;  %v3938_v21 = vld [vmem:[#allocation29 + $0x318] sm:$0xff] }
 0x642   :  { %2813 = vmatprep.mubr.f32.mxu1 %v8237_v24  ;;  %4676 = vmatprep.subr.bf16.mxu1 %v4675_v31  ;;  %v6712_v40 = vpop.f32.mrb[32].mxu0  ;;  %v6725_v31 = vpop.permute.xlu1 %3076  ;;  %v3942_v12 = vld [vmem:[#allocation29 + $0x338] sm:$0xff]  ;;  %v3937_v42 = vld [vmem:[#allocation29 + $0x310] sm:$0xff] }
 0x643   :  { %3098 = vrot.lane.b32.xlu0 %v6665_v38, %s5639_s9  ;;  %8255 = vst [vmem:[#allocation70_spill] sm:$0xff] %v6712_v40  ;;  %v6715_v1 = vpop.f32.mrb[33].mxu0  ;;  %4772 = vmatprep.subr.bf16.mxu0 %v4771_v48  ;;  %8258 = vst [vmem:[#allocation73_spill] sm:$0xff] %v6725_v31  ;;  %v3930_v48 = vld [vmem:[#allocation29 + $0x2d8] sm:$0xff]  ;;  %v3941_v37 = vld [vmem:[#allocation29 + $0x330] sm:$0xff]  ;;  %v6746_v63 = vpop.permute.xlu0 %3082 }
 0x644   :  { %4526 = vmatmul.mubr.msk.f32.gmra.mrb[28].mxu1 %vm2635_vm3, %v5114_v27  ;;  %8256 = vst [vmem:[#allocation71_spill] sm:$0xff] %v6715_v1  ;;  %4774 = vmatpush1.bf16.msra.mxu0 %v4773_v45  ;;  %v4681_v27 = vpack.c.bf16 %v3851_v60, %v3847_v0  ;;  %v3929_v45 = vld [vmem:[#allocation29 + $0x2d0] sm:$0xff]  ;;  %v3867_v0 = vld [vmem:[#allocation29 + $0xe0] sm:$0xff]  ;;  %v4787_v60 = vpack.c.bf16 %v3942_v12, %v3938_v21  ;;  %8261 = vst [vmem:[#allocation76_spill] sm:$0xff] %v6746_v63 }
 0x645   :  { %3100 = vrot.lane.b32.xlu1 %v6667_v18, %s5639_s9  ;;  %2819 = vmatprep.mubr.f32.mxu1 %v8237_v24  ;;  %v3880_v21 = vld [vmem:[#allocation29 + $0x148] sm:$0xff] }
 0x646   :  { %4776 = vmatprep.subr.bf16.mxu0 %v4775_v10  ;;  %v4783_v10 = vpack.c.bf16 %v3934_v32, %v3930_v48  ;;  %v6737_v46 = vpop.permute.xlu1 %3080  ;;  %v3872_v48 = vld [vmem:[#allocation29 + $0x108] sm:$0xff]  ;;  %v4789_v32 = vpack.c.bf16 %v3941_v37, %v3937_v42  ;;  %v3953_v42 = vld [vmem:[#allocation29 + $0x390] sm:$0xff] }
 0x647   :  { %3256 = vrot.lane.b32.xlu0 %v6665_v38, %s5651_s15  ;;  %8260 = vst [vmem:[#allocation75_spill] sm:$0xff] %v6737_v46  ;;  %v6763_v12 = vpop.permute.xlu0 %3228  ;;  %v3957_v37 = vld [vmem:[#allocation29 + $0x3b0] sm:$0xff] }
 0x648   :  { %4527 = vmatmul.mubr.msk.f32.gmra.mrb[30].mxu1 %vm2635_vm3, %v5115_v29  ;;  %4778 = vmatpush1.bf16.msra.mxu0 %v4777_v50  ;;  %v4785_v29 = vpack.c.bf16 %v3933_v54, %v3929_v45  ;;  %v4685_v50 = vpack.c.bf16 %v3859_v22, %v3855_v33  ;;  %v3871_v45 = vld [vmem:[#allocation29 + $0x100] sm:$0xff]  ;;  %v3949_v33 = vld [vmem:[#allocation29 + $0x370] sm:$0xff]  ;;  %8263 = vst [vmem:[#allocation78_spill] sm:$0xff] %v6763_v12 }
 0x649   :  { %3258 = vrot.lane.b32.xlu1 %v6667_v18, %s5651_s15  ;;  %3496 = vmatprep.mubr.f32.mxu1 %v8237_v24 }
 0x64a   :  { %4780 = vmatprep.subr.bf16.mxu0 %v4779_v41  ;;  %v3950_v41 = vld [vmem:[#allocation29 + $0x378] sm:$0xff] }
 0x64b   :  { %3521 = vrot.lane.b32.xlu0 %v6686_v13, %s5639_s9  ;;  %v4791_v54 = vpack.c.bf16 %v3950_v41, %v3946_v14  ;;  %v3966_v14 = vld [vmem:[#allocation29 + $0x3f8] sm:$0xff] }
 0x64c   :  { %4537 = vmatmul.mubr.msk.f32.vlgmr.msra.gmra.mrb[32].mxu1 %vm2635_vm3, %v6519_v17  ;;  %v3868_v17 = vld [vmem:[#allocation29 + $0xe8] sm:$0xff]  ;;  %4782 = vmatpush1.bf16.msra.mxu0 %v4781_v20  ;;  %v6754_v20 = vpop.permute.xlu1 %3084 }
 0x64d   :  { %3502 = vmatprep.mubr.f32.mxu1 %v8237_v24  ;;  %4678 = vmatpush1.bf16.msra.mxu1 %v4677_v55  ;;  %v3863_v55 = vld [vmem:[#allocation29 + $0xc0] sm:$0xff]  ;;  %8262 = vst [vmem:[#allocation77_spill] sm:$0xff] %v6754_v20 }
 0x64e   :  { %4680 = vmatprep.subr.bf16.mxu1 %v4679_v30  ;;  %3523 = vrot.lane.b32.xlu1 %v6693_v62, %s5639_s9  ;;  %v4687_v30 = vpack.c.bf16 %v3868_v17, %v3864_v59  ;;  %v3875_v59 = vld [vmem:[#allocation29 + $0x120] sm:$0xff]  ;;  %v3958_v17 = vld [vmem:[#allocation29 + $0x3b8] sm:$0xff] }
 0x64f   :  { %3679 = vrot.lane.b32.xlu0 %v6686_v13, %s5651_s15  ;;  %4784 = vmatprep.subr.bf16.mxu0 %v4783_v10  ;;  %v3954_v10 = vld [vmem:[#allocation29 + $0x398] sm:$0xff] }
 0x650   :  { %4538 = vmatmul.mubr.msk.f32.gmra.mrb[34].mxu1 %vm2635_vm3, %v6524_v51  ;;  %v3876_v51 = vld [vmem:[#allocation29 + $0x128] sm:$0xff]  ;;  %4786 = vmatpush1.bf16.msra.mxu0 %v4785_v29  ;;  %v4693_v29 = vpack.c.bf16 %v3875_v59, %v3871_v45  ;;  %v6765_v41 = vpop.permute.xlu1 %3230  ;;  %v3961_v45 = vld [vmem:[#allocation29 + $0x3d0] sm:$0xff]  ;;  %v6771_v59 = vpop.permute.xlu0 %3232 }
 0x651   :  { %3508 = vmatprep.mubr.f32.mxu1 %v8237_v24  ;;  %4682 = vmatpush1.bf16.msra.mxu1 %v4681_v27  ;;  %v4689_v27 = vpack.c.bf16 %v3867_v0, %v3863_v55  ;;  %v4691_v22 = vpack.c.bf16 %v3876_v51, %v3872_v48  ;;  %v4795_v55 = vpack.c.bf16 %v3958_v17, %v3954_v10  ;;  %v3883_v0 = vld [vmem:[#allocation29 + $0x160] sm:$0xff]  ;;  %v3888_v48 = vld [vmem:[#allocation29 + $0x188] sm:$0xff] }
 0x652   :  { %4684 = vmatprep.subr.bf16.mxu1 %v4683_v25  ;;  %3681 = vrot.lane.b32.xlu1 %v6693_v62, %s5651_s15  ;;  %v3945_v25 = vld [vmem:[#allocation29 + $0x350] sm:$0xff]  ;;  %8264 = vst [vmem:[#allocation79_spill] sm:$0xff] %v6765_v41  ;;  %v4797_v51 = vpack.c.bf16 %v3957_v37, %v3953_v42  ;;  %v3896_v10 = vld [vmem:[#allocation29 + $0x1c8] sm:$0xff] }
 0x653   :  { %3529 = vrot.lane.b32.xlu0 %v6689_v56, %s5639_s9  ;;  %4788 = vmatprep.subr.bf16.mxu0 %v4787_v60  ;;  %v3962_v60 = vld [vmem:[#allocation29 + $0x3d8] sm:$0xff]  ;;  %v3900_v17 = vld [vmem:[#allocation29 + $0x1e8] sm:$0xff] }
 0x654   :  { %4539 = vmatmul.mubr.msk.f32.gmra.mrb[36].mxu1 %vm2635_vm3, %v6529_v53  ;;  %v3884_v53 = vld [vmem:[#allocation29 + $0x168] sm:$0xff]  ;;  %4790 = vmatpush1.bf16.msra.mxu0 %v4789_v32 }
 0x655   :  { %3514 = vmatprep.mubr.f32.mxu1 %v8237_v24  ;;  %4686 = vmatpush1.bf16.msra.mxu1 %v4685_v50  ;;  %v4793_v24 = vpack.c.bf16 %v3949_v33, %v3945_v25  ;;  %v3879_v50 = vld [vmem:[#allocation29 + $0x140] sm:$0xff]  ;;  %v3904_v42 = vld [vmem:[#allocation29 + $0x208] sm:$0xff] }
 0x656   :  { %4688 = vmatprep.subr.bf16.mxu1 %v4687_v30  ;;  %3531 = vrot.lane.b32.xlu1 %v6697_v3, %s5639_s9  ;;  %v4695_v30 = vpack.c.bf16 %v3884_v53, %v3880_v21  ;;  %v4697_v32 = vpack.c.bf16 %v3883_v0, %v3879_v50  ;;  %v3887_v33 = vld [vmem:[#allocation29 + $0x180] sm:$0xff]  ;;  %v6777_v53 = vpop.permute.xlu1 %3234  ;;  %v3908_v37 = vld [vmem:[#allocation29 + $0x228] sm:$0xff] }
 0x657   :  { %3687 = vrot.lane.b32.xlu0 %v6689_v56, %s5651_s15  ;;  %4792 = vmatprep.subr.bf16.mxu0 %v4791_v54  ;;  %v3965_v54 = vld [vmem:[#allocation29 + $0x3f0] sm:$0xff]  ;;  %v3895_v50 = vld [vmem:[#allocation29 + $0x1c0] sm:$0xff]  ;;  %v3964_v62 = vld [vmem:[#allocation29 + $0x3e8] sm:$0xff] }
 0x658   :  { %4540 = vmatmul.mubr.msk.f32.gmra.mrb[38].mxu1 %vm2635_vm3, %v6534_v58  ;;  %v3892_v58 = vld [vmem:[#allocation29 + $0x1a8] sm:$0xff]  ;;  %4794 = vmatpush1.bf16.msra.mxu0 %v4793_v24  ;;  %v4801_v21 = vpack.c.bf16 %v3965_v54, %v3961_v45 }
 0x659   :  { %4690 = vmatpush1.bf16.msra.mxu1 %v4689_v27  ;;  %4796 = vmatprep.subr.bf16.mxu0 %v4795_v55  ;;  %v4799_v27 = vpack.c.bf16 %v3966_v14, %v3962_v60  ;;  %v4699_v25 = vpack.c.bf16 %v3892_v58, %v3888_v48  ;;  %v3899_v55 = vld [vmem:[#allocation29 + $0x1e0] sm:$0xff]  ;;  %v4707_v60 = vpack.c.bf16 %v3908_v37, %v3904_v42  ;;  %v3928_v37 = vld [vmem:[#allocation29 + $0x2c8] sm:$0xff] }
 0x65a   :  { %4692 = vmatprep.subr.bf16.mxu1 %v4691_v22  ;;  %3689 = vrot.lane.b32.xlu1 %v6697_v3, %s5651_s15  ;;  %v3891_v22 = vld [vmem:[#allocation29 + $0x1a0] sm:$0xff]  ;;  %v4705_v0 = vpack.c.bf16 %v3899_v55, %v3895_v50  ;;  %v6785_v58 = vpop.permute.xlu1 %3238  ;;  %v3956_v3 = vld [vmem:[#allocation29 + $0x3a8] sm:$0xff] }
 0x65b   :  { %3525 = vrot.lane.b32.xlu0 %v6703_v4, %s5639_s9  ;;  %v4701_v24 = vpack.c.bf16 %v3891_v22, %v3887_v33  ;;  %v3903_v14 = vld [vmem:[#allocation29 + $0x200] sm:$0xff]  ;;  %8266 = vst [vmem:[#allocation81_spill] sm:$0xff] %v6785_v58 }
 0x65c   :  { %4798 = vmatpush1.bf16.msra.mxu0 %v4797_v51  ;;  %v3907_v48 = vld [vmem:[#allocation29 + $0x220] sm:$0xff]  ;;  %v3912_v51 = vld [vmem:[#allocation29 + $0x248] sm:$0xff] }
 0x65d   :  { %4694 = vmatpush1.bf16.msra.mxu1 %v4693_v29  ;;  %4800 = vmatprep.subr.bf16.mxu0 %v4799_v27  ;;  %v4703_v29 = vpack.c.bf16 %v3900_v17, %v3896_v10  ;;  %v4709_v45 = vpack.c.bf16 %v3907_v48, %v3903_v14  ;;  %v3915_v33 = vld [vmem:[#allocation29 + $0x260] sm:$0xff]  ;;  %v3920_v10 = vld [vmem:[#allocation29 + $0x288] sm:$0xff] }
 0x65e   :  { %4696 = vmatprep.subr.bf16.mxu1 %v4695_v30  ;;  %3527 = vrot.lane.b32.xlu1 %v6712_v40, %s5639_s9  ;;  %v6783_v30 = vpop.permute.xlu0 %3236  ;;  %v6793_v22 = vpop.permute.xlu1 %3242  ;;  %v3924_v17 = vld [vmem:[#allocation29 + $0x2a8] sm:$0xff]  ;;  %v3919_v50 = vld [vmem:[#allocation29 + $0x280] sm:$0xff] }
 0x65f   :  { %3683 = vrot.lane.b32.xlu0 %v6703_v4, %s5651_s15  ;;  %8265 = vst [vmem:[#allocation80_spill] sm:$0xff] %v6783_v30  ;;  %v3923_v55 = vld [vmem:[#allocation29 + $0x2a0] sm:$0xff]  ;;  %v3952_v4 = vld [vmem:[#allocation29 + $0x388] sm:$0xff] }
 0x660   :  { %4802 = vmatpush1.bf16.msra.mxu0 %v4801_v21  ;;  %v3927_v48 = vld [vmem:[#allocation29 + $0x2c0] sm:$0xff] }
 0x661   :  { %4698 = vmatpush1.bf16.msra.mxu1 %v4697_v32  ;;  %v3916_v32 = vld [vmem:[#allocation29 + $0x268] sm:$0xff] }
 0x662   :  { %4700 = vmatprep.subr.bf16.mxu1 %v4699_v25  ;;  %3685 = vrot.lane.b32.xlu1 %v6712_v40, %s5651_s15  ;;  %v6791_v27 = vpop.permute.xlu0 %3240  ;;  %v4711_v54 = vpack.c.bf16 %v3916_v32, %v3912_v51  ;;  %v3911_v25 = vld [vmem:[#allocation29 + $0x240] sm:$0xff]  ;;  %v6799_v42 = vpop.permute.xlu1 %2828  ;;  %v3940_v40 = vld [vmem:[#allocation29 + $0x328] sm:$0xff] }
 0x663   :  { %3533 = vrot.lane.b32.xlu0 %v6706_v61, %s5639_s9  ;;  %v3931_v51 = vld [vmem:[#allocation29 + $0x2e0] sm:$0xff] }
 0x665   :  { %4702 = vmatpush1.bf16.msra.mxu1 %v4701_v24  ;;  %v4713_v24 = vpack.c.bf16 %v3915_v33, %v3911_v25  ;;  %v3935_v33 = vld [vmem:[#allocation29 + $0x300] sm:$0xff] }
 0x666   :  { %4704 = vmatprep.subr.bf16.mxu1 %v4703_v29  ;;  %3535 = vrot.lane.b32.xlu1 %v6715_v1, %s5639_s9  ;;  %v6797_v21 = vpop.permute.xlu0 %2826  ;;  %v4715_v29 = vpack.c.bf16 %v3924_v17, %v3920_v10  ;;  %v3939_v10 = vld [vmem:[#allocation29 + $0x320] sm:$0xff]  ;;  %v3944_v17 = vld [vmem:[#allocation29 + $0x348] sm:$0xff] }
 0x667   :  { %3691 = vrot.lane.b32.xlu0 %v6706_v61, %s5651_s15  ;;  %v3948_v61 = vld [vmem:[#allocation29 + $0x368] sm:$0xff] }
 0x669   :  { %4706 = vmatpush1.bf16.msra.mxu1 %v4705_v0  ;;  %v3932_v0 = vld [vmem:[#allocation29 + $0x2e8] sm:$0xff] }
 0x66a   :  { %4708 = vmatprep.subr.bf16.mxu1 %v4707_v60  ;;  %3693 = vrot.lane.b32.xlu1 %v6715_v1, %s5651_s15  ;;  %v4717_v60 = vpack.c.bf16 %v3923_v55, %v3919_v50  ;;  %v4719_v14 = vpack.c.bf16 %v3932_v0, %v3928_v37  ;;  %v6801_v32 = vpop.permute.xlu0 %2967  ;;  %v3936_v1 = vld [vmem:[#allocation29 + $0x308] sm:$0xff]  ;;  %v4727_v50 = vpack.c.bf16 %v3948_v61, %v3944_v17  ;;  %v3943_v55 = vld [vmem:[#allocation29 + $0x340] sm:$0xff] }
 0x66b   :  { %v4723_v25 = vpack.c.bf16 %v3940_v40, %v3936_v1  ;;  %v3947_v37 = vld [vmem:[#allocation29 + $0x360] sm:$0xff]  ;;  %v4731_v40 = vpack.c.bf16 %v3956_v3, %v3952_v4 }
 0x66c   :  { %v3951_v1 = vld [vmem:[#allocation29 + $0x380] sm:$0xff] }
 0x66d   :  { %4710 = vmatpush1.bf16.msra.mxu1 %v4709_v45  ;;  %v6803_v45 = vpop.permute.xlu1 %2969 }
 0x66e   :  { %4712 = vmatprep.subr.bf16.mxu1 %v4711_v54  ;;  %v4721_v54 = vpack.c.bf16 %v3931_v51, %v3927_v48  ;;  %v3960_v51 = vld [vmem:[#allocation29 + $0x3c8] sm:$0xff] }
 0x671   :  { %4714 = vmatpush1.bf16.msra.mxu1 %v4713_v24  ;;  %v6805_v24 = vpop.permute.xlu0 %2834  ;;  %v6807_v0 = vpop.permute.xlu1 %2836 }
 0x672   :  { %4716 = vmatprep.subr.bf16.mxu1 %v4715_v29  ;;  %v4725_v29 = vpack.c.bf16 %v3939_v10, %v3935_v33  ;;  %v3959_v33 = vld [vmem:[#allocation29 + $0x3c0] sm:$0xff] }
 0x673   :  { %v3963_v10 = vld [vmem:[#allocation29 + $0x3e0] sm:$0xff] }
 0x675   :  { %4718 = vmatpush1.bf16.msra.mxu1 %v4717_v60  ;;  %v4729_v60 = vpack.c.bf16 %v3947_v37, %v3943_v55  ;;  %v6809_v48 = vpop.permute.xlu0 %2975 }
 0x676   :  { %4720 = vmatprep.subr.bf16.mxu1 %v4719_v14  ;;  %v3955_v14 = vld [vmem:[#allocation29 + $0x3a0] sm:$0xff] }
 0x677   :  { %v4733_v61 = vpack.c.bf16 %v3955_v14, %v3951_v1 }
 0x679   :  { %4722 = vmatpush1.bf16.msra.mxu1 %v4721_v54  ;;  %v6811_v54 = vpop.permute.xlu1 %2977  ;;  %v6813_v17 = vpop.permute.xlu0 %2830 }
 0x67a   :  { %4724 = vmatprep.subr.bf16.mxu1 %v4723_v25  ;;  %v4735_v25 = vpack.c.bf16 %v3964_v62, %v3960_v51  ;;  %8267 = vst [vmem:[#allocation82_spill] sm:$0xff] %v6813_v17 }
 0x67d   :  { %4726 = vmatpush1.bf16.msra.mxu1 %v4725_v29  ;;  %v4737_v29 = vpack.c.bf16 %v3963_v10, %v3959_v33  ;;  %v6815_v3 = vpop.permute.xlu1 %2832  ;;  %v6817_v55 = vpop.permute.xlu0 %2971 }
 0x67e   :  { %4728 = vmatprep.subr.bf16.mxu1 %v4727_v50  ;;  %8268 = vst [vmem:[#allocation83_spill] sm:$0xff] %v6815_v3  ;;  %8269 = vst [vmem:[#allocation84_spill] sm:$0xff] %v6817_v55 }
 0x681   :  { %4730 = vmatpush1.bf16.msra.mxu1 %v4729_v60  ;;  %v6819_v60 = vpop.permute.xlu1 %2973  ;;  %v6821_v14 = vpop.permute.xlu0 %2838 }
 0x682   :  { %4732 = vmatprep.subr.bf16.mxu1 %v4731_v40  ;;  %8270 = vst [vmem:[#allocation85_spill] sm:$0xff] %v6819_v60  ;;  %8271 = vst [vmem:[#allocation86_spill] sm:$0xff] %v6821_v14 }
 0x685   :  { %4734 = vmatpush1.bf16.msra.mxu1 %v4733_v61  ;;  %v6823_v51 = vpop.permute.xlu1 %2840  ;;  %v6825_v33 = vpop.permute.xlu0 %2979 }
 0x686   :  { %4736 = vmatprep.subr.bf16.mxu1 %v4735_v25  ;;  %8272 = vst [vmem:[#allocation87_spill] sm:$0xff] %v6823_v51  ;;  %8273 = vst [vmem:[#allocation88_spill] sm:$0xff] %v6825_v33 }
 0x687   :  { %v4045_v4 = vpop.f32.mrb[34].mxu0 }
 0x688   :  { %v4047_v50 = vpop.f32.mrb[35].mxu0 }
 0x689   :  { %4738 = vmatpush1.bf16.msra.mxu1 %v4737_v29  ;;  %4132 = vmatprep.mubr.f32.mxu1 %v4047_v50  ;;  %v6827_v10 = vpop.permute.xlu1 %2981 }
 0x68a   :  { %4221 = vmatprep.mubr.f32.mxu0 %v4047_v50  ;;  %8274 = vst [vmem:[#allocation89_spill] sm:$0xff] %v6827_v10 }
 0x68b   :  { %v4051_v37 = vpop.f32.mrb[36].mxu0  ;;  %4222 = vmatmul.mubr.f32.vlgmr.msra.gmra.mrb[42].mxu0 %v4045_v4 }
 0x68c   :  { %4133 = vmatmul.mubr.f32.vlgmr.msra.gmra.mrb[40].mxu1 %v4045_v4  ;;  %v4053_v62 = vpop.f32.mrb[37].mxu0 }
 0x68d   :  { %4138 = vmatprep.mubr.f32.mxu1 %v4053_v62  ;;  %4227 = vmatprep.mubr.f32.mxu0 %v4053_v62 }
 0x68f   :  { %4228 = vmatmul.mubr.f32.gmra.mrb[44].mxu0 %v4051_v37  ;;  %v4057_v40 = vpop.f32.mrb[38].mxu0 }
 0x690   :  { %4139 = vmatmul.mubr.f32.gmra.mrb[42].mxu1 %v4051_v37  ;;  %v4059_v1 = vpop.f32.mrb[39].mxu0 }
 0x691   :  { %4144 = vmatprep.mubr.f32.mxu1 %v4059_v1  ;;  %4233 = vmatprep.mubr.f32.mxu0 %v4059_v1 }
 0x693   :  { %v4063_v61 = vpop.f32.mrb[40].mxu0  ;;  %4234 = vmatmul.mubr.f32.gmra.mrb[46].mxu0 %v4057_v40 }
 0x694   :  { %4145 = vmatmul.mubr.f32.gmra.mrb[44].mxu1 %v4057_v40  ;;  %v4065_v25 = vpop.f32.mrb[41].mxu0 }
 0x695   :  { %4150 = vmatprep.mubr.f32.mxu1 %v4065_v25  ;;  %4239 = vmatprep.mubr.f32.mxu0 %v4065_v25 }
 0x697   :  { %4240 = vmatmul.mubr.f32.gmra.mrb[48].mxu0 %v4063_v61 }
 0x698   :  { %4151 = vmatmul.mubr.f32.gmra.mrb[46].mxu1 %v4063_v61 }
 0x69d   :  { %v6829_v29 = vpop.permute.xlu0 %3086 }
 0x69e   :  { %8275 = vst [vmem:[#allocation90_spill] sm:$0xff] %v6829_v29 }
 0x69f   :  { %v6831_v4 = vpop.permute.xlu1 %3088 }
 0x6a0   :  { %8276 = vst [vmem:[#allocation91_spill] sm:$0xff] %v6831_v4 }
 0x6a1   :  { %v6833_v50 = vpop.permute.xlu0 %3244 }
 0x6a2   :  { %8277 = vst [vmem:[#allocation92_spill] sm:$0xff] %v6833_v50 }
 0x6a3   :  { %v6835_v37 = vpop.permute.xlu1 %3246 }
 0x6a4   :  { %8278 = vst [vmem:[#allocation93_spill] sm:$0xff] %v6835_v37 }
 0x6a5   :  { %v6837_v62 = vpop.permute.xlu0 %3094 }
 0x6a6   :  { %8279 = vst [vmem:[#allocation94_spill] sm:$0xff] %v6837_v62  ;;  %v6843_v40 = vsel %vm1032_vm4, %v6829_v29, %v6837_v62 }
 0x6a7   :  { %8280 = vst [vmem:[#allocation95_spill] sm:$0xff] %v6843_v40  ;;  %v6845_v1 = vpop.permute.xlu1 %3096 }
 0x6a8   :  { %8281 = vst [vmem:[#allocation96_spill] sm:$0xff] %v6845_v1  ;;  %v6851_v61 = vsel %vm1032_vm4, %v6831_v4, %v6845_v1 }
 0x6a9   :  { %8282 = vst [vmem:[#allocation97_spill] sm:$0xff] %v6851_v61  ;;  %v6853_v25 = vpop.permute.xlu0 %3252 }
 0x6aa   :  { %8283 = vst [vmem:[#allocation98_spill] sm:$0xff] %v6853_v25  ;;  %v6859_v56 = vsel %vm1082_vm5, %v6833_v50, %v6853_v25 }
 0x6ab   :  { %8284 = vst [vmem:[#allocation99_spill] sm:$0xff] %v6859_v56  ;;  %v6861_v13 = vpop.permute.xlu1 %3254 }
 0x6ac   :  { %8285 = vst [vmem:[#allocation100_spill] sm:$0xff] %v6861_v13  ;;  %v6867_v40 = vsel %vm1082_vm5, %v6835_v37, %v6861_v13 }
 0x6ad   :  { %8286 = vst [vmem:[#allocation101_spill] sm:$0xff] %v6867_v40  ;;  %v6869_v62 = vpop.permute.xlu0 %3090 }
 0x6ae   :  { %8287 = vst [vmem:[#allocation102_spill] sm:$0xff] %v6869_v62 }
 0x6af   :  { %v6871_v1 = vpop.permute.xlu1 %3092 }
 0x6b0   :  { %8288 = vst [vmem:[#allocation103_spill] sm:$0xff] %v6871_v1 }
 0x6b1   :  { %v6873_v61 = vpop.permute.xlu0 %3248 }
 0x6b2   :  { %8289 = vst [vmem:[#allocation104_spill] sm:$0xff] %v6873_v61 }
 0x6b3   :  { %v6875_v4 = vpop.permute.xlu1 %3250 }
 0x6b4   :  { %8290 = vst [vmem:[#allocation105_spill] sm:$0xff] %v6875_v4 }
 0x6b5   :  { %v6877_v29 = vpop.permute.xlu0 %3098 }
 0x6b6   :  { %8291 = vst [vmem:[#allocation106_spill] sm:$0xff] %v6877_v29  ;;  %v6883_v56 = vsel %vm1032_vm4, %v6869_v62, %v6877_v29 }
 0x6b7   :  { %8292 = vst [vmem:[#allocation107_spill] sm:$0xff] %v6883_v56  ;;  %v6885_v25 = vpop.permute.xlu1 %3100 }
 0x6b8   :  { %8293 = vst [vmem:[#allocation108_spill] sm:$0xff] %v6885_v25  ;;  %v6891_v40 = vsel %vm1032_vm4, %v6871_v1, %v6885_v25 }
 0x6b9   :  { %8294 = vst [vmem:[#allocation109_spill] sm:$0xff] %v6891_v40  ;;  %v6893_v13 = vpop.permute.xlu0 %3256 }
 0x6ba   :  { %8295 = vst [vmem:[#allocation110_spill] sm:$0xff] %v6893_v13  ;;  %v6899_v37 = vsel %vm1082_vm5, %v6873_v61, %v6893_v13 }
 0x6bb   :  { %8296 = vst [vmem:[#allocation111_spill] sm:$0xff] %v6899_v37  ;;  %v6901_v50 = vpop.permute.xlu1 %3258 }
 0x6bc   :  { %8297 = vst [vmem:[#allocation112_spill] sm:$0xff] %v6901_v50  ;;  %v6907_v56 = vsel %vm1082_vm5, %v6875_v4, %v6901_v50 }
 0x6bd   :  { %8298 = vst [vmem:[#allocation113_spill] sm:$0xff] %v6907_v56 }
 0x70f   :  { %v6909_v29 = vpop.f32.mrb[24].mxu1 }
 0x710   :  { %8299 = vst [vmem:[#allocation114_spill] sm:$0xff] %v6909_v29  ;;  %2842 = vrot.lane.b32.xlu0 %v6909_v29, %s5639_s9  ;;  %v6913_v40 = vpop.f32.mrb[25].mxu1 }
 0x711   :  { %8300 = vst [vmem:[#allocation115_spill] sm:$0xff] %v6913_v40 }
 0x713   :  { %v6915_v25 = vpop.f32.mrb[26].mxu1 }
 0x714   :  { %8301 = vst [vmem:[#allocation116_spill] sm:$0xff] %v6915_v25  ;;  %2983 = vrot.lane.b32.xlu0 %v6909_v29, %s5651_s15  ;;  %2844 = vrot.lane.b32.xlu1 %v6915_v25, %s5639_s9  ;;  %v6921_v37 = vpop.f32.mrb[27].mxu1 }
 0x715   :  { %8302 = vst [vmem:[#allocation117_spill] sm:$0xff] %v6921_v37 }
 0x717   :  { %v6923_v13 = vpop.f32.mrb[28].mxu1 }
 0x718   :  { %8303 = vst [vmem:[#allocation118_spill] sm:$0xff] %v6923_v13  ;;  %2850 = vrot.lane.b32.xlu0 %v6913_v40, %s5639_s9  ;;  %2985 = vrot.lane.b32.xlu1 %v6915_v25, %s5651_s15  ;;  %v6929_v56 = vpop.f32.mrb[29].mxu1 }
 0x719   :  { %8304 = vst [vmem:[#allocation119_spill] sm:$0xff] %v6929_v56 }
 0x71b   :  { %v6931_v50 = vpop.f32.mrb[30].mxu1 }
 0x71c   :  { %8305 = vst [vmem:[#allocation120_spill] sm:$0xff] %v6931_v50  ;;  %2991 = vrot.lane.b32.xlu0 %v6913_v40, %s5651_s15  ;;  %2852 = vrot.lane.b32.xlu1 %v6921_v37, %s5639_s9  ;;  %v6937_v29 = vpop.f32.mrb[31].mxu1 }
 0x71d   :  { %8306 = vst [vmem:[#allocation121_spill] sm:$0xff] %v6937_v29 }
 0x71f   :  { %v6939_v4 = vpop.f32.mrb[32].mxu1 }
 0x720   :  { %8307 = vst [vmem:[#allocation122_spill] sm:$0xff] %v6939_v4  ;;  %2993 = vrot.lane.b32.xlu1 %v6921_v37, %s5651_s15  ;;  %2846 = vrot.lane.b32.xlu0 %v6923_v13, %s5639_s9  ;;  %v6945_v25 = vpop.f32.mrb[33].mxu1 }
 0x721   :  { %8308 = vst [vmem:[#allocation123_spill] sm:$0xff] %v6945_v25 }
 0x723   :  { %v6947_v61 = vpop.f32.mrb[34].mxu1 }
 0x724   :  { %8309 = vst [vmem:[#allocation124_spill] sm:$0xff] %v6947_v61  ;;  %2987 = vrot.lane.b32.xlu0 %v6923_v13, %s5651_s15  ;;  %2848 = vrot.lane.b32.xlu1 %v6931_v50, %s5639_s9  ;;  %v6953_v40 = vpop.f32.mrb[35].mxu1 }
 0x725   :  { %8310 = vst [vmem:[#allocation125_spill] sm:$0xff] %v6953_v40 }
 0x727   :  { %v6955_v1 = vpop.f32.mrb[36].mxu1 }
 0x728   :  { %8311 = vst [vmem:[#allocation126_spill] sm:$0xff] %v6955_v1  ;;  %2854 = vrot.lane.b32.xlu0 %v6929_v56, %s5639_s9  ;;  %2989 = vrot.lane.b32.xlu1 %v6931_v50, %s5651_s15  ;;  %v6961_v37 = vpop.f32.mrb[37].mxu1 }
 0x729   :  { %8312 = vst [vmem:[#allocation127_spill] sm:$0xff] %v6961_v37 }
 0x72b   :  { %v6963_v62 = vpop.f32.mrb[38].mxu1 }
 0x72c   :  { %8313 = vst [vmem:[#allocation128_spill] sm:$0xff] %v6963_v62  ;;  %2995 = vrot.lane.b32.xlu0 %v6929_v56, %s5651_s15  ;;  %2856 = vrot.lane.b32.xlu1 %v6937_v29, %s5639_s9  ;;  %v6969_v13 = vpop.f32.mrb[39].mxu1 }
 0x72d   :  { %8314 = vst [vmem:[#allocation129_spill] sm:$0xff] %v6969_v13 }
 0x730   :  { %2997 = vrot.lane.b32.xlu1 %v6937_v29, %s5651_s15  ;;  %3537 = vrot.lane.b32.xlu0 %v6939_v4, %s5639_s9 }
 0x734   :  { %3695 = vrot.lane.b32.xlu0 %v6939_v4, %s5651_s15  ;;  %3539 = vrot.lane.b32.xlu1 %v6947_v61, %s5639_s9 }
 0x738   :  { %3545 = vrot.lane.b32.xlu0 %v6945_v25, %s5639_s9  ;;  %3697 = vrot.lane.b32.xlu1 %v6947_v61, %s5651_s15 }
 0x73c   :  { %3703 = vrot.lane.b32.xlu0 %v6945_v25, %s5651_s15  ;;  %3547 = vrot.lane.b32.xlu1 %v6953_v40, %s5639_s9 }
 0x740   :  { %3705 = vrot.lane.b32.xlu1 %v6953_v40, %s5651_s15  ;;  %3541 = vrot.lane.b32.xlu0 %v6955_v1, %s5639_s9  ;;  %v7003_v40 = vpop.permute.xlu0 %3521 }
 0x741   :  { %8315 = vst [vmem:[#allocation130_spill] sm:$0xff] %v7003_v40 }
 0x744   :  { %3699 = vrot.lane.b32.xlu0 %v6955_v1, %s5651_s15  ;;  %3543 = vrot.lane.b32.xlu1 %v6963_v62, %s5639_s9  ;;  %v7007_v1 = vpop.permute.xlu1 %3523 }
 0x745   :  { %8316 = vst [vmem:[#allocation131_spill] sm:$0xff] %v7007_v1 }
 0x748   :  { %3549 = vrot.lane.b32.xlu0 %v6961_v37, %s5639_s9  ;;  %3701 = vrot.lane.b32.xlu1 %v6963_v62, %s5651_s15 }
 0x74c   :  { %3707 = vrot.lane.b32.xlu0 %v6961_v37, %s5651_s15  ;;  %3551 = vrot.lane.b32.xlu1 %v6969_v13, %s5639_s9 }
 0x750   :  { %3709 = vrot.lane.b32.xlu1 %v6969_v13, %s5651_s15 }
 0x751   :  { %5545 = shalt.err (!%p5542_p2)
}
 0x752   :  { %s8317_s30 = sld [smem:[#allocation185_spill]] }
 0x758   :  { %s5546_s6 = scalar_lea.hbm %s8317_s30, 512 }
 0x759   :  { %p5547_p3 = scmp.ne.s32.totalorder %s8317_s30, %s5546_s6  ;;  %p5550_p4 = scmp.lt.u32.totalorder %s5546_s6, %s8317_s30 }
 0x75b   :  { %p5552_p5 = pnand %p5550_p4, %p5547_p3 }
 0x75d   :  { %5555 = shalt.err (!%p5552_p5)
}
 0x75e   :  { %4301 = dma.vmem_to_hbm [thread:$0]  %s4296_s0, 512, %s8317_s30, [#allocation34], %s8225_s2, %s8225_s2, %s5626_s11   ;;  %v7029_v62 = vpop.permute.xlu0 %3679  ;;  %v7031_v37 = vpop.permute.xlu1 %3681 }
 0x75f   :  { %s8318_s22 = sld [smem:[#allocation177_spill]]  ;;  %8319 = vst [vmem:[#allocation132_spill] sm:$0xff] %v7029_v62  ;;  %s5653_s20 = smov [#allocation35]   ;;  %8320 = vst [vmem:[#allocation133_spill] sm:$0xff] %v7031_v37 }
 0x760   :  { %s4308_s14 = sshll.u32 %s5653_s20, 4  ;;  %s4309_s14 = int_to_ptr.vmem [resolvable:$true] %s4308_s14 }
 0x761   :  { %s5556_s24 = scalar_lea.vmem %s4309_s14, 128  ;;  %p5561_p7 = scmp.lt.s32.totalorder %s4309_s14, %s4309_s14 }
 0x762   :  { %p5557_p6 = scmp.ne.s32.totalorder %s4309_s14, %s5556_s24  ;;  %p5562_p8 = scmp.lt.s32.totalorder %s5556_s24, %s5556_s24 }
 0x764   :  { %p5563_p9 = por %p5562_p8, %p5561_p7 }
 0x765   :  { %v7027_v13 = vld [vmem:[%s8318_s22 + $0x4] ss:$8 sm:$0xf] }
 0x766   :  { %v3179_v61 = vrot.slane %v7027_v13, %v6165_v5  ;;  %p5564_p10 = pnand %p5563_p9, %p5557_p6 }
 0x768   :  { %5567 = shalt.err (!%p5564_p10)
}
 0x769   :  { %s8321_s18 = sld [smem:[#allocation186_spill]] }
 0x76f   :  { %s5568_s23 = scalar_lea.hbm %s8321_s18, 128 }
 0x770   :  { %p5569_p11 = scmp.ne.s32.totalorder %s8321_s18, %s5568_s23  ;;  %p5572_p12 = scmp.lt.u32.totalorder %s5568_s23, %s8321_s18 }
 0x772   :  { %p5574_p13 = pnand %p5572_p12, %p5569_p11 }
 0x774   :  { %5577 = shalt.err (!%p5574_p13)
}
 0x775   :  { %4311 = dma.vmem_to_hbm [thread:$0]  %s4309_s14, 128, %s8321_s18, [#allocation34]   ;;  %v3183_v25 = vrot.slane %v7027_v13, %v6168_v7  ;;  %v7052_v4 = vld [vmem:[%s8318_s22 + $0x3] ss:$8 sm:$0xf]  ;;  %v7064_v56 = vpop.permute.xlu0 %3529  ;;  %v7081_v28 = vpop.permute.xlu1 %3531 }
 0x776   :  { %v7057_v29 = vld [vmem:[%s8318_s22 + $0x5] ss:$8 sm:$0xf]  ;;  %v7062_v50 = vld [vmem:[%s8318_s22 + $0x1] ss:$8 sm:$0xf]  ;;  %v3128_v38 = vrot.slane %v7052_v4, %v6168_v7 }
 0x777   :  { %8322 = vst [vmem:[#allocation134_spill] sm:$0xff] %v7062_v50  ;;  %8323 = vst [vmem:[#allocation135_spill] sm:$0xff] %v7064_v56  ;;  %v8324_v37 = vld [vmem:[#allocation49_spill] sm:$0xff]  ;;  %v8326_v1 = vld [vmem:[#allocation50_spill] sm:$0xff]  ;;  %v7079_v34 = vrot.slane %v7057_v29, %v6165_v5  ;;  %v7083_v49 = vpop.f32.mrb[42].mxu0  ;;  %v3269_v56 = vsel %vm1082_vm5, %v6765_v41, %v6785_v58 }
 0x778   :  { %v7067_v62 = vmul.f32 %v3179_v61, %v8324_v37  ;;  %v7070_v40 = vmul.f32 %v3183_v25, %v8326_v1  ;;  %v8328_v18 = vld [vmem:[#allocation51_spill] sm:$0xff]  ;;  %8330 = vst [vmem:[#allocation136_spill] sm:$0xff] %v7081_v28  ;;  %8331 = vst [vmem:[#allocation137_spill] sm:$0xff] %v7083_v49  ;;  %v3110_v37 = vsel %vm1032_vm4, %v6699_v52, %v6734_v11  ;;  %v7101_v49 = vpop.f32.mrb[43].mxu0 }
 0x779   :  { %v7073_v47 = vmul.f32 %v3183_v25, %v8328_v18  ;;  %v3111_v18 = vsel %vm1032_vm4, %v6708_v2, %v6737_v46  ;;  %v3112_v1 = vsel %vm1032_vm4, %v6720_v9, %v6746_v63  ;;  %8333 = vst [vmem:[#allocation139_spill] sm:$0xff] %v7101_v49  ;;  %v3268_v28 = vsel %vm1082_vm5, %v6763_v12, %v6783_v30  ;;  %v7120_v49 = vld [vmem:[%s8318_s22] ss:$8 sm:$0xf] }
 0x77a   :  { %8325 = vst [vmem:[#allocation49_spill] sm:$0xff] %v7067_v62  ;;  %8327 = vst [vmem:[#allocation50_spill] sm:$0xff] %v7070_v40  ;;  %v2918_v62 = vrot.slane %v7062_v50, %v6165_v5  ;;  %v3113_v40 = vsel %vm1032_vm4, %v6725_v31, %v6754_v20  ;;  %v8335_v31 = vld [vmem:[#allocation52_spill] sm:$0xff]  ;;  %v8337_v63 = vld [vmem:[#allocation54_spill] sm:$0xff]  ;;  %v7139_v46 = vmul.f32 %v3128_v38, %v3110_v37 }
 0x77b   :  { %8329 = vst [vmem:[#allocation51_spill] sm:$0xff] %v7073_v47  ;;  %v7099_v47 = vpop.f32.mrb[40].mxu1  ;;  %v7125_v20 = vmul.f32 %v3179_v61, %v8335_v31  ;;  %v7128_v12 = vmul.f32 %v3179_v61, %v8337_v63  ;;  %v8339_v2 = vld [vmem:[#allocation53_spill] sm:$0xff]  ;;  %v8341_v41 = vld [vmem:[#allocation55_spill] sm:$0xff]  ;;  %v7141_v11 = vmul.f32 %v3128_v38, %v3111_v18  ;;  %v7145_v31 = vpop.permute.xlu0 %3687  ;;  %v7149_v63 = vmul.f32 %v3128_v38, %v3113_v40 }
 0x77c   :  { %8332 = vst [vmem:[#allocation138_spill] sm:$0xff] %v7099_v47  ;;  %v2922_v47 = vrot.slane %v7062_v50, %v6168_v7  ;;  %v7122_v9 = vpop.f32.mrb[41].mxu1  ;;  %v7131_v52 = vmul.f32 %v3183_v25, %v8339_v2  ;;  %v7134_v58 = vmul.f32 %v3183_v25, %v8341_v41  ;;  %v8343_v50 = vld [vmem:[#allocation56_spill] sm:$0xff]  ;;  %v7152_v2 = vmul.f32 %v7079_v34, %v3268_v28  ;;  %v7180_v40 = vpop.permute.xlu1 %3689 }
 0x77d   :  { %8334 = vst [vmem:[#allocation140_spill] sm:$0xff] %v7122_v9  ;;  %8336 = vst [vmem:[#allocation52_spill] sm:$0xff] %v7125_v20  ;;  %v7137_v30 = vmul.f32 %v3179_v61, %v8343_v50  ;;  %v7143_v9 = vmul.f32 %v3128_v38, %v3112_v1  ;;  %v7147_v20 = vpop.f32.mrb[44].mxu0  ;;  %v7155_v41 = vmul.f32 %v7079_v34, %v3269_v56  ;;  %v7159_v61 = vpop.f32.mrb[42].mxu1 }
 0x77e   :  { %8338 = vst [vmem:[#allocation54_spill] sm:$0xff] %v7128_v12  ;;  %8340 = vst [vmem:[#allocation53_spill] sm:$0xff] %v7131_v52  ;;  %v2883_v50 = vrot.slane %v7120_v49, %v6168_v7  ;;  %v7161_v25 = vpop.f32.mrb[45].mxu0  ;;  %v7164_v37 = vmul.f32 %v2918_v62, %v6539_v26  ;;  %v2936_v18 = vmul.f32 %v2922_v47, %v6541_v15  ;;  %v7178_v56 = vld [vmem:[%s8318_s22 + $0x2] ss:$8 sm:$0xf] }
 0x77f   :  { %8342 = vst [vmem:[#allocation55_spill] sm:$0xff] %v7134_v58  ;;  %8344 = vst [vmem:[#allocation56_spill] sm:$0xff] %v7137_v30  ;;  %v2866_v28 = vsel %vm1032_vm4, %v6797_v21, %v6805_v24  ;;  %v2867_v38 = vsel %vm1032_vm4, %v6799_v42, %v6807_v0  ;;  %v7182_v26 = vpop.f32.mrb[43].mxu1  ;;  %v7185_v15 = vmul.f32 %v2918_v62, %v6545_v35 }
 0x780   :  { %8345 = vst [vmem:[#allocation141_spill] sm:$0xff] %v7143_v9  ;;  %8346 = vst [vmem:[#allocation142_spill] sm:$0xff] %v7147_v20  ;;  %v2940_v1 = vmul.f32 %v2922_v47, %v6551_v36  ;;  %v2869_v20 = vsel %vm1032_vm4, %v6815_v3, %v6823_v51  ;;  %v7197_v30 = vmul.f32 %v2918_v62, %v6569_v57 }
 0x781   :  { %8347 = vst [vmem:[#allocation143_spill] sm:$0xff] %v7149_v63  ;;  %8348 = vst [vmem:[#allocation144_spill] sm:$0xff] %v7152_v2  ;;  %v2948_v35 = vmul.f32 %v2922_v47, %v6587_v23  ;;  %v3270_v36 = vsel %vm1082_vm5, %v6771_v59, %v6791_v27  ;;  %v3271_v12 = vsel %vm1082_vm5, %v6777_v53, %v6793_v22 }
 0x782   :  { %8349 = vst [vmem:[#allocation145_spill] sm:$0xff] %v7155_v41  ;;  %8350 = vst [vmem:[#allocation146_spill] sm:$0xff] %v7159_v61  ;;  %v2944_v61 = vmul.f32 %v2922_v47, %v6571_v6  ;;  %v2897_v58 = vmul.f32 %v2883_v50, %v2866_v28  ;;  %v2901_v41 = vmul.f32 %v2883_v50, %v2867_v38  ;;  %v7213_v6 = vpop.f32.mrb[44].mxu1 }
 0x783   :  { %8351 = vst [vmem:[#allocation147_spill] sm:$0xff] %v7161_v25  ;;  %8352 = vst [vmem:[#allocation148_spill] sm:$0xff] %v7180_v40  ;;  %v2868_v25 = vsel %vm1032_vm4, %v6813_v17, %v6821_v14  ;;  %v3021_v57 = vrot.slane %v7178_v56, %v6165_v5  ;;  %v3007_v47 = vsel %vm1082_vm5, %v6801_v32, %v6809_v48  ;;  %v7225_v38 = vpop.f32.mrb[45].mxu1 }
 0x784   :  { %8353 = vst [vmem:[#allocation149_spill] sm:$0xff] %v7182_v26  ;;  %8354 = vst [vmem:[#allocation150_spill] sm:$0xff] %v7197_v30  ;;  %v7205_v26 = vpop.f32.mrb[46].mxu0  ;;  %v2905_v63 = vmul.f32 %v2883_v50, %v2868_v25  ;;  %v2909_v28 = vmul.f32 %v2883_v50, %v2869_v20  ;;  %v7228_v3 = vmul.f32 %v2918_v62, %v6583_v8  ;;  %v7241_v20 = vld [vmem:[%s8318_s22 + $0x7] ss:$8 sm:$0xf]  ;;  %v7243_v50 = vpop.permute.xlu0 %3525 }
 0x785   :  { %8355 = vst [vmem:[#allocation151_spill] sm:$0xff] %v7205_v26  ;;  %8356 = vst [vmem:[#allocation152_spill] sm:$0xff] %v7213_v6  ;;  %v7215_v23 = vpop.f32.mrb[47].mxu0  ;;  %v3008_v26 = vsel %vm1082_vm5, %v6803_v45, %v6811_v54  ;;  %v3191_v6 = vrot.slane %v7027_v13, %v6630_v16  ;;  %v3009_v30 = vsel %vm1082_vm5, %v6817_v55, %v6825_v33  ;;  %v8432_v33 = vld [vmem:[#allocation77_spill] sm:$0xff] }
 0x786   :  { %8357 = vst [vmem:[#allocation153_spill] sm:$0xff] %v7215_v23  ;;  %8358 = vst [vmem:[#allocation154_spill] sm:$0xff] %v7225_v38  ;;  %v3187_v23 = vrot.slane %v7027_v13, %v6627_v43  ;;  %v7246_v8 = vmul.f32 %v7079_v34, %v3270_v36  ;;  %v7249_v62 = vmul.f32 %v7079_v34, %v3271_v12  ;;  %v7259_v38 = vpop.permute.xlu1 %3527  ;;  %v7271_v12 = vpop.f32.mrb[46].mxu1 }
 0x787   :  { %8359 = vst [vmem:[#allocation155_spill] sm:$0xff] %v7228_v3  ;;  %8360 = vst [vmem:[#allocation156_spill] sm:$0xff] %v7243_v50  ;;  %v3010_v13 = vsel %vm1082_vm5, %v6819_v60, %v6827_v10  ;;  %v7257_v25 = vrot.slane %v7052_v4, %v6627_v43  ;;  %v7261_v3 = vpop.f32.mrb[48].mxu0  ;;  %v7263_v55 = vadd.f32 %v2936_v18, %v2897_v58  ;;  %v7283_v18 = vpop.f32.mrb[47].mxu1 }
 0x788   :  { %8361 = vst [vmem:[#allocation157_spill] sm:$0xff] %v7246_v8  ;;  %8362 = vst [vmem:[#allocation158_spill] sm:$0xff] %v7249_v62  ;;  %v7265_v36 = vadd.f32 %v2940_v1, %v2901_v41  ;;  %v7267_v8 = vmul.f32 %v3021_v57, %v3007_v47  ;;  %v7269_v34 = vmul.f32 %v3021_v57, %v3008_v26  ;;  %v7273_v62 = vpop.f32.mrb[49].mxu0 }
 0x789   :  { %8363 = vst [vmem:[#allocation159_spill] sm:$0xff] %v7259_v38  ;;  %8364 = vst [vmem:[#allocation160_spill] sm:$0xff] %v7261_v3  ;;  %v7275_v60 = vadd.f32 %v2944_v61, %v2905_v63  ;;  %v7277_v52 = vadd.f32 %v2948_v35, %v2909_v28  ;;  %v7279_v9 = vmul.f32 %v3021_v57, %v3009_v30  ;;  %v8374_v28 = vld [vmem:[#allocation48_spill] sm:$0xff] }
 0x78a   :  { %8365 = vst [vmem:[#allocation161_spill] sm:$0xff] %v7271_v12  ;;  %8366 = vst [vmem:[#allocation162_spill] sm:$0xff] %v7273_v62  ;;  %v3630_v58 = vrot.slane %v7241_v20, %v6165_v5  ;;  %v7285_v41 = vmul.f32 %v3021_v57, %v3010_v13  ;;  %v3286_v26 = vrot.slane %v7057_v29, %v6168_v7  ;;  %v8376_v62 = vld [vmem:[#allocation59_spill] sm:$0xff]  ;;  %v8378_v12 = vld [vmem:[#allocation60_spill] sm:$0xff]  ;;  %v7334_v17 = vpop.permute.xlu1 %3685 }
 0x78b   :  { %8367 = vst [vmem:[#allocation163_spill] sm:$0xff] %v7275_v60  ;;  %8368 = vst [vmem:[#allocation164_spill] sm:$0xff] %v7277_v52  ;;  %v7291_v1 = vrot.slane %v7052_v4, %v6165_v5  ;;  %v3634_v63 = vrot.slane %v7241_v20, %v6168_v7  ;;  %v7296_v30 = vmul.f32 %v3187_v23, %v6636_v44  ;;  %v8407_v60 = vld [vmem:[#allocation96_spill] sm:$0xff] }
 0x78c   :  { %8369 = vst [vmem:[#allocation165_spill] sm:$0xff] %v7279_v9  ;;  %8370 = vst [vmem:[#allocation166_spill] sm:$0xff] %v7283_v18  ;;  %v3136_v61 = vrot.slane %v7052_v4, %v6630_v16  ;;  %v7302_v35 = vrot.slane %v7057_v29, %v6627_v43  ;;  %v7306_v57 = vrot.slane %v7057_v29, %v6630_v16  ;;  %v8380_v4 = vld [vmem:[#allocation62_spill] sm:$0xff]  ;;  %v8384_v29 = vld [vmem:[#allocation63_spill] sm:$0xff] }
 0x78d   :  { %8371 = vst [vmem:[#allocation167_spill] sm:$0xff] %v7285_v41  ;;  %8372 = vst [vmem:[#allocation168_spill] sm:$0xff] %v7296_v30  ;;  %v7309_v47 = vmul.f32 %v3191_v6, %v6642_v39  ;;  %v7312_v13 = vmul.f32 %v3187_v23, %v8374_v28  ;;  %v7315_v44 = vmul.f32 %v3191_v6, %v8376_v62  ;;  %v8382_v41 = vld [vmem:[#allocation61_spill] sm:$0xff]  ;;  %v7332_v28 = vpop.permute.xlu0 %3683  ;;  %v8390_v62 = vld [vmem:[#allocation90_spill] sm:$0xff] }
 0x78e   :  { %v7318_v3 = vmul.f32 %v3187_v23, %v8378_v12  ;;  %v7321_v18 = vmul.f32 %v3191_v6, %v8380_v4  ;;  %v7324_v9 = vmul.f32 %v3187_v23, %v8382_v41  ;;  %v7327_v52 = vmul.f32 %v3191_v6, %v8384_v29  ;;  %v8386_v39 = vld [vmem:[#allocation57_spill] sm:$0xff]  ;;  %8388 = vst [vmem:[#allocation170_spill] sm:$0xff] %v7332_v28  ;;  %v8392_v4 = vld [vmem:[#allocation64_spill] sm:$0xff]  ;;  %v8396_v6 = vld [vmem:[#allocation58_spill] sm:$0xff] }
 0x78f   :  { %8373 = vst [vmem:[#allocation169_spill] sm:$0xff] %v7309_v47  ;;  %8375 = vst [vmem:[#allocation48_spill] sm:$0xff] %v7312_v13  ;;  %v7330_v10 = vmul.f32 %v3630_v58, %v8386_v39  ;;  %v8394_v23 = vld [vmem:[#allocation65_spill] sm:$0xff]  ;;  %v7347_v29 = vmul.f32 %v3634_v63, %v8396_v6  ;;  %v8398_v39 = vld [vmem:[#allocation91_spill] sm:$0xff] }
 0x790   :  { %8377 = vst [vmem:[#allocation59_spill] sm:$0xff] %v7315_v44  ;;  %8379 = vst [vmem:[#allocation60_spill] sm:$0xff] %v7318_v3  ;;  %v8391_v44 = vld [vmem:[#allocation74_spill] sm:$0xff]  ;;  %v7344_v41 = vmul.f32 %v3630_v58, %v8394_v23  ;;  %v8401_v3 = vld [vmem:[#allocation80_spill] sm:$0xff] }
 0x791   :  { %8381 = vst [vmem:[#allocation62_spill] sm:$0xff] %v7321_v18  ;;  %8383 = vst [vmem:[#allocation61_spill] sm:$0xff] %v7324_v9  ;;  %v3106_v12 = vsel %vm1032_vm4, %v8391_v44, %v8390_v62  ;;  %v7341_v18 = vmul.f32 %v3634_v63, %v8392_v4  ;;  %v8400_v9 = vld [vmem:[#allocation92_spill] sm:$0xff]  ;;  %v8402_v44 = vld [vmem:[#allocation93_spill] sm:$0xff] }
 0x792   :  { %8385 = vst [vmem:[#allocation63_spill] sm:$0xff] %v7327_v52  ;;  %8387 = vst [vmem:[#allocation57_spill] sm:$0xff] %v7330_v10  ;;  %v8399_v52 = vld [vmem:[#allocation75_spill] sm:$0xff]  ;;  %v3264_v13 = vsel %vm1082_vm5, %v8401_v3, %v8400_v9  ;;  %v8403_v62 = vld [vmem:[#allocation81_spill] sm:$0xff] }
 0x793   :  { %8389 = vst [vmem:[#allocation171_spill] sm:$0xff] %v7334_v17  ;;  %8393 = vst [vmem:[#allocation90_spill] sm:$0xff] %v7341_v18  ;;  %v3107_v10 = vsel %vm1032_vm4, %v8399_v52, %v8398_v39  ;;  %v3265_v4 = vsel %vm1082_vm5, %v8403_v62, %v8402_v44  ;;  %v8404_v23 = vld [vmem:[#allocation66_spill] sm:$0xff]  ;;  %v8408_v39 = vld [vmem:[#allocation67_spill] sm:$0xff]  ;;  %v7379_v44 = vmul.f32 %v7257_v25, %v3106_v12 }
 0x794   :  { %8395 = vst [vmem:[#allocation74_spill] sm:$0xff] %v7344_v41  ;;  %8397 = vst [vmem:[#allocation64_spill] sm:$0xff] %v7347_v29  ;;  %v8405_v41 = vld [vmem:[#allocation94_spill] sm:$0xff]  ;;  %v8406_v29 = vld [vmem:[#allocation69_spill] sm:$0xff]  ;;  %v7370_v2 = vmul.f32 %v3630_v58, %v8408_v39 }
 0x795   :  { %v3114_v6 = vsel %vm1032_vm4, %v8405_v41, %v8404_v23  ;;  %v3115_v52 = vsel %vm1032_vm4, %v8407_v60, %v8406_v29  ;;  %v8410_v47 = vld [vmem:[#allocation68_spill] sm:$0xff]  ;;  %v8412_v3 = vld [vmem:[#allocation70_spill] sm:$0xff]  ;;  %v8414_v62 = vld [vmem:[#allocation71_spill] sm:$0xff]  ;;  %v7395_v29 = vmul.f32 %v3286_v26, %v3264_v13 }
 0x796   :  { %8409 = vst [vmem:[#allocation65_spill] sm:$0xff] %v7370_v2  ;;  %v7373_v9 = vmul.f32 %v3634_v63, %v8410_v47  ;;  %v7376_v18 = vmul.f32 %v3630_v58, %v8412_v3  ;;  %v7382_v51 = vmul.f32 %v3634_v63, %v8414_v62  ;;  %v8416_v41 = vld [vmem:[#allocation134_spill] sm:$0xff]  ;;  %v7393_v47 = vmul.f32 %v7257_v25, %v3107_v10  ;;  %v8419_v63 = vld [vmem:[#allocation95_spill] sm:$0xff]  ;;  %v8424_v2 = vld [vmem:[#allocation100_spill] sm:$0xff] }
 0x797   :  { %v7386_v23 = vrot.slane %v8416_v41, %v6627_v43  ;;  %v7390_v60 = vrot.slane %v8416_v41, %v6630_v16  ;;  %v7397_v58 = vmul.f32 %v3286_v26, %v3265_v4  ;;  %v7400_v12 = vmul.f32 %v7291_v1, %v3114_v6  ;;  %v8421_v62 = vld [vmem:[#allocation78_spill] sm:$0xff]  ;;  %v8423_v10 = vld [vmem:[#allocation79_spill] sm:$0xff]  ;;  %v7416_v4 = vpop.permute.xlu0 %3533  ;;  %v7418_v6 = vpop.permute.xlu1 %3535 }
 0x798   :  { %8411 = vst [vmem:[#allocation58_spill] sm:$0xff] %v7373_v9  ;;  %8413 = vst [vmem:[#allocation91_spill] sm:$0xff] %v7376_v18  ;;  %v7403_v39 = vmul.f32 %v3136_v61, %v8419_v63  ;;  %v7406_v3 = vmul.f32 %v7291_v1, %v3115_v52  ;;  %v8422_v18 = vld [vmem:[#allocation98_spill] sm:$0xff]  ;;  %v3273_v13 = vsel %vm1082_vm5, %v8424_v2, %v8423_v10  ;;  %v8430_v52 = vld [vmem:[#allocation76_spill] sm:$0xff] }
 0x799   :  { %8415 = vst [vmem:[#allocation75_spill] sm:$0xff] %v7382_v51  ;;  %8417 = vst [vmem:[#allocation92_spill] sm:$0xff] %v7393_v47  ;;  %v3272_v41 = vsel %vm1082_vm5, %v8422_v18, %v8421_v62  ;;  %v8427_v51 = vld [vmem:[#allocation97_spill] sm:$0xff]  ;;  %v8429_v9 = vld [vmem:[#allocation102_spill] sm:$0xff] }
 0x79a   :  { %8418 = vst [vmem:[#allocation80_spill] sm:$0xff] %v7397_v58  ;;  %8420 = vst [vmem:[#allocation93_spill] sm:$0xff] %v7406_v3  ;;  %v7421_v63 = vmul.f32 %v3136_v61, %v8427_v51  ;;  %v3108_v58 = vsel %vm1032_vm4, %v8430_v52, %v8429_v9  ;;  %v8431_v47 = vld [vmem:[#allocation103_spill] sm:$0xff]  ;;  %v8433_v62 = vld [vmem:[#allocation104_spill] sm:$0xff] }
 0x79b   :  { %8425 = vst [vmem:[#allocation81_spill] sm:$0xff] %v7416_v4  ;;  %8426 = vst [vmem:[#allocation66_spill] sm:$0xff] %v7418_v6  ;;  %v3109_v18 = vsel %vm1032_vm4, %v8432_v33, %v8431_v47  ;;  %v3266_v2 = vsel %vm1082_vm5, %v6791_v27, %v8433_v62  ;;  %v8434_v10 = vld [vmem:[#allocation99_spill] sm:$0xff]  ;;  %v8436_v51 = vld [vmem:[#allocation105_spill] sm:$0xff]  ;;  %v7452_v27 = vmul.f32 %v7306_v57, %v3272_v41 }
 0x79c   :  { %8428 = vst [vmem:[#allocation94_spill] sm:$0xff] %v7421_v63  ;;  %v7437_v3 = vmul.f32 %v7302_v35, %v8434_v10  ;;  %v3267_v63 = vsel %vm1082_vm5, %v6793_v22, %v8436_v51  ;;  %v8437_v9 = vld [vmem:[#allocation72_spill] sm:$0xff]  ;;  %v8438_v52 = vld [vmem:[#allocation106_spill] sm:$0xff]  ;;  %v8439_v33 = vld [vmem:[#allocation73_spill] sm:$0xff]  ;;  %v7463_v22 = vrot.slane %v7241_v20, %v6627_v43 }
 0x79d   :  { %v3116_v30 = vsel %vm1032_vm4, %v8438_v52, %v8437_v9  ;;  %v8440_v47 = vld [vmem:[#allocation108_spill] sm:$0xff]  ;;  %8441 = vst [vmem:[#allocation96_spill] sm:$0xff] %v7452_v27  ;;  %v8442_v62 = vld [vmem:[#allocation101_spill] sm:$0xff]  ;;  %v7476_v9 = vmul.f32 %v7257_v25, %v3108_v58  ;;  %v7481_v52 = vmul.f32 %v3286_v26, %v3266_v2  ;;  %v8457_v2 = vld [vmem:[#allocation130_spill] sm:$0xff] }
 0x79e   :  { %8435 = vst [vmem:[#allocation69_spill] sm:$0xff] %v7437_v3  ;;  %v3117_v14 = vsel %vm1032_vm4, %v8440_v47, %v8439_v33  ;;  %v7456_v10 = vmul.f32 %v7302_v35, %v8442_v62  ;;  %v7459_v3 = vmul.f32 %v7306_v57, %v3273_v13  ;;  %v7468_v51 = vld [vmem:[%s8318_s22 + $0x6] ss:$8 sm:$0xf]  ;;  %v7479_v13 = vmul.f32 %v7257_v25, %v3109_v18 }
 0x79f   :  { %v7473_v41 = vld [vmem:[%s8318_s22 + $0x20] ss:$8 sm:$0xf]  ;;  %8444 = vst [vmem:[#allocation68_spill] sm:$0xff] %v7476_v9  ;;  %8446 = vst [vmem:[#allocation71_spill] sm:$0xff] %v7481_v52  ;;  %v7485_v33 = vrot.slane %v7241_v20, %v6630_v16  ;;  %v7487_v47 = vmul.f32 %v3286_v26, %v3267_v63  ;;  %v7490_v62 = vmul.f32 %v7291_v1, %v3116_v30  ;;  %v7509_v63 = vpop.permute.xlu0 %3691  ;;  %s5654_s22 = smov [#allocation32]  }
 0x7a0   :  { %8443 = vst [vmem:[#allocation67_spill] sm:$0xff] %v7459_v3  ;;  %8445 = vst [vmem:[#allocation70_spill] sm:$0xff] %v7479_v13  ;;  %v8448_v3 = vld [vmem:[#allocation107_spill] sm:$0xff]  ;;  %v7496_v58 = vmul.f32 %v7291_v1, %v3117_v14  ;;  %v8450_v9 = vld [vmem:[#allocation109_spill] sm:$0xff]  ;;  %v3579_v26 = vrot.slane %v7468_v51, %v6168_v7  ;;  %v3733_v30 = vrot.slane %v7473_v41, %v6165_v5  ;;  %s4283_s14 = sshll.u32 %s5654_s22, 4  ;;  %s4284_s14 = int_to_ptr.vmem [resolvable:$true] %s4283_s14 }
 0x7a1   :  { %8447 = vst [vmem:[#allocation134_spill] sm:$0xff] %v7487_v47  ;;  %v7493_v27 = vmul.f32 %v3136_v61, %v8448_v3  ;;  %v7499_v25 = vmul.f32 %v3136_v61, %v8450_v9  ;;  %v8452_v18 = vld [vmem:[#allocation110_spill] sm:$0xff]  ;;  %8453 = vst [vmem:[#allocation98_spill] sm:$0xff] %v7509_v63  ;;  %v7511_v3 = vpop.permute.xlu1 %3693  ;;  %v8455_v14 = vld [vmem:[#allocation112_spill] sm:$0xff]  ;;  %s5578_s24 = scalar_lea.vmem %s4284_s14, 2048  ;;  %p5583_p1 = scmp.lt.s32.totalorder %s4284_s14, %s4284_s14 }
 0x7a2   :  { %8449 = vst [vmem:[#allocation95_spill] sm:$0xff] %v7496_v58  ;;  %v3274_v20 = vsel %vm1082_vm5, %v8452_v18, %v6771_v59  ;;  %8454 = vst [vmem:[#allocation79_spill] sm:$0xff] %v7511_v3  ;;  %v3275_v1 = vsel %vm1082_vm5, %v8455_v14, %v6777_v53  ;;  %v8456_v61 = vld [vmem:[#allocation135_spill] sm:$0xff]  ;;  %v8458_v9 = vld [vmem:[#allocation136_spill] sm:$0xff]  ;;  %p5579_p0 = scmp.ne.s32.totalorder %s4284_s14, %s5578_s24  ;;  %p5584_p2 = scmp.lt.s32.totalorder %s5578_s24, %s5578_s24 }
 0x7a3   :  { %8451 = vst [vmem:[#allocation78_spill] sm:$0xff] %v7499_v25  ;;  %v3561_v59 = vsel %vm1032_vm4, %v8457_v2, %v8456_v61  ;;  %v8459_v18 = vld [vmem:[#allocation131_spill] sm:$0xff]  ;;  %v8460_v25 = vld [vmem:[#allocation132_spill] sm:$0xff]  ;;  %v8463_v53 = vld [vmem:[#allocation133_spill] sm:$0xff]  ;;  %v3563_v2 = vsel %vm1032_vm4, %v7243_v50, %v7416_v4  ;;  %v3722_v50 = vsel %vm1082_vm5, %v7334_v17, %v7511_v3  ;;  %v7561_v4 = vmul.f32 %v7306_v57, %v3275_v1  ;;  %v2843_v1 = vpop.permute.xlu0 %2842 }
 0x7a4   :  { %v3562_v47 = vsel %vm1032_vm4, %v8459_v18, %v8458_v9  ;;  %v3719_v13 = vsel %vm1082_vm5, %v8460_v25, %v7145_v31  ;;  %v8461_v58 = vld [vmem:[#allocation111_spill] sm:$0xff]  ;;  %v3720_v14 = vsel %vm1082_vm5, %v8463_v53, %v7180_v40  ;;  %v3564_v18 = vsel %vm1032_vm4, %v7259_v38, %v7418_v6  ;;  %p5585_p3 = por %p5584_p2, %p5583_p1 }
 0x7a5   :  { %v7531_v52 = vmul.f32 %v7302_v35, %v8461_v58  ;;  %v7546_v25 = vmul.f32 %v7306_v57, %v3274_v20  ;;  %v8465_v58 = vld [vmem:[#allocation113_spill] sm:$0xff]  ;;  %v3721_v53 = vsel %vm1082_vm5, %v7332_v28, %v7509_v63  ;;  %8467 = vst [vmem:[#allocation76_spill] sm:$0xff] %v7561_v4  ;;  %v7563_v38 = vmul.f32 %v3579_v26, %v3561_v59  ;;  %v8479_v3 = vld [vmem:[#allocation119_spill] sm:$0xff]  ;;  %v2845_v40 = vpop.permute.xlu1 %2844 }
 0x7a6   :  { %v7565_v20 = vmul.f32 %v3579_v26, %v3562_v47  ;;  %v7567_v6 = vmul.f32 %v3733_v30, %v3719_v13  ;;  %v7577_v28 = vrot.slane %v7120_v49, %v6627_v43  ;;  %v7579_v17 = vmul.f32 %v3733_v30, %v3721_v53  ;;  %v8477_v4 = vld [vmem:[#allocation117_spill] sm:$0xff]  ;;  %p5586_p4 = pnand %p5585_p3, %p5579_p0 }
 0x7a7   :  { %8462 = vst [vmem:[#allocation100_spill] sm:$0xff] %v7531_v52  ;;  %8464 = vst [vmem:[#allocation97_spill] sm:$0xff] %v7546_v25  ;;  %v7550_v52 = vmul.f32 %v7302_v35, %v8465_v58  ;;  %v7569_v35 = vmul.f32 %v3733_v30, %v3720_v14  ;;  %v7571_v58 = vmul.f32 %v3579_v26, %v3563_v2  ;;  %v8474_v2 = vld [vmem:[#allocation114_spill] sm:$0xff]  ;;  %v8476_v14 = vld [vmem:[#allocation116_spill] sm:$0xff] }
 0x7a8   :  { %8468 = vst [vmem:[#allocation103_spill] sm:$0xff] %v7567_v6  ;;  %v7573_v25 = vmul.f32 %v3579_v26, %v3564_v18  ;;  %8472 = vst [vmem:[#allocation105_spill] sm:$0xff] %v7579_v17  ;;  %v7581_v57 = vmul.f32 %v3733_v30, %v3722_v50  ;;  %v7585_v47 = vrot.slane %v7178_v56, %v6168_v7  ;;  %v8475_v18 = vld [vmem:[#allocation115_spill] sm:$0xff] }
 0x7a9   :  { %8466 = vst [vmem:[#allocation102_spill] sm:$0xff] %v7550_v52  ;;  %8469 = vst [vmem:[#allocation77_spill] sm:$0xff] %v7569_v35  ;;  %v7589_v13 = vrot.slane %v7120_v49, %v6165_v5  ;;  %v2937_v26 = vmul.f32 %v7386_v23, %v8474_v2  ;;  %v7595_v59 = vrot.slane %v7120_v49, %v6630_v16  ;;  %v8478_v49 = vld [vmem:[#allocation118_spill] sm:$0xff]  ;;  %v8484_v6 = vld [vmem:[#allocation123_spill] sm:$0xff] }
 0x7aa   :  { %8470 = vst [vmem:[#allocation104_spill] sm:$0xff] %v7571_v58  ;;  %8471 = vst [vmem:[#allocation99_spill] sm:$0xff] %v7573_v25  ;;  %v7599_v50 = vrot.slane %v7178_v56, %v6627_v43  ;;  %v7603_v30 = vrot.slane %v7178_v56, %v6630_v16  ;;  %v2938_v53 = vmul.f32 %v7390_v60, %v8475_v18  ;;  %v8480_v56 = vld [vmem:[#allocation120_spill] sm:$0xff]  ;;  %v8481_v18 = vld [vmem:[#allocation121_spill] sm:$0xff] }
 0x7ab   :  { %8473 = vst [vmem:[#allocation72_spill] sm:$0xff] %v7581_v57  ;;  %v2941_v57 = vmul.f32 %v7386_v23, %v8476_v14  ;;  %v7611_v2 = vmul.f32 %v7390_v60, %v8477_v4  ;;  %v7615_v17 = vmul.f32 %v7386_v23, %v8478_v49  ;;  %v7619_v25 = vmul.f32 %v7390_v60, %v8479_v3  ;;  %v8482_v14 = vld [vmem:[#allocation122_spill] sm:$0xff]  ;;  %v8486_v52 = vld [vmem:[#allocation124_spill] sm:$0xff] }
 0x7ac   :  { %v7623_v63 = vmul.f32 %v7386_v23, %v8480_v56  ;;  %v7627_v35 = vmul.f32 %v7390_v60, %v8481_v18  ;;  %v7631_v4 = vmul.f32 %v7463_v22, %v8482_v14  ;;  %v7635_v49 = vmul.f32 %v7485_v33, %v8484_v6  ;;  %v2984_v56 = vpop.permute.xlu0 %2983  ;;  %v8488_v18 = vld [vmem:[#allocation125_spill] sm:$0xff]  ;;  %v8490_v6 = vld [vmem:[#allocation126_spill] sm:$0xff] }
 0x7ad   :  { %v7639_v3 = vmul.f32 %v7463_v22, %v8486_v52  ;;  %v2862_v23 = vsel %vm1032_vm4, %v6805_v24, %v2843_v1  ;;  %v7646_v60 = vrot.slane %v7468_v51, %v6627_v43  ;;  %v7650_v14 = vmul.f32 %v7485_v33, %v8488_v18 }
 0x7ae   :  { %8483 = vst [vmem:[#allocation106_spill] sm:$0xff] %v7631_v4  ;;  %8485 = vst [vmem:[#allocation73_spill] sm:$0xff] %v7635_v49  ;;  %v7654_v49 = vmul.f32 %v7463_v22, %v8490_v6  ;;  %v3003_v52 = vsel %vm1082_vm5, %v6809_v48, %v2984_v56  ;;  %v7661_v24 = vrot.slane %v7473_v41, %v6168_v7  ;;  %v8493_v4 = vld [vmem:[#allocation127_spill] sm:$0xff]  ;;  %v8497_v48 = vld [vmem:[#allocation128_spill] sm:$0xff] }
 0x7af   :  { %8487 = vst [vmem:[#allocation108_spill] sm:$0xff] %v7639_v3  ;;  %8489 = vst [vmem:[#allocation101_spill] sm:$0xff] %v7650_v14  ;;  %v1713_v3 = vld [vmem:[#allocation11] sm:$0xf]  ;;  %v7665_v58 = vmul.f32 %v7485_v33, %v8493_v4  ;;  %v3039_v18 = vmul.f32 %v7585_v47, %v3003_v52  ;;  %v7670_v14 = vrot.slane %v7468_v51, %v6165_v5 }
 0x7b0   :  { %8491 = vst [vmem:[#allocation107_spill] sm:$0xff] %v7654_v49  ;;  %8492 = vst [vmem:[#allocation109_spill] sm:$0xff] %v7661_v24  ;;  %v7674_v6 = vrot.slane %v7468_v51, %v6630_v16  ;;  %v7678_v49 = vmul.f32 %v7463_v22, %v8497_v48  ;;  %v8499_v24 = vld [vmem:[#allocation129_spill] sm:$0xff]  ;;  %v2898_v4 = vmul.f32 %v7577_v28, %v2862_v23 }
 0x7b1   :  { %8494 = vst [vmem:[#allocation110_spill] sm:$0xff] %v7665_v58  ;;  %8495 = vst [vmem:[#allocation112_spill] sm:$0xff] %v7670_v14  ;;  %v7682_v9 = vmul.f32 %v7485_v33, %v8499_v24  ;;  %v7687_v52 = vrot.slane %v7473_v41, %v6627_v43  ;;  %v3055_v58 = vadd.f32 %v3039_v18, %v7263_v55  ;;  %v2986_v14 = vpop.permute.xlu1 %2985 }
 0x7b2   :  { %8496 = vst [vmem:[#allocation135_spill] sm:$0xff] %v7674_v6  ;;  %8498 = vst [vmem:[#allocation111_spill] sm:$0xff] %v7678_v49  ;;  %v2863_v51 = vsel %vm1032_vm4, %v6807_v0, %v2845_v40  ;;  %v2851_v6 = vpop.permute.xlu0 %2850  ;;  %v7695_v22 = vrot.slane %v7473_v41, %v6630_v16  ;;  %v7698_v33 = vrot.slane %v1713_v3, %v6168_v7 }
 0x7b3   :  { %8500 = vst [vmem:[#allocation113_spill] sm:$0xff] %v7682_v9  ;;  %v2858_v23 = vsel %vm1032_vm4, %v2843_v1, %v2851_v6  ;;  %v2870_v55 = vsel %vm1032_vm4, %v2851_v6, %v6797_v21  ;;  %v3004_v0 = vsel %vm1082_vm5, %v6811_v54, %v2986_v14  ;;  %v7709_v24 = vrot.slane %v1713_v3, %v6165_v5  ;;  %v8501_v54 = vld [vmem:[#allocation50_spill] sm:$0xff] }
 0x7b4   :  { %v3158_v41 = vadd.f32 %v7139_v46, %v3055_v58  ;;  %v2896_v18 = vmul.f32 %v7589_v13, %v2870_v55  ;;  %v2899_v7 = vmul.f32 %v7595_v59, %v2858_v23  ;;  %v3043_v48 = vmul.f32 %v7585_v47, %v3004_v0 }
 0x7b5   :  { %v2953_v1 = vadd.f32 %v2937_v26, %v2898_v4  ;;  %v2902_v9 = vmul.f32 %v7577_v28, %v2863_v51  ;;  %v7717_v21 = vrot.slane %v1713_v3, %v6627_v43  ;;  %v7720_v6 = vrot.slane %v1713_v3, %v6630_v16  ;;  %v2853_v23 = vpop.permute.xlu1 %2852 }
 0x7b6   :  { %v3213_v5 = vadd.f32 %v8501_v54, %v3158_v41  ;;  %v2951_v49 = vadd.f32 %v7164_v37, %v2896_v18  ;;  %v2954_v46 = vadd.f32 %v2938_v53, %v2899_v7  ;;  %v3059_v58 = vadd.f32 %v3043_v48, %v7265_v36  ;;  %v2992_v55 = vpop.permute.xlu0 %2991  ;;  %v8502_v41 = vld [vmem:[#allocation51_spill] sm:$0xff] }
 0x7b7   :  { %v2999_v26 = vsel %vm1082_vm5, %v2984_v56, %v2992_v55  ;;  %v3011_v43 = vsel %vm1082_vm5, %v2992_v55, %v6801_v32  ;;  %v2859_v16 = vsel %vm1032_vm4, %v2845_v40, %v2853_v23  ;;  %v2871_v3 = vsel %vm1032_vm4, %v2853_v23, %v6799_v42 }
 0x7b8   :  { %v3054_v37 = vadd.f32 %v7267_v8, %v2951_v49  ;;  %v3162_v36 = vadd.f32 %v7141_v11, %v3059_v58  ;;  %v3040_v53 = vmul.f32 %v7599_v50, %v2999_v26  ;;  %v3041_v4 = vmul.f32 %v7603_v30, %v3011_v43  ;;  %v8505_v26 = vld [vmem:[#allocation168_spill] sm:$0xff] }
 0x7b9   :  { %v2957_v56 = vadd.f32 %v2941_v57, %v2902_v9  ;;  %v2900_v51 = vmul.f32 %v7589_v13, %v2871_v3  ;;  %v2903_v32 = vmul.f32 %v7595_v59, %v2859_v16  ;;  %v3316_v0 = vadd.f32 %v7395_v29, %v3213_v5  ;;  %v2994_v8 = vpop.permute.xlu1 %2993  ;;  %v8506_v16 = vld [vmem:[#allocation93_spill] sm:$0xff] }
 0x7ba   :  { %v3157_v40 = vadd.f32 %v7400_v12, %v3054_v37  ;;  %v3217_v18 = vadd.f32 %v8502_v41, %v3162_v36  ;;  %v3056_v42 = vadd.f32 %v3040_v53, %v2953_v1  ;;  %v3057_v7 = vadd.f32 %v3041_v4, %v2954_v46  ;;  %v2847_v49 = vpop.permute.xlu0 %2846  ;;  %v8504_v46 = vld [vmem:[#allocation49_spill] sm:$0xff]  ;;  %v8507_v37 = vld [vmem:[#allocation88_spill] sm:$0xff]  ;;  %v8508_v36 = vld [vmem:[#allocation87_spill] sm:$0xff] }
 0x7bb   :  { %v2955_v11 = vadd.f32 %v7185_v15, %v2900_v51  ;;  %v2958_v48 = vadd.f32 %v7611_v2, %v2903_v32  ;;  %v3000_v9 = vsel %vm1082_vm5, %v2986_v14, %v2994_v8  ;;  %v3012_v57 = vsel %vm1082_vm5, %v2994_v8, %v6803_v45  ;;  %v8503_v15 = vld [vmem:[#allocation86_spill] sm:$0xff] }
 0x7bc   :  { %v3159_v29 = vadd.f32 %v7379_v44, %v3056_v42  ;;  %v3160_v12 = vadd.f32 %v7403_v39, %v3057_v7  ;;  %v3044_v1 = vmul.f32 %v7599_v50, %v3000_v9  ;;  %v3045_v54 = vmul.f32 %v7603_v30, %v3012_v57  ;;  %v8509_v53 = vld [vmem:[#allocation90_spill] sm:$0xff]  ;;  %v8512_v7 = vld [vmem:[#allocation69_spill] sm:$0xff]  ;;  %v8514_v9 = vld [vmem:[#allocation144_spill] sm:$0xff] }
 0x7bd   :  { %v3058_v5 = vadd.f32 %v7269_v34, %v2955_v11  ;;  %v2864_v2 = vsel %vm1032_vm4, %v8503_v15, %v2847_v49  ;;  %v3609_v14 = vadd.f32 %v7563_v38, %v3316_v0  ;;  %v3212_v58 = vadd.f32 %v8504_v46, %v3157_v40  ;;  %v2849_v39 = vpop.permute.xlu1 %2848  ;;  %v8511_v32 = vld [vmem:[#allocation94_spill] sm:$0xff]  ;;  %v8513_v11 = vld [vmem:[#allocation169_spill] sm:$0xff]  ;;  %v8516_v15 = vld [vmem:[#allocation48_spill] sm:$0xff] }
 0x7be   :  { %v3060_v55 = vadd.f32 %v3044_v1, %v2957_v56  ;;  %v3061_v45 = vadd.f32 %v3045_v54, %v2958_v48  ;;  %v2906_v44 = vmul.f32 %v7577_v28, %v2864_v2  ;;  %v2988_v23 = vpop.permute.xlu0 %2987  ;;  %v3214_v43 = vadd.f32 %v8505_v26, %v3159_v29  ;;  %v8510_v56 = vld [vmem:[#allocation92_spill] sm:$0xff]  ;;  %v8515_v29 = vld [vmem:[#allocation163_spill] sm:$0xff] }
 0x7bf   :  { %v3161_v3 = vadd.f32 %v8506_v16, %v3058_v5  ;;  %v3005_v34 = vsel %vm1082_vm5, %v8507_v37, %v2988_v23  ;;  %v2865_v38 = vsel %vm1032_vm4, %v8508_v36, %v2849_v39  ;;  %v7771_v4 = vadd.f32 %v8509_v53, %v3609_v14  ;;  %v8517_v14 = vld [vmem:[#allocation80_spill] sm:$0xff] }
 0x7c0   :  { %v3163_v51 = vadd.f32 %v8510_v56, %v3060_v55  ;;  %v3164_v0 = vadd.f32 %v8511_v32, %v3061_v45  ;;  %v2961_v40 = vadd.f32 %v7615_v17, %v2906_v44  ;;  %v3047_v41 = vmul.f32 %v7585_v47, %v3005_v34  ;;  %v8518_v46 = vld [vmem:[#allocation52_spill] sm:$0xff]  ;;  %v8519_v44 = vld [vmem:[#allocation82_spill] sm:$0xff]  ;;  %v8524_v56 = vld [vmem:[#allocation53_spill] sm:$0xff] }
 0x7c1   :  { %v2910_v42 = vmul.f32 %v7577_v28, %v2865_v38  ;;  %v7779_v8 = vadd.f32 %v8512_v7, %v3214_v43  ;;  %v3215_v48 = vadd.f32 %v8513_v11, %v3160_v12  ;;  %v7783_v57 = vadd.f32 %v8514_v9, %v3212_v58  ;;  %v2990_v5 = vpop.permute.xlu1 %2989  ;;  %v8520_v58 = vld [vmem:[#allocation89_spill] sm:$0xff]  ;;  %v8523_v38 = vld [vmem:[#allocation59_spill] sm:$0xff]  ;;  %v8525_v32 = vld [vmem:[#allocation150_spill] sm:$0xff] }
 0x7c2   :  { %v3063_v1 = vadd.f32 %v3047_v41, %v8515_v29  ;;  %v2855_v54 = vpop.permute.xlu0 %2854  ;;  %v3218_v2 = vadd.f32 %v8516_v15, %v3163_v51  ;;  %v3320_v17 = vadd.f32 %v8517_v14, %v3217_v18  ;;  %v3216_v55 = vadd.f32 %v8518_v46, %v3161_v3  ;;  %v8521_v43 = vld [vmem:[#allocation141_spill] sm:$0xff]  ;;  %v8526_v7 = vld [vmem:[#allocation164_spill] sm:$0xff]  ;;  %v8530_v15 = vld [vmem:[#allocation143_spill] sm:$0xff] }
 0x7c3   :  { %v2965_v28 = vadd.f32 %v7623_v63, %v2910_v42  ;;  %v2860_v45 = vsel %vm1032_vm4, %v2847_v49, %v2855_v54  ;;  %v2872_v12 = vsel %vm1032_vm4, %v2855_v54, %v8519_v44  ;;  %v3006_v26 = vsel %vm1082_vm5, %v8520_v58, %v2990_v5  ;;  %v8522_v49 = vld [vmem:[#allocation96_spill] sm:$0xff]  ;;  %v8529_v54 = vld [vmem:[#allocation165_spill] sm:$0xff] }
 0x7c4   :  { %v3166_v16 = vadd.f32 %v8521_v43, %v3063_v1  ;;  %v2904_v37 = vmul.f32 %v7589_v13, %v2872_v12  ;;  %v2907_v18 = vmul.f32 %v7595_v59, %v2860_v45  ;;  %v3051_v3 = vmul.f32 %v7585_v47, %v3006_v26  ;;  %v8527_v29 = vld [vmem:[#allocation84_spill] sm:$0xff]  ;;  %v8532_v12 = vld [vmem:[#allocation145_spill] sm:$0xff]  ;;  %v8533_v26 = vld [vmem:[#allocation55_spill] sm:$0xff] }
 0x7c5   :  { %v7803_v63 = vadd.f32 %v7456_v10, %v3218_v2  ;;  %v7806_v34 = vadd.f32 %v8522_v49, %v3215_v48  ;;  %v3613_v36 = vadd.f32 %v7565_v20, %v3320_v17  ;;  %v3219_v53 = vadd.f32 %v8523_v38, %v3164_v0  ;;  %v2857_v47 = vpop.permute.xlu1 %2856  ;;  %v8528_v0 = vld [vmem:[#allocation83_spill] sm:$0xff]  ;;  %v8531_v45 = vld [vmem:[#allocation64_spill] sm:$0xff] }
 0x7c6   :  { %v3221_v51 = vadd.f32 %v8524_v56, %v3166_v16  ;;  %v2959_v41 = vadd.f32 %v8525_v32, %v2904_v37  ;;  %v2962_v42 = vadd.f32 %v7619_v25, %v2907_v18  ;;  %v3067_v11 = vadd.f32 %v3051_v3, %v8526_v7  ;;  %v2996_v9 = vpop.permute.xlu0 %2995  ;;  %v8534_v49 = vld [vmem:[#allocation155_spill] sm:$0xff]  ;;  %v8536_v56 = vld [vmem:[#allocation68_spill] sm:$0xff] }
 0x7c7   :  { %v3001_v10 = vsel %vm1082_vm5, %v2988_v23, %v2996_v9  ;;  %v3013_v48 = vsel %vm1082_vm5, %v2996_v9, %v8527_v29  ;;  %v2861_v20 = vsel %vm1032_vm4, %v2849_v39, %v2857_v47  ;;  %v2873_v1 = vsel %vm1032_vm4, %v2857_v47, %v8528_v0  ;;  %v8539_v9 = vld [vmem:[#allocation71_spill] sm:$0xff] }
 0x7c8   :  { %v3062_v25 = vadd.f32 %v8529_v54, %v2959_v41  ;;  %v3170_v2 = vadd.f32 %v8530_v15, %v3067_v11  ;;  %v3048_v14 = vmul.f32 %v7599_v50, %v3001_v10  ;;  %v3049_v17 = vmul.f32 %v7603_v30, %v3013_v48  ;;  %v8538_v11 = vld [vmem:[#allocation67_spill] sm:$0xff]  ;;  %v8542_v54 = vld [vmem:[#allocation136_spill] sm:$0xff] }
 0x7c9   :  { %v2908_v23 = vmul.f32 %v7589_v13, %v2873_v1  ;;  %v2911_v46 = vmul.f32 %v7595_v59, %v2861_v20  ;;  %v3668_v44 = vadd.f32 %v8531_v45, %v3613_v36  ;;  %v7832_v39 = vadd.f32 %v8532_v12, %v3216_v55  ;;  %v2998_v18 = vpop.permute.xlu1 %2997  ;;  %v8535_v36 = vld [vmem:[#allocation85_spill] sm:$0xff]  ;;  %v8547_v12 = vld [vmem:[#allocation100_spill] sm:$0xff] }
 0x7ca   :  { %v3165_v58 = vadd.f32 %v7490_v62, %v3062_v25  ;;  %v7836_v43 = vadd.f32 %v8533_v26, %v3170_v2  ;;  %v3064_v16 = vadd.f32 %v3048_v14, %v2961_v40  ;;  %v3065_v37 = vadd.f32 %v3049_v17, %v2962_v42  ;;  %v3538_v3 = vpop.permute.xlu0 %3537  ;;  %v8537_v42 = vld [vmem:[#allocation167_spill] sm:$0xff]  ;;  %v8544_v25 = vld [vmem:[#allocation70_spill] sm:$0xff] }
 0x7cb   :  { %v2963_v38 = vadd.f32 %v8534_v49, %v2908_v23  ;;  %v2966_v13 = vadd.f32 %v7627_v35, %v2911_v46  ;;  %v3002_v59 = vsel %vm1082_vm5, %v2990_v5, %v2998_v18  ;;  %v3014_v55 = vsel %vm1082_vm5, %v2998_v18, %v8535_v36  ;;  %v8545_v2 = vld [vmem:[#allocation78_spill] sm:$0xff]  ;;  %v8546_v23 = vld [vmem:[#allocation109_spill] sm:$0xff] }
 0x7cc   :  { %v3167_v62 = vadd.f32 %v8536_v56, %v3064_v16  ;;  %v3168_v32 = vadd.f32 %v7493_v27, %v3065_v37  ;;  %v3052_v40 = vmul.f32 %v7599_v50, %v3002_v59  ;;  %v3053_v41 = vmul.f32 %v7603_v30, %v3014_v55  ;;  %v8540_v50 = vld [vmem:[#allocation60_spill] sm:$0xff]  ;;  %v8541_v30 = vld [vmem:[#allocation95_spill] sm:$0xff]  ;;  %v8549_v37 = vld [vmem:[#allocation54_spill] sm:$0xff] }
 0x7cd   :  { %v3066_v7 = vadd.f32 %v8537_v42, %v2963_v38  ;;  %v3557_v35 = vsel %vm1032_vm4, %v8456_v61, %v3538_v3  ;;  %v7854_v5 = vadd.f32 %v8538_v11, %v3219_v53  ;;  %v3324_v47 = vadd.f32 %v8539_v9, %v3221_v51  ;;  %v3540_v20 = vpop.permute.xlu1 %3539  ;;  %v8543_v51 = vld [vmem:[#allocation104_spill] sm:$0xff]  ;;  %v8550_v59 = vld [vmem:[#allocation106_spill] sm:$0xff]  ;;  %v8551_v55 = vld [vmem:[#allocation61_spill] sm:$0xff] }
 0x7ce   :  { %v3068_v10 = vadd.f32 %v3052_v40, %v2965_v28  ;;  %v3069_v29 = vadd.f32 %v3053_v41, %v2966_v13  ;;  %v3594_v48 = vmul.f32 %v7646_v60, %v3557_v35  ;;  %v3696_v27 = vpop.permute.xlu0 %3695  ;;  %v3222_v0 = vadd.f32 %v8540_v50, %v3167_v62  ;;  %v8552_v56 = vld [vmem:[#allocation62_spill] sm:$0xff]  ;;  %v8555_v35 = vld [vmem:[#allocation112_spill] sm:$0xff]  ;;  %v8556_v9 = vld [vmem:[#allocation135_spill] sm:$0xff] }
 0x7cf   :  { %v7860_v1 = vadd.f32 %v8541_v30, %v3066_v7  ;;  %v3715_v61 = vsel %vm1082_vm5, %v7145_v31, %v3696_v27  ;;  %v3558_v53 = vsel %vm1032_vm4, %v8542_v54, %v3540_v20  ;;  %v3617_v28 = vadd.f32 %v8543_v51, %v3324_v47  ;;  %v8548_v31 = vld [vmem:[#allocation58_spill] sm:$0xff]  ;;  %v8559_v50 = vld [vmem:[#allocation157_spill] sm:$0xff] }
 0x7d0   :  { %v3171_v15 = vadd.f32 %v8544_v25, %v3068_v10  ;;  %v7871_v14 = vadd.f32 %v8545_v2, %v3069_v29  ;;  %v3610_v17 = vadd.f32 %v3594_v48, %v7779_v8  ;;  %v3751_v46 = vmul.f32 %v8546_v23, %v3715_v61  ;;  %v8553_v42 = vld [vmem:[#allocation130_spill] sm:$0xff]  ;;  %v8560_v30 = vld [vmem:[#allocation97_spill] sm:$0xff] }
 0x7d1   :  { %v3598_v45 = vmul.f32 %v7646_v60, %v3558_v53  ;;  %v7877_v26 = vadd.f32 %v8547_v12, %v3222_v0  ;;  %v7880_v16 = vadd.f32 %v8548_v31, %v3617_v28  ;;  %v3220_v18 = vadd.f32 %v8549_v37, %v3165_v58  ;;  %v3698_v13 = vpop.permute.xlu1 %3697  ;;  %v8554_v58 = vld [vmem:[#allocation148_spill] sm:$0xff]  ;;  %v8558_v48 = vld [vmem:[#allocation102_spill] sm:$0xff]  ;;  %v8562_v12 = vld [vmem:[#allocation131_spill] sm:$0xff] }
 0x7d2   :  { %v3767_v49 = vadd.f32 %v3751_v46, %v7771_v4  ;;  %v3546_v38 = vpop.permute.xlu0 %3545  ;;  %v3665_v36 = vadd.f32 %v8550_v59, %v3610_v17  ;;  %v3226_v8 = vadd.f32 %v8551_v55, %v3171_v15  ;;  %v3223_v62 = vadd.f32 %v8552_v56, %v3168_v32  ;;  %v8561_v17 = vld [vmem:[#allocation132_spill] sm:$0xff]  ;;  %v8563_v31 = vld [vmem:[#allocation57_spill] sm:$0xff] }
 0x7d3   :  { %v3614_v40 = vadd.f32 %v3598_v45, %v7803_v63  ;;  %v3553_v41 = vsel %vm1032_vm4, %v3538_v3, %v3546_v38  ;;  %v3565_v7 = vsel %vm1032_vm4, %v3546_v38, %v8553_v42  ;;  %v3716_v4 = vsel %vm1082_vm5, %v8554_v58, %v3698_v13  ;;  %v8557_v63 = vld [vmem:[#allocation108_spill] sm:$0xff] }
 0x7d4   :  { %v3592_v11 = vmul.f32 %v8555_v35, %v3565_v7  ;;  %v3595_v47 = vmul.f32 %v8556_v9, %v3553_v41  ;;  %v3755_v10 = vmul.f32 %v8546_v23, %v3716_v4  ;;  %v3804_v32 = vadd.f32 %v7698_v33, %v3767_v49  ;;  %v8565_v59 = vld [vmem:[#allocation140_spill] sm:$0xff]  ;;  %v8567_v7 = vld [vmem:[#allocation134_spill] sm:$0xff] }
 0x7d5   :  { %v3669_v29 = vadd.f32 %v8557_v63, %v3614_v40  ;;  %v7902_v3 = vadd.f32 %v8558_v48, %v3226_v8  ;;  %v7905_v0 = vadd.f32 %v8559_v50, %v3220_v18  ;;  %v7908_v61 = vadd.f32 %v8560_v30, %v3223_v62  ;;  %v3548_v25 = vpop.permute.xlu1 %3547  ;;  %v8566_v62 = vld [vmem:[#allocation103_spill] sm:$0xff]  ;;  %v8569_v50 = vld [vmem:[#allocation81_spill] sm:$0xff] }
 0x7d6   :  { %v3608_v54 = vadd.f32 %v3592_v11, %v7783_v57  ;;  %v3611_v53 = vadd.f32 %v3595_v47, %v7806_v34  ;;  %v3771_v51 = vadd.f32 %v3755_v10, %v3668_v44  ;;  %v3704_v28 = vpop.permute.xlu0 %3703  ;;  %v3820_v15 = vmax.f32 %v3804_v32, 0.0  ;;  %v8564_v44 = vld [vmem:[#allocation73_spill] sm:$0xff] }
 0x7d7   :  { %v3711_v2 = vsel %vm1082_vm5, %v3696_v27, %v3704_v28  ;;  %v3723_v46 = vsel %vm1082_vm5, %v3704_v28, %v8561_v17  ;;  %v3554_v45 = vsel %vm1032_vm4, %v3540_v20, %v3548_v25  ;;  %v3566_v57 = vsel %vm1032_vm4, %v3548_v25, %v8562_v12  ;;  %v8568_v10 = vld [vmem:[#allocation133_spill] sm:$0xff] }
 0x7d8   :  { %v3663_v34 = vadd.f32 %v8563_v31, %v3608_v54  ;;  %v3666_v37 = vadd.f32 %v8564_v44, %v3611_v53  ;;  %v3752_v18 = vmul.f32 %v7687_v52, %v3711_v2  ;;  %v3753_v49 = vmul.f32 %v7695_v22, %v3723_v46  ;;  %v8571_v30 = vld [vmem:[#allocation101_spill] sm:$0xff]  ;;  %v8574_v44 = vld [vmem:[#allocation138_spill] sm:$0xff] }
 0x7d9   :  { %v3596_v27 = vmul.f32 %v8555_v35, %v3566_v57  ;;  %v3599_v38 = vmul.f32 %v8556_v9, %v3554_v45  ;;  %v4247_v55 = vadd.f32 %v8565_v59, %v3820_v15  ;;  %v3808_v20 = vadd.f32 %v7698_v33, %v3771_v51  ;;  %v3706_v41 = vpop.permute.xlu1 %3705  ;;  %v8572_v12 = vld [vmem:[#allocation77_spill] sm:$0xff] }
 0x7da   :  { %v3768_v8 = vadd.f32 %v3752_v18, %v3665_v36  ;;  %v3769_v56 = vadd.f32 %v3753_v49, %v3666_v37  ;;  %v3766_v40 = vadd.f32 %v8566_v62, %v3663_v34  ;;  %v3542_v42 = vpop.permute.xlu0 %3541  ;;  %v3328_v58 = vadd.f32 %v8567_v7, %v7836_v43  ;;  %v8570_v43 = vld [vmem:[#allocation74_spill] sm:$0xff]  ;;  %v8573_v31 = vld [vmem:[#allocation149_spill] sm:$0xff] }
 0x7db   :  { %v3612_v4 = vadd.f32 %v3596_v27, %v7832_v39  ;;  %v3615_v11 = vadd.f32 %v3599_v38, %v7854_v5  ;;  %4263 = vst [vmem:[#allocation32 + $0x8] sm:$0xff] %v4247_v55  ;;  %v3712_v47 = vsel %vm1082_vm5, %v3698_v13, %v3706_v41  ;;  %v3724_v36 = vsel %vm1082_vm5, %v3706_v41, %v8568_v10  ;;  %v8575_v18 = vld [vmem:[#allocation98_spill] sm:$0xff] }
 0x7dc   :  { %v3803_v32 = vadd.f32 %v7709_v24, %v3766_v40  ;;  %v3756_v63 = vmul.f32 %v7687_v52, %v3712_v47  ;;  %v3757_v48 = vmul.f32 %v7695_v22, %v3724_v36  ;;  %v3559_v39 = vsel %vm1032_vm4, %v8569_v50, %v3542_v42  ;;  %v8578_v40 = vld [vmem:[#allocation99_spill] sm:$0xff] }
 0x7dd   :  { %v3667_v5 = vadd.f32 %v8570_v43, %v3612_v4  ;;  %v3670_v54 = vadd.f32 %v8571_v30, %v3615_v11  ;;  %v3602_v13 = vmul.f32 %v7646_v60, %v3559_v39  ;;  %v3824_v53 = vmax.f32 %v3808_v20, 0.0  ;;  %v3544_v15 = vpop.permute.xlu1 %3543  ;;  %v8581_v50 = vld [vmem:[#allocation75_spill] sm:$0xff]  ;;  %v8583_v30 = vld [vmem:[#allocation146_spill] sm:$0xff] }
 0x7de   :  { %v3819_v51 = vmax.f32 %v3803_v32, 0.0  ;;  %v3772_v28 = vadd.f32 %v3756_v63, %v3669_v29  ;;  %v3700_v25 = vpop.permute.xlu0 %3699  ;;  %v3805_v2 = vadd.f32 %v7717_v21, %v3768_v8  ;;  %v3806_v17 = vadd.f32 %v7720_v6, %v3769_v56  ;;  %v8576_v29 = vld [vmem:[#allocation66_spill] sm:$0xff]  ;;  %v8577_v8 = vld [vmem:[#allocation137_spill] sm:$0xff]  ;;  %v8579_v32 = vld [vmem:[#allocation139_spill] sm:$0xff] }
 0x7df   :  { %v3773_v46 = vadd.f32 %v3757_v48, %v3670_v54  ;;  %v3618_v45 = vadd.f32 %v3602_v13, %v7877_v26  ;;  %v3770_v57 = vadd.f32 %v8572_v12, %v3667_v5  ;;  %v4251_v34 = vadd.f32 %v8573_v31, %v3824_v53  ;;  %v8580_v48 = vld [vmem:[#allocation156_spill] sm:$0xff]  ;;  %v8582_v43 = vld [vmem:[#allocation79_spill] sm:$0xff] }
 0x7e0   :  { %v4246_v37 = vadd.f32 %v8574_v44, %v3819_v51  ;;  %v3717_v49 = vsel %vm1082_vm5, %v8575_v18, %v3700_v25  ;;  %v3560_v27 = vsel %vm1032_vm4, %v8576_v29, %v3544_v15  ;;  %v3821_v38 = vmax.f32 %v3805_v2, 0.0  ;;  %v8584_v51 = vld [vmem:[#allocation107_spill] sm:$0xff]  ;;  %v8588_v29 = vld [vmem:[#allocation170_spill] sm:$0xff] }
 0x7e1   :  { %v3807_v59 = vadd.f32 %v7709_v24, %v3770_v57  ;;  %4267 = vst [vmem:[#allocation32 + $0x28] sm:$0xff] %v4251_v34  ;;  %v3759_v26 = vmul.f32 %v8546_v23, %v3717_v49  ;;  %v3606_v55 = vmul.f32 %v7646_v60, %v3560_v27  ;;  %v3822_v20 = vmax.f32 %v3806_v17, 0.0  ;;  %v3702_v7 = vpop.permute.xlu1 %3701  ;;  %v8585_v17 = vld [vmem:[#allocation56_spill] sm:$0xff]  ;;  %v8587_v18 = vld [vmem:[#allocation147_spill] sm:$0xff]  ;;  %v8589_v27 = vld [vmem:[#allocation65_spill] sm:$0xff] }
 0x7e2   :  { %4262 = vst [vmem:[#allocation32] sm:$0xff] %v4246_v37  ;;  %v4248_v56 = vadd.f32 %v8577_v8, %v3821_v38  ;;  %v3550_v62 = vpop.permute.xlu0 %3549  ;;  %v3621_v41 = vadd.f32 %v8578_v40, %v3328_v58  ;;  %v3809_v4 = vadd.f32 %v7717_v21, %v3772_v28  ;;  %v3810_v11 = vadd.f32 %v7720_v6, %v3773_v46  ;;  %v8586_v37 = vld [vmem:[#allocation142_spill] sm:$0xff] }
 0x7e3   :  { %v3823_v47 = vmax.f32 %v3807_v59, 0.0  ;;  %v3775_v10 = vadd.f32 %v3759_v26, %v7880_v16  ;;  %v3622_v36 = vadd.f32 %v3606_v55, %v7902_v3  ;;  %v4249_v63 = vadd.f32 %v8579_v32, %v3822_v20  ;;  %v8590_v59 = vld [vmem:[#allocation110_spill] sm:$0xff]  ;;  %v8592_v20 = vld [vmem:[#allocation63_spill] sm:$0xff]  ;;  %v8594_v32 = vld [vmem:[#allocation105_spill] sm:$0xff] }
 0x7e4   :  { %4264 = vst [vmem:[#allocation32 + $0x10] sm:$0xff] %v4248_v56  ;;  %v3555_v60 = vsel %vm1032_vm4, %v3542_v42, %v3550_v62  ;;  %v3567_v58 = vsel %vm1032_vm4, %v3550_v62, %v8580_v48  ;;  %v3676_v39 = vadd.f32 %v8581_v50, %v3621_v41  ;;  %v3718_v5 = vsel %vm1082_vm5, %v8582_v43, %v3702_v7  ;;  %v8591_v26 = vld [vmem:[#allocation158_spill] sm:$0xff]  ;;  %v8593_v62 = vld [vmem:[#allocation159_spill] sm:$0xff] }
 0x7e5   :  { %v4250_v16 = vadd.f32 %v8583_v30, %v3823_v47  ;;  %4265 = vst [vmem:[#allocation32 + $0x18] sm:$0xff] %v4249_v63  ;;  %v3600_v3 = vmul.f32 %v8555_v35, %v3567_v58  ;;  %v3603_v54 = vmul.f32 %v8556_v9, %v3555_v60  ;;  %v3763_v13 = vmul.f32 %v8546_v23, %v3718_v5  ;;  %v3552_v12 = vpop.permute.xlu1 %3551  ;;  %v8595_v60 = vld [vmem:[#allocation76_spill] sm:$0xff]  ;;  %v8597_v5 = vld [vmem:[#allocation171_spill] sm:$0xff] }
 0x7e6   :  { %v3825_v42 = vmax.f32 %v3809_v4, 0.0  ;;  %v3826_v53 = vmax.f32 %v3810_v11, 0.0  ;;  %v3673_v28 = vadd.f32 %v8584_v51, %v3618_v45  ;;  %v3708_v2 = vpop.permute.xlu0 %3707  ;;  %v3224_v46 = vadd.f32 %v8585_v17, %v7860_v1 }
 0x7e7   :  { %4266 = vst [vmem:[#allocation32 + $0x20] sm:$0xff] %v4250_v16  ;;  %v3616_v57 = vadd.f32 %v3600_v3, %v7905_v0  ;;  %v3619_v31 = vadd.f32 %v3603_v54, %v7908_v61  ;;  %v3779_v34 = vadd.f32 %v3763_v13, %v3676_v39  ;;  %v3713_v44 = vsel %vm1082_vm5, %v3700_v25, %v3708_v2  ;;  %v8598_v54 = vld [vmem:[#allocation91_spill] sm:$0xff] }
 0x7e8   :  { %v4252_v23 = vadd.f32 %v8586_v37, %v3825_v42  ;;  %v4253_v49 = vadd.f32 %v8587_v18, %v3826_v53  ;;  %v3725_v45 = vsel %vm1082_vm5, %v3708_v2, %v8588_v29  ;;  %v3760_v1 = vmul.f32 %v7687_v52, %v3713_v44  ;;  %v8599_v53 = vld [vmem:[#allocation154_spill] sm:$0xff]  ;;  %v8604_v18 = vld [vmem:[#allocation151_spill] sm:$0xff] }
 0x7e9   :  { %v3671_v38 = vadd.f32 %v8589_v27, %v3616_v57  ;;  %v3674_v0 = vadd.f32 %v8590_v59, %v3619_v31  ;;  %v3761_v61 = vmul.f32 %v7695_v22, %v3725_v45  ;;  %v3327_v55 = vadd.f32 %v8591_v26, %v3224_v46  ;;  %v3710_v41 = vpop.permute.xlu1 %3709  ;;  %v8605_v45 = vld [vmem:[#allocation153_spill] sm:$0xff]  ;;  %v8606_v59 = vld [vmem:[#allocation160_spill] sm:$0xff] }
 0x7ea   :  { %4268 = vst [vmem:[#allocation32 + $0x30] sm:$0xff] %v4252_v23  ;;  %4269 = vst [vmem:[#allocation32 + $0x38] sm:$0xff] %v4253_v49  ;;  %v3776_v25 = vadd.f32 %v3760_v1, %v3673_v28  ;;  %v3227_v8 = vadd.f32 %v8592_v20, %v7871_v14  ;;  %v3556_v56 = vsel %vm1032_vm4, %v3544_v15, %v3552_v12  ;;  %v8596_v14 = vld [vmem:[#allocation111_spill] sm:$0xff]  ;;  %v8600_v28 = vld [vmem:[#allocation113_spill] sm:$0xff] }
 0x7eb   :  { %v3568_v40 = vsel %vm1032_vm4, %v3552_v12, %v8593_v62  ;;  %v3777_v4 = vadd.f32 %v3761_v61, %v3674_v0  ;;  %v3607_v47 = vmul.f32 %v8556_v9, %v3556_v56  ;;  %v3774_v63 = vadd.f32 %v8594_v32, %v3671_v38  ;;  %v8602_v12 = vld [vmem:[#allocation72_spill] sm:$0xff]  ;;  %v8607_v61 = vld [vmem:[#allocation161_spill] sm:$0xff] }
 0x7ec   :  { %v3604_v11 = vmul.f32 %v8555_v35, %v3568_v40  ;;  %v3330_v48 = vadd.f32 %v8595_v60, %v3227_v8  ;;  %v3812_v58 = vadd.f32 %v7698_v33, %v3775_v10  ;;  %v3677_v50 = vadd.f32 %v8596_v14, %v3622_v36 }
 0x7ed   :  { %v3714_v15 = vsel %vm1082_vm5, %v3702_v7, %v3710_v41  ;;  %v3811_v43 = vadd.f32 %v7709_v24, %v3774_v63  ;;  %v3726_v35 = vsel %vm1082_vm5, %v3710_v41, %v8597_v5  ;;  %v3816_v10 = vadd.f32 %v7698_v33, %v3779_v34  ;;  %v8603_v34 = vld [vmem:[#allocation166_spill] sm:$0xff] }
 0x7ee   :  { %v3620_v39 = vadd.f32 %v3604_v11, %v3327_v55  ;;  %v3764_v9 = vmul.f32 %v7687_v52, %v3714_v15  ;;  %v3623_v30 = vadd.f32 %v3607_v47, %v3330_v48  ;;  %v3828_v16 = vmax.f32 %v3812_v58, 0.0  ;;  %v8601_v52 = vld [vmem:[#allocation152_spill] sm:$0xff] }
 0x7ef   :  { %v3765_v3 = vmul.f32 %v7695_v22, %v3726_v35  ;;  %v3827_v13 = vmax.f32 %v3811_v43, 0.0  ;;  %v3813_v7 = vadd.f32 %v7717_v21, %v3776_v25  ;;  %v3832_v19 = vmax.f32 %v3816_v10, 0.0 }
 0x7f0   :  { %v3675_v36 = vadd.f32 %v8598_v54, %v3620_v39  ;;  %v3780_v42 = vadd.f32 %v3764_v9, %v3677_v50  ;;  %v4255_v51 = vadd.f32 %v8599_v53, %v3828_v16  ;;  %v3678_v2 = vadd.f32 %v8600_v28, %v3623_v30 }
 0x7f1   :  { %v3814_v17 = vadd.f32 %v7720_v6, %v3777_v4  ;;  %v4254_v46 = vadd.f32 %v8601_v52, %v3827_v13  ;;  %v3829_v22 = vmax.f32 %v3813_v7, 0.0  ;;  %v4259_v44 = vadd.f32 %v8603_v34, %v3832_v19 }
 0x7f2   :  { %v3778_v57 = vadd.f32 %v8602_v12, %v3675_v36  ;;  %v3817_v33 = vadd.f32 %v7717_v21, %v3780_v42  ;;  %4271 = vst [vmem:[#allocation32 + $0x48] sm:$0xff] %v4255_v51  ;;  %v3781_v31 = vadd.f32 %v3765_v3, %v3678_v2 }
 0x7f3   :  { %v3830_v37 = vmax.f32 %v3814_v17, 0.0  ;;  %4270 = vst [vmem:[#allocation32 + $0x40] sm:$0xff] %v4254_v46  ;;  %v4256_v49 = vadd.f32 %v8604_v18, %v3829_v22  ;;  %4275 = vst [vmem:[#allocation32 + $0x68] sm:$0xff] %v4259_v44 }
 0x7f4   :  { %v3815_v23 = vadd.f32 %v7709_v24, %v3778_v57  ;;  %v3833_v29 = vmax.f32 %v3817_v33, 0.0  ;;  %v3818_v27 = vadd.f32 %v7720_v6, %v3781_v31  ;;  %v8608_v24 = vld [vmem:[#allocation162_spill] sm:$0xff] }
 0x7f5   :  { %v4257_v1 = vadd.f32 %v8605_v45, %v3830_v37  ;;  %4272 = vst [vmem:[#allocation32 + $0x50] sm:$0xff] %v4256_v49 }
 0x7f6   :  { %v3831_v38 = vmax.f32 %v3815_v23, 0.0  ;;  %v4260_v21 = vadd.f32 %v8606_v59, %v3833_v29  ;;  %v3834_v0 = vmax.f32 %v3818_v27, 0.0 }
 0x7f7   :  { %4273 = vst [vmem:[#allocation32 + $0x58] sm:$0xff] %v4257_v1 }
 0x7f8   :  { %v4258_v26 = vadd.f32 %v8607_v61, %v3831_v38  ;;  %4276 = vst [vmem:[#allocation32 + $0x70] sm:$0xff] %v4260_v21  ;;  %v4261_v55 = vadd.f32 %v8608_v24, %v3834_v0 }
 0x7fa   :  { %4274 = vst [vmem:[#allocation32 + $0x60] sm:$0xff] %v4258_v26  ;;  %4277 = vst [vmem:[#allocation32 + $0x78] sm:$0xff] %v4261_v55 }
 0x7fb   :  { %5589 = shalt.err (!%p5586_p4)
}
 0x7fc   :  { %s8609_s18 = sld [smem:[#allocation184_spill]] }
 0x802   :  { %s5590_s23 = scalar_lea.hbm %s8609_s18, 2048 }
 0x803   :  { %p5591_p5 = scmp.ne.s32.totalorder %s8609_s18, %s5590_s23  ;;  %p5594_p6 = scmp.lt.u32.totalorder %s5590_s23, %s8609_s18 }
 0x805   :  { %p5596_p7 = pnand %p5594_p6, %p5591_p5 }
 0x807   :  { %5599 = shalt.err (!%p5596_p7)
}
 0x808   :  { %4289 = dma.vmem_to_hbm [thread:$0]  %s4284_s14, 2048, %s8609_s18, [#allocation4], %s5638_s5, %s5638_s5, %s5639_s9  }
 0x809   :  { %5620 = dma.done.wait [#allocation4], 2048  }
 0x80a   :  { %5621 = vsyncadd [#allocation4], 4294965248 }
 0x80b   :  { %5622 = dma.done.wait [#allocation34], 640  }
 0x80c   :  { %5623 = vsyncadd [#allocation34], 4294966656 }
 0x80d   :  { %4321 = vsyncpa [#allocation3], 1 }
 0x80e   :  { %4322 = vsyncpa [#allocation6], 1 }
 0x80f   :  { %4323 = vsyncpa [#allocation9], 1 }
 0x810   :  { %4324 = vsyncpa [#allocation12], 1 }
 0x811   :  { %4325 = vsyncpa [#allocation15], 1 }
 0x812   :  { %4326 = vsyncpa [#allocation18], 1 }
 0x813   :  { %4327 = vsyncpa [#allocation21], 1 }
 0x814   :  { %4328 = vsyncpa [#allocation24], 1 }
 0x815   :  { %4329 = vsyncpa [#allocation27], 1 }
 0x816   :  { %4330 = vsyncpa [#allocation30], 1 }
 0x817   :  { %4331 = vsyncpa [#allocation4], 1 }
 0x818   :  { %4332 = vsyncpa [#allocation34], 1 }

</bundles_post_ra>
